<compile_context>
chip_gen: v7x
topology: tpu7x:2x2x1
jax: 0.10.0
libtpu: 0.0.40
codegen_flags: <defaults>
</compile_context>

<pallas_src>
import functools

import jax
import jax.numpy as jnp
import numpy as np
from jax.experimental import pallas as pl
from jax.experimental.pallas import tpu as pltpu


LANE = 128
# Row tile for the M grid axis. 256 fills the 256-wide MXU on v6e/v7x; on v5e it
# simply becomes two serial 128-passes, which is fine (these layers are HBM-bound).
DEFAULT_TILE_M = 256


def _round_up(x, m):
    return (x + m - 1) // m * m


# ----------------------------- Pallas kernel --------------------------------

def _matmul_bias_act_kernel(x_ref, w_ref, b_ref, o_ref, *, apply_relu):
    # bf16 x bf16 -> f32 accumulate on the MXU; bias + ReLU fused in f32.
    acc = jnp.dot(x_ref[...], w_ref[...], preferred_element_type=jnp.float32)
    acc = acc + b_ref[...]
    if apply_relu:
        acc = jnp.maximum(acc, 0.0)
    o_ref[...] = acc.astype(o_ref.dtype)


def matmul_bias_act(x, w, b, *, apply_relu, out_dtype, tile_m=DEFAULT_TILE_M):
    """(M, K) @ (K, N) + b[1, N], optional ReLU.  N must be a multiple of 128.

    Tiled over M; weight/bias have constant index_maps so they stay VMEM-resident
    across the whole M axis while patch rows and output tiles are double-buffered.
    """
    M, K = x.shape
    K2, N = w.shape
    assert K == K2 and b.shape == (1, N) and N % LANE == 0

    x = x.astype(jnp.bfloat16)
    w = w.astype(jnp.bfloat16)
    b = b.astype(jnp.float32)

    # Shrink the tile for small layers so tiny M isn't padded up to 256 rows;
    # tm stays a multiple of 8 (sublane constraint) and divides the padded M.
    tm = min(tile_m, _round_up(M, 8))
    m_pad = _round_up(M, tm)
    if m_pad != M:
        x = jnp.pad(x, ((0, m_pad - M), (0, 0)))

    kernel = functools.partial(_matmul_bias_act_kernel, apply_relu=apply_relu)
    out = pl.pallas_call(
        kernel,
        out_shape=jax.ShapeDtypeStruct((m_pad, N), out_dtype),
        grid=(m_pad // tm,),
        in_specs=[
            pl.BlockSpec((tm, K), lambda i: (i, 0)),   # streamed patch rows
            pl.BlockSpec((K, N), lambda i: (0, 0)),    # weight: VMEM-resident
            pl.BlockSpec((1, N), lambda i: (0, 0)),    # bias:   VMEM-resident
        ],
        out_specs=pl.BlockSpec((tm, N), lambda i: (i, 0)),
        compiler_params=pltpu.CompilerParams(
            dimension_semantics=("parallel",)),        # use both TCs on v7x
    )(x, w, b)
    return out[:M] if m_pad != M else out


# ------------------------------- JAX glue ------------------------------------

def im2col_nhwc(x, kh, kw, stride):
    """x: (B, H, W, C) -> (B*Ho*Wo, kh*kw*C); column order (kh, kw, C)."""
    B, H, W, C = x.shape
    Ho = (H - kh) // stride + 1
    Wo = (W - kw) // stride + 1
    cols = []
    for i in range(kh):
        for j in range(kw):
            cols.append(x[:, i:i + stride * Ho:stride, j:j + stride * Wo:stride, :])
    p = jnp.stack(cols, axis=3)                       # (B, Ho, Wo, kh*kw, C)
    return p.reshape(B * Ho * Wo, kh * kw * C), Ho, Wo


def conv2d_pallas(x, wmat, b, *, kh, kw, stride, cout, apply_relu=True,
                  out_dtype=jnp.bfloat16):
    """x: (B, H, W, Cin) NHWC; wmat: (kh*kw*Cin, Npad) prepped -> (B, Ho, Wo, cout)."""
    B = x.shape[0]
    patches, Ho, Wo = im2col_nhwc(x, kh, kw, stride)
    out = matmul_bias_act(patches, wmat, b, apply_relu=apply_relu, out_dtype=out_dtype)
    out = out[:, :cout]                               # drop zero-padded channels
    return out.reshape(B, Ho, Wo, cout)


def prepare_params(params):
    """One-time weight prep: im2col layout, lane padding (N -> mult of 128), bf16."""
    def conv_w(w):
        cout, cin, kh, kw = w.shape
        n_pad = _round_up(cout, LANE)
        m = w.transpose(2, 3, 1, 0).reshape(kh * kw * cin, cout)   # (kh*kw*Cin, Cout)
        m = jnp.pad(m, ((0, 0), (0, n_pad - cout)))
        return m.astype(jnp.bfloat16)

    def pad_bias(bv):
        n_pad = _round_up(bv.shape[0], LANE)
        return jnp.pad(bv, (0, n_pad - bv.shape[0])).astype(jnp.float32).reshape(1, n_pad)

    # FC weight: reorder columns from PyTorch's (C, H, W) flatten to our NHWC (H, W, C)
    # flatten, then transpose to (K, N) and pad N 10 -> 128 with zeros.
    wfc = params["wfc"].reshape(10, 128, 3, 3).transpose(0, 2, 3, 1)
    wfc = wfc.reshape(10, 128 * 3 * 3).T
    wfc = jnp.pad(wfc, ((0, 0), (0, _round_up(10, LANE) - 10))).astype(jnp.bfloat16)

    return {
        "w1": conv_w(params["w1"]), "b1": pad_bias(params["b1"]),
        "w2": conv_w(params["w2"]), "b2": pad_bias(params["b2"]),
        "w3": conv_w(params["w3"]), "b3": pad_bias(params["b3"]),
        "wfc": wfc, "bfc": pad_bias(params["bfc"]),
    }


def cnn_forward(x_nchw, p):
    """Matches CNN.forward: conv1/relu, conv2/relu, conv3/relu, flatten, fc."""
    x = x_nchw.transpose(0, 2, 3, 1).astype(jnp.bfloat16)          # NCHW -> NHWC once
    x = conv2d_pallas(x, p["w1"], p["b1"], kh=8, kw=8, stride=1, cout=64)
    x = conv2d_pallas(x, p["w2"], p["b2"], kh=6, kw=6, stride=2, cout=128)
    x = conv2d_pallas(x, p["w3"], p["b3"], kh=5, kw=5, stride=2, cout=128)
    B = x.shape[0]
    x = x.reshape(B, -1)                                           # (B, 3*3*128), NHWC order
    out = matmul_bias_act(x, p["wfc"], p["bfc"], apply_relu=False, out_dtype=jnp.float32)
    return out[:, :10]


# --------------------------- deterministic params ----------------------------

def init_params(key, in_channels=1):
    """PyTorch-default-style init: U(-1/sqrt(fan_in), 1/sqrt(fan_in))."""
    def uniform(k, shape, fan_in):
        bound = 1.0 / np.sqrt(fan_in)
        return jax.random.uniform(k, shape, jnp.float32, -bound, bound)

    ks = jax.random.split(key, 8)
    p = {}
    p["w1"] = uniform(ks[0], (64, in_channels, 8, 8), in_channels * 8 * 8)
    p["b1"] = uniform(ks[1], (64,), in_channels * 8 * 8)
    p["w2"] = uniform(ks[2], (128, 64, 6, 6), 64 * 6 * 6)
    p["b2"] = uniform(ks[3], (128,), 64 * 6 * 6)
    p["w3"] = uniform(ks[4], (128, 128, 5, 5), 128 * 5 * 5)
    p["b3"] = uniform(ks[5], (128,), 128 * 5 * 5)
    p["wfc"] = uniform(ks[6], (10, 128 * 3 * 3), 128 * 3 * 3)
    p["bfc"] = uniform(ks[7], (10,), 128 * 3 * 3)
    return p


# ------------------------------ JAX reference ---------------------------------

def reference_forward(x, params):
    def conv(x, w, b, stride):
        y = jax.lax.conv_general_dilated(
            x, w, window_strides=(stride, stride), padding="VALID",
            dimension_numbers=("NCHW", "OIHW", "NCHW"),
            precision=jax.lax.Precision.HIGHEST)
        return y + b.reshape(1, -1, 1, 1)

    x = jax.nn.relu(conv(x, params["w1"], params["b1"], 1))
    x = jax.nn.relu(conv(x, params["w2"], params["b2"], 2))
    x = jax.nn.relu(conv(x, params["w3"], params["b3"], 2))
    x = x.reshape(x.shape[0], -1)
    return jnp.dot(x, params["wfc"].T,
                   precision=jax.lax.Precision.HIGHEST) + params["bfc"]


# ---------------------------------- main --------------------------------------

if __name__ == "__main__":
    key = jax.random.PRNGKey(0)
    kp, kx = jax.random.split(key)
    params = init_params(kp, in_channels=1)
    prepped = prepare_params(params)   # one-time weight layout / pad / bf16 prep

    # Smallest input consistent with the module: 32x32 -> 25 -> 10 -> 3 -> fc(128*3*3).
    x = jax.random.normal(kx, (2, 1, 32, 32), jnp.float32)

    fwd = jax.jit(cnn_forward)
    out = jax.block_until_ready(fwd(x, prepped))
    assert out.shape == (2, 10), out.shape

    ref = reference_forward(x, params)
    err = float(jnp.max(jnp.abs(out - ref)))
    scale = float(jnp.max(jnp.abs(ref))) + 1.0
    assert np.isfinite(err) and err <= 2e-2 * scale, f"mismatch: {err} vs scale {scale}"

    print("KERNEL_OK")
</pallas_src>

<mosaic_0001>
module attributes {stable_mosaic.version = 11 : i64} {
  func.func @_matmul_bias_act_kernel(%arg0: i32, %arg1: memref<256x64xbf16, #tpu.memory_space<vmem>>, %arg2: memref<64x128xbf16, #tpu.memory_space<vmem>>, %arg3: memref<1x128xf32, #tpu.memory_space<vmem>>, %arg4: memref<256x128xbf16, #tpu.memory_space<vmem>>) attributes {dimension_semantics = [#tpu.dimension_semantics<parallel>], iteration_bounds = array<i64: 5>, scalar_prefetch = 0 : i64, scratch_operands = 0 : i64, tpu.core_type = #tpu.core_type<tc>, window_params = [{transform_indices = @transform_0, window_bounds = array<i64: 256, 64>}, {pipeline_mode = #tpu.pipeline_mode<synchronous>, transform_indices = @transform_1, window_bounds = array<i64: 64, 128>}, {pipeline_mode = #tpu.pipeline_mode<synchronous>, transform_indices = @transform_2, window_bounds = array<i64: 1, 128>}, {transform_indices = @transform_3, window_bounds = array<i64: 256, 128>}]} {
    %c0 = arith.constant 0 : index
    %c0_0 = arith.constant 0 : index
    %0 = vector.load %arg1[%c0, %c0_0] : memref<256x64xbf16, #tpu.memory_space<vmem>>, vector<256x64xbf16>
    %c0_1 = arith.constant 0 : index
    %c0_2 = arith.constant 0 : index
    %1 = vector.load %arg2[%c0_1, %c0_2] : memref<64x128xbf16, #tpu.memory_space<vmem>>, vector<64x128xbf16>
    %cst = arith.constant dense<0.000000e+00> : vector<256x128xf32>
    %2 = tpu.matmul %0, %1, %cst {dimension_numbers = #tpu.dot_dimension_numbers<[1], [0], [0], [1], [0, 0, 1, 1], [], []>} : vector<256x64xbf16>, vector<64x128xbf16>, vector<256x128xf32> -> vector<256x128xf32>
    %c0_3 = arith.constant 0 : index
    %c0_4 = arith.constant 0 : index
    %3 = vector.load %arg3[%c0_3, %c0_4] : memref<1x128xf32, #tpu.memory_space<vmem>>, vector<1x128xf32>
    %4 = vector.broadcast %3 : vector<1x128xf32> to vector<256x128xf32>
    %5 = arith.addf %2, %4 : vector<256x128xf32>
    %cst_5 = arith.constant 0.000000e+00 : f32
    %6 = vector.broadcast %cst_5 : f32 to vector<256x128xf32>
    %7 = arith.maximumf %5, %6 : vector<256x128xf32>
    %8 = arith.truncf %7 : vector<256x128xf32> to vector<256x128xbf16>
    %c0_6 = arith.constant 0 : index
    %c0_7 = arith.constant 0 : index
    %9 = vector.load %arg4[%c0_6, %c0_7] : memref<256x128xbf16, #tpu.memory_space<vmem>>, vector<256x128xbf16>
    tpu.vector_store %arg4[%c0_6, %c0_7], %8 {strides = array<i32>} : memref<256x128xbf16, #tpu.memory_space<vmem>>, vector<256x128xbf16>,
    return
  }
  func.func @transform_0(%arg0: i32) -> (i32, i32) {
    %c0_i32 = arith.constant 0 : i32
    %c0_i32_0 = arith.constant 0 : i32
    return %arg0, %c0_i32 : i32, i32
  }
  func.func @transform_1(%arg0: i32) -> (i32, i32) {
    %c0_i32 = arith.constant 0 : i32
    %c0_i32_0 = arith.constant 0 : i32
    %c0_i32_1 = arith.constant 0 : i32
    return %c0_i32, %c0_i32_0 : i32, i32
  }
  func.func @transform_2(%arg0: i32) -> (i32, i32) {
    %c0_i32 = arith.constant 0 : i32
    %c0_i32_0 = arith.constant 0 : i32
    %c0_i32_1 = arith.constant 0 : i32
    return %c0_i32, %c0_i32_0 : i32, i32
  }
  func.func @transform_3(%arg0: i32) -> (i32, i32) {
    %c0_i32 = arith.constant 0 : i32
    %c0_i32_0 = arith.constant 0 : i32
    return %arg0, %c0_i32 : i32, i32
  }
}

module attributes {stable_mosaic.version = 11 : i64} {
  func.func @_matmul_bias_act_kernel(%arg0: i32, %arg1: memref<200x2304xbf16, #tpu.memory_space<vmem>>, %arg2: memref<2304x128xbf16, #tpu.memory_space<vmem>>, %arg3: memref<1x128xf32, #tpu.memory_space<vmem>>, %arg4: memref<200x128xbf16, #tpu.memory_space<vmem>>) attributes {dimension_semantics = [#tpu.dimension_semantics<parallel>], iteration_bounds = array<i64: 1>, scalar_prefetch = 0 : i64, scratch_operands = 0 : i64, tpu.core_type = #tpu.core_type<tc>, window_params = [{transform_indices = @transform_0, window_bounds = array<i64: 200, 2304>}, {pipeline_mode = #tpu.pipeline_mode<synchronous>, transform_indices = @transform_1, window_bounds = array<i64: 2304, 128>}, {pipeline_mode = #tpu.pipeline_mode<synchronous>, transform_indices = @transform_2, window_bounds = array<i64: 1, 128>}, {transform_indices = @transform_3, window_bounds = array<i64: 200, 128>}]} {
    %c0 = arith.constant 0 : index
    %c0_0 = arith.constant 0 : index
    %0 = vector.load %arg1[%c0, %c0_0] : memref<200x2304xbf16, #tpu.memory_space<vmem>>, vector<200x2304xbf16>
    %c0_1 = arith.constant 0 : index
    %c0_2 = arith.constant 0 : index
    %1 = vector.load %arg2[%c0_1, %c0_2] : memref<2304x128xbf16, #tpu.memory_space<vmem>>, vector<2304x128xbf16>
    %cst = arith.constant dense<0.000000e+00> : vector<200x128xf32>
    %2 = tpu.matmul %0, %1, %cst {dimension_numbers = #tpu.dot_dimension_numbers<[1], [0], [0], [1], [0, 0, 1, 1], [], []>} : vector<200x2304xbf16>, vector<2304x128xbf16>, vector<200x128xf32> -> vector<200x128xf32>
    %c0_3 = arith.constant 0 : index
    %c0_4 = arith.constant 0 : index
    %3 = vector.load %arg3[%c0_3, %c0_4] : memref<1x128xf32, #tpu.memory_space<vmem>>, vector<1x128xf32>
    %4 = vector.broadcast %3 : vector<1x128xf32> to vector<200x128xf32>
    %5 = arith.addf %2, %4 : vector<200x128xf32>
    %cst_5 = arith.constant 0.000000e+00 : f32
    %6 = vector.broadcast %cst_5 : f32 to vector<200x128xf32>
    %7 = arith.maximumf %5, %6 : vector<200x128xf32>
    %8 = arith.truncf %7 : vector<200x128xf32> to vector<200x128xbf16>
    %c0_6 = arith.constant 0 : index
    %c0_7 = arith.constant 0 : index
    %9 = vector.load %arg4[%c0_6, %c0_7] : memref<200x128xbf16, #tpu.memory_space<vmem>>, vector<200x128xbf16>
    tpu.vector_store %arg4[%c0_6, %c0_7], %8 {strides = array<i32>} : memref<200x128xbf16, #tpu.memory_space<vmem>>, vector<200x128xbf16>,
    return
  }
  func.func @transform_0(%arg0: i32) -> (i32, i32) {
    %c0_i32 = arith.constant 0 : i32
    %c0_i32_0 = arith.constant 0 : i32
    return %arg0, %c0_i32 : i32, i32
  }
  func.func @transform_1(%arg0: i32) -> (i32, i32) {
    %c0_i32 = arith.constant 0 : i32
    %c0_i32_0 = arith.constant 0 : i32
    %c0_i32_1 = arith.constant 0 : i32
    return %c0_i32, %c0_i32_0 : i32, i32
  }
  func.func @transform_2(%arg0: i32) -> (i32, i32) {
    %c0_i32 = arith.constant 0 : i32
    %c0_i32_0 = arith.constant 0 : i32
    %c0_i32_1 = arith.constant 0 : i32
    return %c0_i32, %c0_i32_0 : i32, i32
  }
  func.func @transform_3(%arg0: i32) -> (i32, i32) {
    %c0_i32 = arith.constant 0 : i32
    %c0_i32_0 = arith.constant 0 : i32
    return %arg0, %c0_i32 : i32, i32
  }
}

module attributes {stable_mosaic.version = 11 : i64} {
  func.func @_matmul_bias_act_kernel(%arg0: i32, %arg1: memref<8x1152xbf16, #tpu.memory_space<vmem>>, %arg2: memref<1152x128xbf16, #tpu.memory_space<vmem>>, %arg3: memref<1x128xf32, #tpu.memory_space<vmem>>, %arg4: memref<8x128xf32, #tpu.memory_space<vmem>>) attributes {dimension_semantics = [#tpu.dimension_semantics<parallel>], iteration_bounds = array<i64: 1>, scalar_prefetch = 0 : i64, scratch_operands = 0 : i64, tpu.core_type = #tpu.core_type<tc>, window_params = [{transform_indices = @transform_0, window_bounds = array<i64: 8, 1152>}, {pipeline_mode = #tpu.pipeline_mode<synchronous>, transform_indices = @transform_1, window_bounds = array<i64: 1152, 128>}, {pipeline_mode = #tpu.pipeline_mode<synchronous>, transform_indices = @transform_2, window_bounds = array<i64: 1, 128>}, {transform_indices = @transform_3, window_bounds = array<i64: 8, 128>}]} {
    %c0 = arith.constant 0 : index
    %c0_0 = arith.constant 0 : index
    %0 = vector.load %arg1[%c0, %c0_0] : memref<8x1152xbf16, #tpu.memory_space<vmem>>, vector<8x1152xbf16>
    %c0_1 = arith.constant 0 : index
    %c0_2 = arith.constant 0 : index
    %1 = vector.load %arg2[%c0_1, %c0_2] : memref<1152x128xbf16, #tpu.memory_space<vmem>>, vector<1152x128xbf16>
    %cst = arith.constant dense<0.000000e+00> : vector<8x128xf32>
    %2 = tpu.matmul %0, %1, %cst {dimension_numbers = #tpu.dot_dimension_numbers<[1], [0], [0], [1], [0, 0, 1, 1], [], []>} : vector<8x1152xbf16>, vector<1152x128xbf16>, vector<8x128xf32> -> vector<8x128xf32>
    %c0_3 = arith.constant 0 : index
    %c0_4 = arith.constant 0 : index
    %3 = vector.load %arg3[%c0_3, %c0_4] : memref<1x128xf32, #tpu.memory_space<vmem>>, vector<1x128xf32>
    %4 = vector.broadcast %3 : vector<1x128xf32> to vector<8x128xf32>
    %5 = arith.addf %2, %4 : vector<8x128xf32>
    %c0_5 = arith.constant 0 : index
    %c0_6 = arith.constant 0 : index
    %6 = vector.load %arg4[%c0_5, %c0_6] : memref<8x128xf32, #tpu.memory_space<vmem>>, vector<8x128xf32>
    tpu.vector_store %arg4[%c0_5, %c0_6], %5 {strides = array<i32>} : memref<8x128xf32, #tpu.memory_space<vmem>>, vector<8x128xf32>,
    return
  }
  func.func @transform_0(%arg0: i32) -> (i32, i32) {
    %c0_i32 = arith.constant 0 : i32
    %c0_i32_0 = arith.constant 0 : i32
    return %arg0, %c0_i32 : i32, i32
  }
  func.func @transform_1(%arg0: i32) -> (i32, i32) {
    %c0_i32 = arith.constant 0 : i32
    %c0_i32_0 = arith.constant 0 : i32
    %c0_i32_1 = arith.constant 0 : i32
    return %c0_i32, %c0_i32_0 : i32, i32
  }
  func.func @transform_2(%arg0: i32) -> (i32, i32) {
    %c0_i32 = arith.constant 0 : i32
    %c0_i32_0 = arith.constant 0 : i32
    %c0_i32_1 = arith.constant 0 : i32
    return %c0_i32, %c0_i32_0 : i32, i32
  }
  func.func @transform_3(%arg0: i32) -> (i32, i32) {
    %c0_i32 = arith.constant 0 : i32
    %c0_i32_0 = arith.constant 0 : i32
    return %arg0, %c0_i32 : i32, i32
  }
}

module attributes {stable_mosaic.version = 11 : i64} {
  func.func @_matmul_bias_act_kernel(%arg0: i32, %arg1: memref<24x3200xbf16, #tpu.memory_space<vmem>>, %arg2: memref<3200x128xbf16, #tpu.memory_space<vmem>>, %arg3: memref<1x128xf32, #tpu.memory_space<vmem>>, %arg4: memref<24x128xbf16, #tpu.memory_space<vmem>>) attributes {dimension_semantics = [#tpu.dimension_semantics<parallel>], iteration_bounds = array<i64: 1>, scalar_prefetch = 0 : i64, scratch_operands = 0 : i64, tpu.core_type = #tpu.core_type<tc>, window_params = [{transform_indices = @transform_0, window_bounds = array<i64: 24, 3200>}, {pipeline_mode = #tpu.pipeline_mode<synchronous>, transform_indices = @transform_1, window_bounds = array<i64: 3200, 128>}, {pipeline_mode = #tpu.pipeline_mode<synchronous>, transform_indices = @transform_2, window_bounds = array<i64: 1, 128>}, {transform_indices = @transform_3, window_bounds = array<i64: 24, 128>}]} {
    %c0 = arith.constant 0 : index
    %c0_0 = arith.constant 0 : index
    %0 = vector.load %arg1[%c0, %c0_0] : memref<24x3200xbf16, #tpu.memory_space<vmem>>, vector<24x3200xbf16>
    %c0_1 = arith.constant 0 : index
    %c0_2 = arith.constant 0 : index
    %1 = vector.load %arg2[%c0_1, %c0_2] : memref<3200x128xbf16, #tpu.memory_space<vmem>>, vector<3200x128xbf16>
    %cst = arith.constant dense<0.000000e+00> : vector<24x128xf32>
    %2 = tpu.matmul %0, %1, %cst {dimension_numbers = #tpu.dot_dimension_numbers<[1], [0], [0], [1], [0, 0, 1, 1], [], []>} : vector<24x3200xbf16>, vector<3200x128xbf16>, vector<24x128xf32> -> vector<24x128xf32>
    %c0_3 = arith.constant 0 : index
    %c0_4 = arith.constant 0 : index
    %3 = vector.load %arg3[%c0_3, %c0_4] : memref<1x128xf32, #tpu.memory_space<vmem>>, vector<1x128xf32>
    %4 = vector.broadcast %3 : vector<1x128xf32> to vector<24x128xf32>
    %5 = arith.addf %2, %4 : vector<24x128xf32>
    %cst_5 = arith.constant 0.000000e+00 : f32
    %6 = vector.broadcast %cst_5 : f32 to vector<24x128xf32>
    %7 = arith.maximumf %5, %6 : vector<24x128xf32>
    %8 = arith.truncf %7 : vector<24x128xf32> to vector<24x128xbf16>
    %c0_6 = arith.constant 0 : index
    %c0_7 = arith.constant 0 : index
    %9 = vector.load %arg4[%c0_6, %c0_7] : memref<24x128xbf16, #tpu.memory_space<vmem>>, vector<24x128xbf16>
    tpu.vector_store %arg4[%c0_6, %c0_7], %8 {strides = array<i32>} : memref<24x128xbf16, #tpu.memory_space<vmem>>, vector<24x128xbf16>,
    return
  }
  func.func @transform_0(%arg0: i32) -> (i32, i32) {
    %c0_i32 = arith.constant 0 : i32
    %c0_i32_0 = arith.constant 0 : i32
    return %arg0, %c0_i32 : i32, i32
  }
  func.func @transform_1(%arg0: i32) -> (i32, i32) {
    %c0_i32 = arith.constant 0 : i32
    %c0_i32_0 = arith.constant 0 : i32
    %c0_i32_1 = arith.constant 0 : i32
    return %c0_i32, %c0_i32_0 : i32, i32
  }
  func.func @transform_2(%arg0: i32) -> (i32, i32) {
    %c0_i32 = arith.constant 0 : i32
    %c0_i32_0 = arith.constant 0 : i32
    %c0_i32_1 = arith.constant 0 : i32
    return %c0_i32, %c0_i32_0 : i32, i32
  }
  func.func @transform_3(%arg0: i32) -> (i32, i32) {
    %c0_i32 = arith.constant 0 : i32
    %c0_i32_0 = arith.constant 0 : i32
    return %arg0, %c0_i32 : i32, i32
  }
}

</mosaic_0001>

<bundles_post_ra>
// kernel: cnn_forward.4
= control target key start
LH: loop header
LB: loop body
LE: loop exit
PB: predicated region body
PF: predicated region fallthrough
CT: control target
= control target key end

     0   :  { %s1115_s12 = smov 0   ;;  %s1240_s0 = inlined_call_operand.vmem [shape: bf16[1280,64], index: 0, kind: input, shape index: {}]   ;;  %s1241_s1 = inlined_call_operand.vmem [shape: bf16[64,128], index: 1, kind: input, shape index: {}]   ;;  %s1242_s2 = inlined_call_operand.vmem [shape: f32[1,128], index: 2, kind: input, shape index: {}]   ;;  %s1243_s3 = inlined_call_operand.vmem [shape: bf16[1280,128], index: 3, kind: output, shape index: {}]  }
   0x1 LB: > { %s784_s13 = sadd.s32 4294967295, %s1093_s12   ;;  %p788_p0 = scmp.ge.s32.totalorder %s1093_s12, 1  ;;  %s1093_s12 = sphi %s1115_s12, %s13_s12  }
   0x2   : > { %p138_p1 = scmp.lt.s32.totalorder %s1093_s12, 6 }
   0x4   : > { %p139_p2 = pnand %p788_p0, %p138_p1 }
   0x5   : > { %v1067_v0 = vld [vmem:[%s1241_s1] sm:$0xff] (!%p139_p2)   ;;  %s789_s16 = sshll.u32 (!%p139_p2), %s784_s13, 5  ;;  %v1068_v1 = vld [vmem:[%s1241_s1 + $0x8] sm:$0xff] (!%p139_p2)   ;;  %v1069_v2 = vld [vmem:[%s1241_s1 + $0x10] sm:$0xff] (!%p139_p2)   ;;  %vm326_vm0 = vcmask (!%p139_p2), 523264  }
   0x6   : > { %142 = sbr.rel (%p139_p2) target bundleno = 268 (0x10c), region = 32  ;;  %p163_p3 = scmp.lt.s32.totalorder (!%p139_p2), %s789_s16, 159  ;;  %1011 = vmatprep.subr.bf16.mxu0 (!%p139_p2), %v1067_v0  ;;  %1051 = vmatprep.subr.bf16.mxu1 (!%p139_p2), %v1067_v0  ;;  %v1070_v3 = vld [vmem:[%s1241_s1 + $0x18] sm:$0xff] (!%p139_p2)   ;;  %v1180_v20 = vld [vmem:[%s1242_s2] ss:$0 sm:$0xff] (!%p139_p2) }
   0x7   : > { %1012 = vmatpush3.bf16.msra.mxu0 (!%p139_p2), %v1067_v0  ;;  %1055 = vmatpush3.bf16.msra.mxu1 (!%p139_p2), %v1067_v0 }
   0x8   : > { %1013 = vmatprep.subr.bf16.mxu0 (!%p139_p2), %v1068_v1  ;;  %1052 = vmatprep.subr.bf16.mxu1 (!%p139_p2), %v1068_v1 }
   0xb   : > { %1014 = vmatpush3.bf16.msra.mxu0 (!%p139_p2), %v1068_v1  ;;  %1056 = vmatpush3.bf16.msra.mxu1 (!%p139_p2), %v1068_v1 }
   0xc   : > { %1015 = vmatprep.subr.bf16.mxu0 (!%p139_p2), %v1069_v2  ;;  %1053 = vmatprep.subr.bf16.mxu1 (!%p139_p2), %v1069_v2 }
   0xd   : > { %s1245_s16 = smov (!%p163_p3, %s789_s16), 159 }
   0xe   : > { %s790_s21 = sshll.u32 %s1245_s16, 2 }
   0xf   : > { %s1143_s26 = scalar_lea.vmem %s1240_s0, %s790_s21  ;;  %1016 = vmatpush3.bf16.msra.mxu0 %v1069_v2  ;;  %1057 = vmatpush3.bf16.msra.mxu1 %v1069_v2  ;;  %s1195_s4 = scalar_lea.vmem %s1243_s3, %s790_s21 }
  0x10   : > { %v1071_v4 = vld [vmem:[%s1143_s26] sm:$0xff]   ;;  %1017 = vmatprep.subr.bf16.mxu0 %v1070_v3  ;;  %1054 = vmatprep.subr.bf16.mxu1 %v1070_v3  ;;  %v1073_v6 = vld [vmem:[%s1143_s26 + $0x8] sm:$0xff]   ;;  %v1075_v8 = vld [vmem:[%s1143_s26 + $0x10] sm:$0xff]  }
  0x11   : > { %v1072_v5 = vld [vmem:[%s1143_s26 + $0x40] sm:$0xff]   ;;  %1019 = vmatprep.mubr.msk.bf16.mxu0 %vm326_vm0, %v1071_v4  ;;  %v1074_v7 = vld [vmem:[%s1143_s26 + $0x48] sm:$0xff]   ;;  %v1076_v9 = vld [vmem:[%s1143_s26 + $0x50] sm:$0xff]  }
  0x12   : > { %1035 = vmatprep.mubr.msk.bf16.mxu1 %vm326_vm0, %v1072_v5  ;;  %v1077_v10 = vld [vmem:[%s1143_s26 + $0x18] sm:$0xff]   ;;  %v1079_v12 = vld [vmem:[%s1143_s26 + $0x20] sm:$0xff]   ;;  %v1081_v14 = vld [vmem:[%s1143_s26 + $0x28] sm:$0xff]  }
  0x13   : > { %1018 = vmatpush3.bf16.msra.mxu0 %v1070_v3  ;;  %1058 = vmatpush3.bf16.msra.mxu1 %v1070_v3  ;;  %v1078_v11 = vld [vmem:[%s1143_s26 + $0x58] sm:$0xff]   ;;  %v1080_v13 = vld [vmem:[%s1143_s26 + $0x60] sm:$0xff]   ;;  %v1082_v15 = vld [vmem:[%s1143_s26 + $0x68] sm:$0xff]  }
  0x14   : > { %v1083_v16 = vld [vmem:[%s1143_s26 + $0x30] sm:$0xff]   ;;  %v1085_v18 = vld [vmem:[%s1143_s26 + $0x38] sm:$0xff]  }
  0x15   : > { %v1084_v17 = vld [vmem:[%s1143_s26 + $0x70] sm:$0xff]   ;;  %v1086_v19 = vld [vmem:[%s1143_s26 + $0x78] sm:$0xff]  }
  0x16   : > { %1020 = vmatmul.mubr.msk.bf16.vlgmr.msra.gmra.mrb[0].mxu0 %vm326_vm0, %v1073_v6  ;;  %1036 = vmatmul.mubr.msk.bf16.vlgmr.msra.gmra.mrb[0].mxu1 %vm326_vm0, %v1074_v7 }
  0x17   : > { %1023 = vmatprep.mubr.msk.bf16.mxu0 %vm326_vm0, %v1075_v8  ;;  %1039 = vmatprep.mubr.msk.bf16.mxu1 %vm326_vm0, %v1076_v9 }
  0x1e   : > { %1024 = vmatmul.mubr.msk.bf16.gmra.mrb[4].mxu0 %vm326_vm0, %v1077_v10  ;;  %1040 = vmatmul.mubr.msk.bf16.gmra.mrb[4].mxu1 %vm326_vm0, %v1078_v11 }
  0x1f   : > { %1027 = vmatprep.mubr.msk.bf16.mxu0 %vm326_vm0, %v1079_v12  ;;  %1043 = vmatprep.mubr.msk.bf16.mxu1 %vm326_vm0, %v1080_v13 }
  0x26   : > { %1028 = vmatmul.mubr.msk.bf16.gmra.mrb[8].mxu0 %vm326_vm0, %v1081_v14  ;;  %1044 = vmatmul.mubr.msk.bf16.gmra.mrb[8].mxu1 %vm326_vm0, %v1082_v15 }
  0x27   : > { %1031 = vmatprep.mubr.msk.bf16.mxu0 %vm326_vm0, %v1083_v16  ;;  %1047 = vmatprep.mubr.msk.bf16.mxu1 %vm326_vm0, %v1084_v17 }
  0x2e   : > { %1032 = vmatmul.mubr.msk.bf16.gmra.mrb[12].mxu0 %vm326_vm0, %v1085_v18  ;;  %1048 = vmatmul.mubr.msk.bf16.gmra.mrb[12].mxu1 %vm326_vm0, %v1086_v19 }
  0xe9   : > { %v1021_v21 = vpop.f32.mrb[0].mxu0  ;;  %v1037_v22 = vpop.f32.mrb[0].mxu1 }
  0xea   : > { %v418_v23 = vadd.f32 %v1021_v21, %v1180_v20  ;;  %v482_v24 = vadd.f32 %v1037_v22, %v1180_v20  ;;  %v409_v25 = vpop.f32.mrb[1].mxu0  ;;  %v473_v26 = vpop.f32.mrb[1].mxu1 }
  0xeb   : > { %v410_v27 = vadd.f32 %v1180_v20, %v409_v25  ;;  %v474_v28 = vadd.f32 %v1180_v20, %v473_v26  ;;  %v1022_v29 = vpop.f32.mrb[2].mxu0  ;;  %v1038_v30 = vpop.f32.mrb[2].mxu1 }
  0xec   : > { %v421_v31 = vadd.f32 %v1022_v29, %v1180_v20  ;;  %v485_v32 = vadd.f32 %v1038_v30, %v1180_v20  ;;  %v412_v33 = vpop.f32.mrb[3].mxu0  ;;  %v476_v34 = vpop.f32.mrb[3].mxu1  ;;  %v538_v37 = vmax.f32 %v418_v23, 0.0  ;;  %v554_v38 = vmax.f32 %v482_v24, 0.0 }
  0xed   : > { %v413_v35 = vadd.f32 %v1180_v20, %v412_v33  ;;  %v477_v36 = vadd.f32 %v1180_v20, %v476_v34  ;;  %v536_v41 = vmax.f32 %v410_v27, 0.0  ;;  %v552_v42 = vmax.f32 %v474_v28, 0.0 }
  0xee   : > { %v539_v39 = vmax.f32 %v421_v31, 0.0  ;;  %v555_v40 = vmax.f32 %v485_v32, 0.0 }
  0xef   : > { %v537_v43 = vmax.f32 %v413_v35, 0.0  ;;  %v553_v44 = vmax.f32 %v477_v36, 0.0 }
  0xf0   : > { %v904_v45 = vpack.c.bf16 %v539_v39, %v538_v37  ;;  %v944_v46 = vpack.c.bf16 %v555_v40, %v554_v38 }
  0xf1   : > { %v899_v47 = vpack.c.bf16 %v537_v43, %v536_v41  ;;  %v939_v48 = vpack.c.bf16 %v553_v44, %v552_v42  ;;  %v1025_v49 = vpop.f32.mrb[4].mxu0  ;;  %v1041_v50 = vpop.f32.mrb[4].mxu1 }
  0xf2   : > { %976 = vst [vmem:[%s1195_s4 + $0x8] sm:$0xff] %v904_v45   ;;  %984 = vst [vmem:[%s1195_s4 + $0x48] sm:$0xff] %v944_v46   ;;  %v434_v51 = vadd.f32 %v1025_v49, %v1180_v20  ;;  %v498_v52 = vadd.f32 %v1041_v50, %v1180_v20  ;;  %v425_v53 = vpop.f32.mrb[5].mxu0  ;;  %v489_v54 = vpop.f32.mrb[5].mxu1 }
  0xf3   : > { %900 = vst [vmem:[%s1195_s4] sm:$0xff] %v899_v47   ;;  %983 = vst [vmem:[%s1195_s4 + $0x40] sm:$0xff] %v939_v48   ;;  %v426_v55 = vadd.f32 %v1180_v20, %v425_v53  ;;  %v490_v56 = vadd.f32 %v1180_v20, %v489_v54  ;;  %v1026_v57 = vpop.f32.mrb[6].mxu0  ;;  %v1042_v58 = vpop.f32.mrb[6].mxu1 }
  0xf4   : > { %v437_v59 = vadd.f32 %v1026_v57, %v1180_v20  ;;  %v501_v60 = vadd.f32 %v1042_v58, %v1180_v20  ;;  %v428_v61 = vpop.f32.mrb[7].mxu0  ;;  %v492_v62 = vpop.f32.mrb[7].mxu1  ;;  %v542_v1 = vmax.f32 %v434_v51, 0.0  ;;  %v558_v2 = vmax.f32 %v498_v52, 0.0 }
  0xf5   : > { %v429_v63 = vadd.f32 %v1180_v20, %v428_v61  ;;  %v493_v0 = vadd.f32 %v1180_v20, %v492_v62  ;;  %v540_v5 = vmax.f32 %v426_v55, 0.0  ;;  %v556_v6 = vmax.f32 %v490_v56, 0.0 }
  0xf6   : > { %v543_v3 = vmax.f32 %v437_v59, 0.0  ;;  %v559_v4 = vmax.f32 %v501_v60, 0.0 }
  0xf7   : > { %v541_v7 = vmax.f32 %v429_v63, 0.0  ;;  %v557_v8 = vmax.f32 %v493_v0, 0.0 }
  0xf8   : > { %v914_v9 = vpack.c.bf16 %v543_v3, %v542_v1  ;;  %v954_v10 = vpack.c.bf16 %v559_v4, %v558_v2 }
  0xf9   : > { %v909_v11 = vpack.c.bf16 %v541_v7, %v540_v5  ;;  %v949_v12 = vpack.c.bf16 %v557_v8, %v556_v6  ;;  %v1029_v13 = vpop.f32.mrb[8].mxu0  ;;  %v1045_v14 = vpop.f32.mrb[8].mxu1 }
  0xfa   : > { %978 = vst [vmem:[%s1195_s4 + $0x18] sm:$0xff] %v914_v9   ;;  %986 = vst [vmem:[%s1195_s4 + $0x58] sm:$0xff] %v954_v10   ;;  %v450_v15 = vadd.f32 %v1029_v13, %v1180_v20  ;;  %v514_v16 = vadd.f32 %v1045_v14, %v1180_v20  ;;  %v441_v17 = vpop.f32.mrb[9].mxu0  ;;  %v505_v18 = vpop.f32.mrb[9].mxu1 }
  0xfb   : > { %977 = vst [vmem:[%s1195_s4 + $0x10] sm:$0xff] %v909_v11   ;;  %985 = vst [vmem:[%s1195_s4 + $0x50] sm:$0xff] %v949_v12   ;;  %v442_v19 = vadd.f32 %v1180_v20, %v441_v17  ;;  %v506_v21 = vadd.f32 %v1180_v20, %v505_v18  ;;  %v1030_v22 = vpop.f32.mrb[10].mxu0  ;;  %v1046_v23 = vpop.f32.mrb[10].mxu1 }
  0xfc   : > { %v453_v24 = vadd.f32 %v1030_v22, %v1180_v20  ;;  %v517_v25 = vadd.f32 %v1046_v23, %v1180_v20  ;;  %v444_v26 = vpop.f32.mrb[11].mxu0  ;;  %v508_v27 = vpop.f32.mrb[11].mxu1  ;;  %v546_v30 = vmax.f32 %v450_v15, 0.0  ;;  %v562_v31 = vmax.f32 %v514_v16, 0.0 }
  0xfd   : > { %v445_v28 = vadd.f32 %v1180_v20, %v444_v26  ;;  %v509_v29 = vadd.f32 %v1180_v20, %v508_v27  ;;  %v544_v34 = vmax.f32 %v442_v19, 0.0  ;;  %v560_v35 = vmax.f32 %v506_v21, 0.0 }
  0xfe   : > { %v547_v32 = vmax.f32 %v453_v24, 0.0  ;;  %v563_v33 = vmax.f32 %v517_v25, 0.0 }
  0xff   : > { %v545_v36 = vmax.f32 %v445_v28, 0.0  ;;  %v561_v37 = vmax.f32 %v509_v29, 0.0 }
 0x100   : > { %v924_v38 = vpack.c.bf16 %v547_v32, %v546_v30  ;;  %v964_v39 = vpack.c.bf16 %v563_v33, %v562_v31 }
 0x101   : > { %v919_v40 = vpack.c.bf16 %v545_v36, %v544_v34  ;;  %v959_v41 = vpack.c.bf16 %v561_v37, %v560_v35  ;;  %v1033_v42 = vpop.f32.mrb[12].mxu0  ;;  %v1049_v43 = vpop.f32.mrb[12].mxu1 }
 0x102   : > { %980 = vst [vmem:[%s1195_s4 + $0x28] sm:$0xff] %v924_v38   ;;  %988 = vst [vmem:[%s1195_s4 + $0x68] sm:$0xff] %v964_v39   ;;  %v466_v44 = vadd.f32 %v1033_v42, %v1180_v20  ;;  %v530_v45 = vadd.f32 %v1049_v43, %v1180_v20  ;;  %v457_v46 = vpop.f32.mrb[13].mxu0  ;;  %v521_v47 = vpop.f32.mrb[13].mxu1 }
 0x103   : > { %979 = vst [vmem:[%s1195_s4 + $0x20] sm:$0xff] %v919_v40   ;;  %987 = vst [vmem:[%s1195_s4 + $0x60] sm:$0xff] %v959_v41   ;;  %v458_v48 = vadd.f32 %v1180_v20, %v457_v46  ;;  %v522_v49 = vadd.f32 %v1180_v20, %v521_v47  ;;  %v1034_v50 = vpop.f32.mrb[14].mxu0  ;;  %v1050_v51 = vpop.f32.mrb[14].mxu1 }
 0x104   : > { %v469_v52 = vadd.f32 %v1034_v50, %v1180_v20  ;;  %v533_v53 = vadd.f32 %v1050_v51, %v1180_v20  ;;  %v460_v54 = vpop.f32.mrb[15].mxu0  ;;  %v524_v55 = vpop.f32.mrb[15].mxu1  ;;  %v550_v58 = vmax.f32 %v466_v44, 0.0  ;;  %v566_v59 = vmax.f32 %v530_v45, 0.0 }
 0x105   : > { %v461_v56 = vadd.f32 %v1180_v20, %v460_v54  ;;  %v525_v57 = vadd.f32 %v1180_v20, %v524_v55  ;;  %v548_v62 = vmax.f32 %v458_v48, 0.0  ;;  %v564_v63 = vmax.f32 %v522_v49, 0.0 }
 0x106   : > { %v551_v60 = vmax.f32 %v469_v52, 0.0  ;;  %v567_v61 = vmax.f32 %v533_v53, 0.0 }
 0x107   : > { %v549_v0 = vmax.f32 %v461_v56, 0.0  ;;  %v565_v1 = vmax.f32 %v525_v57, 0.0 }
 0x108   : > { %v934_v2 = vpack.c.bf16 %v551_v60, %v550_v58  ;;  %v974_v3 = vpack.c.bf16 %v567_v61, %v566_v59 }
 0x109   : > { %v929_v4 = vpack.c.bf16 %v549_v0, %v548_v62  ;;  %v969_v5 = vpack.c.bf16 %v565_v1, %v564_v63 }
 0x10a   : > { %982 = vst [vmem:[%s1195_s4 + $0x38] sm:$0xff] %v934_v2   ;;  %990 = vst [vmem:[%s1195_s4 + $0x78] sm:$0xff] %v974_v3  }
 0x10b   : > { %981 = vst [vmem:[%s1195_s4 + $0x30] sm:$0xff] %v929_v4   ;;  %989 = vst [vmem:[%s1195_s4 + $0x70] sm:$0xff] %v969_v5  }
 0x10c PF: > { %s13_s12 = sadd.s32 1, %s1093_s12  }
 0x10d   : > { %p10_p4 = scmp.ge.s32.totalorder %s13_s12, 7  }
 0x10f   :  { %12 = sbr.rel (!%p10_p4) target bundleno = 1 (0x1), region = 62 }

// kernel: cnn_forward.5
= control target key start
LH: loop header
LB: loop body
LE: loop exit
PB: predicated region body
PF: predicated region fallthrough
CT: control target
= control target key end

     0   :  { %s7265_s1 = inlined_call_operand.vmem [shape: bf16[2304,128], index: 1, kind: input, shape index: {}]   ;;  %s7266_s0 = inlined_call_operand.vmem [shape: bf16[200,2304], index: 0, kind: input, shape index: {}]   ;;  %s7267_s2 = inlined_call_operand.vmem [shape: f32[1,128], index: 2, kind: input, shape index: {}]   ;;  %s7268_s3 = inlined_call_operand.vmem [shape: bf16[200,128], index: 3, kind: output, shape index: {}]  }
   0x1   :  { %v5283_v0 = vld [vmem:[%s7265_s1 + $0x40] sm:$0xff]   ;;  %v5285_v2 = vld [vmem:[%s7265_s1 + $0x48] sm:$0xff]   ;;  %v5287_v4 = vld [vmem:[%s7265_s1 + $0x50] sm:$0xff]  }
   0x2   :  { %v5284_v1 = vld [vmem:[%s7265_s1] sm:$0xff]   ;;  %4421 = vmatprep.subr.bf16.mxu0 %v5283_v0  ;;  %5267 = vmatprep.subr.bf16.mxu1 %v5283_v0  ;;  %v5286_v3 = vld [vmem:[%s7265_s1 + $0x8] sm:$0xff]   ;;  %v5288_v5 = vld [vmem:[%s7265_s1 + $0x10] sm:$0xff]  }
   0x3   :  { %4422 = vmatpush3.bf16.msra.mxu0 %v5284_v1  ;;  %5275 = vmatpush3.bf16.msra.mxu1 %v5284_v1  ;;  %v5289_v6 = vld [vmem:[%s7265_s1 + $0x58] sm:$0xff]   ;;  %v5291_v8 = vld [vmem:[%s7265_s1 + $0x60] sm:$0xff]   ;;  %v5293_v10 = vld [vmem:[%s7265_s1 + $0x68] sm:$0xff]  }
   0x4   :  { %4423 = vmatprep.subr.bf16.mxu0 %v5285_v2  ;;  %5268 = vmatprep.subr.bf16.mxu1 %v5285_v2  ;;  %v5290_v7 = vld [vmem:[%s7265_s1 + $0x18] sm:$0xff]   ;;  %v5292_v9 = vld [vmem:[%s7265_s1 + $0x20] sm:$0xff]   ;;  %v5294_v13 = vld [vmem:[%s7265_s1 + $0x28] sm:$0xff]  }
   0x5   :  { %v5301_v11 = vld [vmem:[%s7266_s0 + $0x4] ss:$72 sps:$4 sm:$0xff]   ;;  %v5304_v12 = vld [vmem:[%s7266_s0 + $0x3f4] ss:$72 sps:$4 sm:$0xff]   ;;  %v5299_v19 = vld [vmem:[%s7266_s0] ss:$72 sps:$4 sm:$0xff]  }
   0x6   :  { %v5295_v14 = vld [vmem:[%s7265_s1 + $0x70] sm:$0xff]   ;;  %2574 = vmatprep.mubr.bf16.mxu0 %v5301_v11  ;;  %2630 = vmatprep.mubr.bf16.mxu1 %v5304_v12  ;;  %v5297_v16 = vld [vmem:[%s7265_s1 + $0x78] sm:$0xff]   ;;  %v5305_v18 = vld [vmem:[%s7265_s1 + $0x140] sm:$0xff]  }
   0x7   :  { %4424 = vmatpush3.bf16.msra.mxu0 %v5286_v3  ;;  %5276 = vmatpush3.bf16.msra.mxu1 %v5286_v3  ;;  %v5296_v15 = vld [vmem:[%s7265_s1 + $0x30] sm:$0xff]   ;;  %v5298_v17 = vld [vmem:[%s7265_s1 + $0x38] sm:$0xff]   ;;  %v5307_v21 = vld [vmem:[%s7265_s1 + $0xc0] sm:$0xff]  }
   0x8   :  { %4425 = vmatprep.subr.bf16.mxu0 %v5287_v4  ;;  %5269 = vmatprep.subr.bf16.mxu1 %v5287_v4  ;;  %v5302_v20 = vld [vmem:[%s7266_s0 + $0x3f0] ss:$72 sps:$4 sm:$0xff]   ;;  %v5306_v22 = vld [vmem:[%s7265_s1 + $0x100] sm:$0xff]   ;;  %v5308_v23 = vld [vmem:[%s7266_s0 + $0x94] ss:$72 sps:$4 sm:$0xff]  }
   0x9   :  { %v5310_v24 = vld [vmem:[%s7266_s0 + $0x484] ss:$72 sps:$4 sm:$0xff]   ;;  %v5314_v30 = vld [vmem:[%s7266_s0 + $0x90] ss:$72 sps:$4 sm:$0xff]   ;;  %v5315_v31 = vld [vmem:[%s7266_s0 + $0x480] ss:$72 sps:$4 sm:$0xff]  }
   0xa   :  { %v5312_v25 = vld [vmem:[%s7265_s1 + $0x80] sm:$0xff]   ;;  %v5313_v26 = vld [vmem:[%s7265_s1 + $0x148] sm:$0xff]   ;;  %v5319_v32 = vld [vmem:[%s7265_s1 + $0x150] sm:$0xff]  }
   0xb   :  { %4426 = vmatpush3.bf16.msra.mxu0 %v5288_v5  ;;  %5277 = vmatpush3.bf16.msra.mxu1 %v5288_v5  ;;  %v5317_v27 = vld [vmem:[%s7265_s1 + $0xc8] sm:$0xff]   ;;  %v5327_v34 = vld [vmem:[%s7265_s1 + $0xd0] sm:$0xff]   ;;  %v5329_v38 = vld [vmem:[%s7265_s1 + $0x158] sm:$0xff]  }
   0xc   :  { %4427 = vmatprep.subr.bf16.mxu0 %v5289_v6  ;;  %5270 = vmatprep.subr.bf16.mxu1 %v5289_v6  ;;  %v5316_v28 = vld [vmem:[%s7265_s1 + $0x108] sm:$0xff]   ;;  %v5322_v35 = vld [vmem:[%s7266_s0 + $0x514] ss:$72 sps:$4 sm:$0xff]   ;;  %v5326_v43 = vld [vmem:[%s7266_s0 + $0x510] ss:$72 sps:$4 sm:$0xff]  }
   0xd   :  { %v5318_v29 = vld [vmem:[%s7265_s1 + $0x88] sm:$0xff]   ;;  %v5324_v36 = vld [vmem:[%s7265_s1 + $0x110] sm:$0xff]   ;;  %v5337_v39 = vld [vmem:[%s7265_s1 + $0xd8] sm:$0xff]  }
   0xe   :  { %v5320_v33 = vld [vmem:[%s7266_s0 + $0x124] ss:$72 sps:$4 sm:$0xff]   ;;  %v5328_v37 = vld [vmem:[%s7265_s1 + $0x90] sm:$0xff]   ;;  %v5330_v40 = vld [vmem:[%s7265_s1 + $0x118] sm:$0xff]  }
   0xf   :  { %4428 = vmatpush3.bf16.msra.mxu0 %v5290_v7  ;;  %5278 = vmatpush3.bf16.msra.mxu1 %v5290_v7  ;;  %v5338_v41 = vld [vmem:[%s7265_s1 + $0x98] sm:$0xff]   ;;  %v5325_v42 = vld [vmem:[%s7266_s0 + $0x120] ss:$72 sps:$4 sm:$0xff]   ;;  %v5333_v47 = vld [vmem:[%s7266_s0 + $0x5a4] ss:$72 sps:$4 sm:$0xff]  }
  0x10   :  { %4429 = vmatprep.subr.bf16.mxu0 %v5291_v8  ;;  %5271 = vmatprep.subr.bf16.mxu1 %v5291_v8  ;;  %v5339_v44 = vld [vmem:[%s7265_s1 + $0x160] sm:$0xff]   ;;  %v5331_v46 = vld [vmem:[%s7266_s0 + $0x1b4] ss:$72 sps:$4 sm:$0xff]   ;;  %v5349_v50 = vld [vmem:[%s7265_s1 + $0x168] sm:$0xff]  }
  0x11   :  { %v5341_v45 = vld [vmem:[%s7265_s1 + $0xe0] sm:$0xff]   ;;  %v5350_v51 = vld [vmem:[%s7265_s1 + $0xe8] sm:$0xff]   ;;  %v5335_v52 = vld [vmem:[%s7266_s0 + $0x1b0] ss:$72 sps:$4 sm:$0xff]  }
  0x12   :  { %v5340_v48 = vld [vmem:[%s7265_s1 + $0x120] sm:$0xff]   ;;  %v5351_v53 = vld [vmem:[%s7265_s1 + $0x128] sm:$0xff]   ;;  %v5344_v57 = vld [vmem:[%s7266_s0 + $0x634] ss:$72 sps:$4 sm:$0xff]  }
  0x13   :  { %4430 = vmatpush3.bf16.msra.mxu0 %v5292_v9  ;;  %5279 = vmatpush3.bf16.msra.mxu1 %v5292_v9  ;;  %v5346_v49 = vld [vmem:[%s7265_s1 + $0xa0] sm:$0xff]   ;;  %v5352_v54 = vld [vmem:[%s7265_s1 + $0xa8] sm:$0xff]   ;;  %v5358_v58 = vld [vmem:[%s7265_s1 + $0xf0] sm:$0xff]  }
  0x14   :  { %4431 = vmatprep.subr.bf16.mxu0 %v5293_v10  ;;  %5272 = vmatprep.subr.bf16.mxu1 %v5293_v10  ;;  %v5336_v55 = vld [vmem:[%s7266_s0 + $0x5a0] ss:$72 sps:$4 sm:$0xff]   ;;  %v5342_v56 = vld [vmem:[%s7266_s0 + $0x244] ss:$72 sps:$4 sm:$0xff]   ;;  %v5359_v59 = vld [vmem:[%s7265_s1 + $0xb0] sm:$0xff]  }
  0x15   :  { %v5360_v60 = vld [vmem:[%s7265_s1 + $0x170] sm:$0xff]   ;;  %v231_v61 = vld [vmem:[%s7266_s0 + $0x6c0] sm:$0xff]  ;;  %v5362_v63 = vld [vmem:[%s7265_s1 + $0xf8] sm:$0xff]  }
  0x16   :  { %v5361_v62 = vld [vmem:[%s7265_s1 + $0x130] sm:$0xff]   ;;  %v5363_v0 = vld [vmem:[%s7265_s1 + $0xb8] sm:$0xff]   ;;  %v5347_v1 = vld [vmem:[%s7266_s0 + $0x240] ss:$72 sps:$4 sm:$0xff]   ;;  %v4139_v4 = vcombine.high %v231_v61, %v231_v61  ;;  %v4138_v10 = vcombine.low %v231_v61, %v231_v61 }
  0x17   :  { %4432 = vmatpush3.bf16.msra.mxu0 %v5294_v13  ;;  %5280 = vmatpush3.bf16.msra.mxu1 %v5294_v13  ;;  %v5348_v2 = vld [vmem:[%s7266_s0 + $0x630] ss:$72 sps:$4 sm:$0xff]   ;;  %v5353_v3 = vld [vmem:[%s7266_s0 + $0x2d4] ss:$72 sps:$4 sm:$0xff]   ;;  %v5372_v7 = vld [vmem:[%s7265_s1 + $0x1c0] sm:$0xff]  }
  0x18   :  { %4433 = vmatprep.subr.bf16.mxu0 %v5295_v14  ;;  %5273 = vmatprep.subr.bf16.mxu1 %v5295_v14  ;;  %v5370_v5 = vld [vmem:[%s7265_s1 + $0x178] sm:$0xff]   ;;  %v5364_v9 = vld [vmem:[%s7266_s0 + $0x364] ss:$72 sps:$4 sm:$0xff]   ;;  %v5366_v13 = vld [vmem:[%s7266_s0 + $0x8] ss:$72 sps:$4 sm:$0xff]  }
  0x19   :  { %v5371_v6 = vld [vmem:[%s7265_s1 + $0x138] sm:$0xff]   ;;  %v5368_v11 = vld [vmem:[%s7266_s0 + $0xc] ss:$72 sps:$4 sm:$0xff]   ;;  %v5380_v12 = vld [vmem:[%s7265_s1 + $0x240] sm:$0xff]  }
  0x1a   :  { %v5356_v8 = vld [vmem:[%s7266_s0 + $0x2d0] ss:$72 sps:$4 sm:$0xff]   ;;  %v5369_v14 = vld [vmem:[%s7266_s0 + $0x360] ss:$72 sps:$4 sm:$0xff]  }
  0x1b   :  { %4434 = vmatpush3.bf16.msra.mxu0 %v5296_v15  ;;  %5281 = vmatpush3.bf16.msra.mxu1 %v5296_v15  ;;  %v5373_v15 = vld [vmem:[%s7266_s0 + $0x9c] ss:$72 sps:$4 sm:$0xff]   ;;  %v5458_v61 = vld [vmem:[%s7265_s1 + $0x270] sm:$0xff]  }
  0x1c   :  { %4435 = vmatprep.subr.bf16.mxu0 %v5297_v16  ;;  %5274 = vmatprep.subr.bf16.mxu1 %v5297_v16  ;;  %v5377_v16 = vld [vmem:[%s7266_s0 + $0x14] ss:$72 sps:$4 sm:$0xff]  }
  0x1f   :  { %4436 = vmatpush3.bf16.msra.mxu0 %v5298_v17  ;;  %5282 = vmatpush3.bf16.msra.mxu1 %v5298_v17  ;;  %v5378_v17 = vld [vmem:[%s7265_s1 + $0x180] sm:$0xff]  }
  0x20   :  { %4609 = vmatprep.subr.bf16.mxu0 %v5305_v18  ;;  %4515 = vmatprep.subr.bf16.mxu1 %v5307_v21  ;;  %v5388_v18 = vld [vmem:[%s7265_s1 + $0x1c8] sm:$0xff]  }
  0x21   :  { %v5389_v21 = vld [vmem:[%s7265_s1 + $0x188] sm:$0xff]  }
  0x22   :  { %2575 = vmatmul.mubr.bf16.vlgmr.msra.gmra.mrb[0].mxu0 %v5299_v19  ;;  %2631 = vmatmul.mubr.bf16.vlgmr.msra.gmra.mrb[0].mxu1 %v5302_v20  ;;  %v5375_v19 = vld [vmem:[%s7266_s0 + $0x10] ss:$72 sps:$4 sm:$0xff]  }
  0x23   :  { %4610 = vmatpush3.bf16.msra.mxu0 %v5306_v22  ;;  %2582 = vmatprep.mubr.bf16.mxu0 %v5308_v23  ;;  %v5379_v20 = vld [vmem:[%s7266_s0 + $0x98] ss:$72 sps:$4 sm:$0xff]   ;;  %v5404_v23 = vld [vmem:[%s7265_s1 + $0x1d0] sm:$0xff]  }
  0x24   :  { %2638 = vmatprep.mubr.bf16.mxu1 %v5310_v24  ;;  %4516 = vmatpush3.bf16.msra.mxu1 %v5312_v25  ;;  %v5381_v22 = vld [vmem:[%s7265_s1 + $0x200] sm:$0xff]   ;;  %v5382_v24 = vld [vmem:[%s7266_s0 + $0x12c] ss:$72 sps:$4 sm:$0xff]  }
  0x25   :  { %4611 = vmatprep.subr.bf16.mxu0 %v5313_v26  ;;  %4517 = vmatprep.subr.bf16.mxu1 %v5317_v27  ;;  %v5384_v25 = vld [vmem:[%s7266_s0 + $0xa4] ss:$72 sps:$4 sm:$0xff]   ;;  %v5405_v27 = vld [vmem:[%s7265_s1 + $0x190] sm:$0xff]  }
  0x26   :  { %v5390_v26 = vld [vmem:[%s7265_s1 + $0x248] sm:$0xff]  }
  0x27   :  { %4612 = vmatpush3.bf16.msra.mxu0 %v5316_v28  ;;  %v5391_v28 = vld [vmem:[%s7265_s1 + $0x208] sm:$0xff]  }
  0x28   :  { %4518 = vmatpush3.bf16.msra.mxu1 %v5318_v29  ;;  %4613 = vmatprep.subr.bf16.mxu0 %v5319_v32  ;;  %v5414_v29 = vld [vmem:[%s7265_s1 + $0x1d8] sm:$0xff]   ;;  %v5406_v32 = vld [vmem:[%s7265_s1 + $0x250] sm:$0xff]  }
  0x29   :  { %4519 = vmatprep.subr.bf16.mxu1 %v5327_v34  ;;  %v5392_v34 = vld [vmem:[%s7266_s0 + $0x1bc] ss:$72 sps:$4 sm:$0xff]  }
  0x2a   :  { %2583 = vmatmul.mubr.bf16.gmra.mrb[4].mxu0 %v5314_v30  ;;  %2639 = vmatmul.mubr.bf16.gmra.mrb[4].mxu1 %v5315_v31  ;;  %v5386_v30 = vld [vmem:[%s7266_s0 + $0x128] ss:$72 sps:$4 sm:$0xff]  }
  0x2b   :  { %2590 = vmatprep.mubr.bf16.mxu0 %v5320_v33  ;;  %2646 = vmatprep.mubr.bf16.mxu1 %v5322_v35  ;;  %v5387_v31 = vld [vmem:[%s7266_s0 + $0xa0] ss:$72 sps:$4 sm:$0xff]   ;;  %v5415_v33 = vld [vmem:[%s7265_s1 + $0x198] sm:$0xff]  }
  0x2c   :  { %4614 = vmatpush3.bf16.msra.mxu0 %v5324_v36  ;;  %4520 = vmatpush3.bf16.msra.mxu1 %v5328_v37  ;;  %v5394_v35 = vld [vmem:[%s7266_s0 + $0x134] ss:$72 sps:$4 sm:$0xff]  }
  0x2d   :  { %4615 = vmatprep.subr.bf16.mxu0 %v5329_v38  ;;  %4521 = vmatprep.subr.bf16.mxu1 %v5337_v39  ;;  %v5407_v36 = vld [vmem:[%s7265_s1 + $0x210] sm:$0xff]   ;;  %v5420_v37 = vld [vmem:[%s7265_s1 + $0x258] sm:$0xff]  }
  0x2e   :  { %v5396_v38 = vld [vmem:[%s7266_s0 + $0x1b8] ss:$72 sps:$4 sm:$0xff]  }
  0x2f   :  { %v5397_v39 = vld [vmem:[%s7266_s0 + $0x130] ss:$72 sps:$4 sm:$0xff]  }
  0x30   :  { %4616 = vmatpush3.bf16.msra.mxu0 %v5330_v40  ;;  %4522 = vmatpush3.bf16.msra.mxu1 %v5338_v41  ;;  %v5423_v40 = vld [vmem:[%s7265_s1 + $0x218] sm:$0xff]   ;;  %v5398_v41 = vld [vmem:[%s7266_s0 + $0x24c] ss:$72 sps:$4 sm:$0xff]  }
  0x31   :  { %4617 = vmatprep.subr.bf16.mxu0 %v5339_v44  ;;  %4523 = vmatprep.subr.bf16.mxu1 %v5341_v45  ;;  %v5431_v44 = vld [vmem:[%s7265_s1 + $0x1a0] sm:$0xff]  }
  0x32   :  { %2591 = vmatmul.mubr.bf16.gmra.mrb[8].mxu0 %v5325_v42  ;;  %2647 = vmatmul.mubr.bf16.gmra.mrb[8].mxu1 %v5326_v43  ;;  %v5400_v42 = vld [vmem:[%s7266_s0 + $0x1c4] ss:$72 sps:$4 sm:$0xff]  }
  0x33   :  { %2598 = vmatprep.mubr.bf16.mxu0 %v5331_v46  ;;  %2654 = vmatprep.mubr.bf16.mxu1 %v5333_v47  ;;  %v5430_v43 = vld [vmem:[%s7265_s1 + $0x1e0] sm:$0xff]   ;;  %v5402_v47 = vld [vmem:[%s7266_s0 + $0x248] ss:$72 sps:$4 sm:$0xff]  }
  0x34   :  { %4618 = vmatpush3.bf16.msra.mxu0 %v5340_v48  ;;  %4524 = vmatpush3.bf16.msra.mxu1 %v5346_v49  ;;  %v5432_v45 = vld [vmem:[%s7265_s1 + $0x260] sm:$0xff]   ;;  %v5444_v49 = vld [vmem:[%s7265_s1 + $0x1e8] sm:$0xff]  }
  0x35   :  { %4619 = vmatprep.subr.bf16.mxu0 %v5349_v50  ;;  %4525 = vmatprep.subr.bf16.mxu1 %v5350_v51  ;;  %v5433_v46 = vld [vmem:[%s7265_s1 + $0x220] sm:$0xff]   ;;  %v5410_v51 = vld [vmem:[%s7266_s0 + $0x254] ss:$72 sps:$4 sm:$0xff]  }
  0x36   :  { %v5403_v48 = vld [vmem:[%s7266_s0 + $0x1c0] ss:$72 sps:$4 sm:$0xff]   ;;  %v5408_v50 = vld [vmem:[%s7266_s0 + $0x2dc] ss:$72 sps:$4 sm:$0xff]  }
  0x38   :  { %4620 = vmatpush3.bf16.msra.mxu0 %v5351_v53  ;;  %4526 = vmatpush3.bf16.msra.mxu1 %v5352_v54  ;;  %v5448_v53 = vld [vmem:[%s7265_s1 + $0x268] sm:$0xff]  }
  0x39   :  { %4527 = vmatprep.subr.bf16.mxu1 %v5358_v58  ;;  %4621 = vmatprep.subr.bf16.mxu0 %v5360_v60  ;;  %v5449_v54 = vld [vmem:[%s7265_s1 + $0x228] sm:$0xff]   ;;  %v5457_v60 = vld [vmem:[%s7265_s1 + $0x1b0] sm:$0xff]  }
  0x3a   :  { %2599 = vmatmul.mubr.bf16.gmra.mrb[12].mxu0 %v5335_v52  ;;  %2655 = vmatmul.mubr.bf16.gmra.mrb[12].mxu1 %v5336_v55  ;;  %v5447_v52 = vld [vmem:[%s7265_s1 + $0x1a8] sm:$0xff]   ;;  %v5412_v55 = vld [vmem:[%s7266_s0 + $0x2d8] ss:$72 sps:$4 sm:$0xff]  }
  0x3b   :  { %2606 = vmatprep.mubr.bf16.mxu0 %v5342_v56  ;;  %2662 = vmatprep.mubr.bf16.mxu1 %v5344_v57  ;;  %v5413_v56 = vld [vmem:[%s7266_s0 + $0x250] ss:$72 sps:$4 sm:$0xff]   ;;  %v5416_v57 = vld [vmem:[%s7266_s0 + $0x36c] ss:$72 sps:$4 sm:$0xff]  }
  0x3c   :  { %4528 = vmatpush3.bf16.msra.mxu1 %v5359_v59  ;;  %4622 = vmatpush3.bf16.msra.mxu0 %v5361_v62  ;;  %v5418_v58 = vld [vmem:[%s7266_s0 + $0x2e4] ss:$72 sps:$4 sm:$0xff]   ;;  %v5456_v59 = vld [vmem:[%s7265_s1 + $0x1f0] sm:$0xff]  }
  0x3d   :  { %4529 = vmatprep.subr.bf16.mxu1 %v5362_v63  ;;  %4623 = vmatprep.subr.bf16.mxu0 %v5370_v5  ;;  %v5463_v62 = vld [vmem:[%s7265_s1 + $0x230] sm:$0xff]   ;;  %v5473_v5 = vld [vmem:[%s7265_s1 + $0x278] sm:$0xff]  }
  0x3e   :  { %v5421_v63 = vld [vmem:[%s7266_s0 + $0x368] ss:$72 sps:$4 sm:$0xff]  }
  0x40   :  { %4530 = vmatpush3.bf16.msra.mxu1 %v5363_v0  ;;  %4624 = vmatpush3.bf16.msra.mxu0 %v5371_v6  ;;  %v5422_v0 = vld [vmem:[%s7266_s0 + $0x2e0] ss:$72 sps:$4 sm:$0xff]   ;;  %v5474_v6 = vld [vmem:[%s7265_s1 + $0x238] sm:$0xff]  }
  0x41   :  { %4703 = vmatprep.subr.bf16.mxu1 %v5372_v7  ;;  %4797 = vmatprep.subr.bf16.mxu0 %v5380_v12  ;;  %v5480_v7 = vld [vmem:[%s7265_s1 + $0x2c0] sm:$0xff]  }
  0x42   :  { %2607 = vmatmul.mubr.bf16.gmra.mrb[16].mxu0 %v5347_v1  ;;  %2663 = vmatmul.mubr.bf16.gmra.mrb[16].mxu1 %v5348_v2  ;;  %v5424_v1 = vld [vmem:[%s7266_s0 + $0x3fc] ss:$72 sps:$4 sm:$0xff]  }
  0x43   :  { %2614 = vmatprep.mubr.bf16.mxu0 %v5353_v3  ;;  %2670 = vmatprep.mubr.bf16.mxu1 %v4139_v4  ;;  %v5426_v2 = vld [vmem:[%s7266_s0 + $0x374] ss:$72 sps:$4 sm:$0xff]   ;;  %v5488_v12 = vld [vmem:[%s7265_s1 + $0x340] sm:$0xff]  }
  0x44   :  { %v5471_v3 = vld [vmem:[%s7265_s1 + $0x1f8] sm:$0xff]  }
  0x45   :  { %v5472_v4 = vld [vmem:[%s7265_s1 + $0x1b8] sm:$0xff]  }
  0x4a   :  { %2615 = vmatmul.mubr.bf16.gmra.mrb[20].mxu0 %v5356_v8  ;;  %2671 = vmatmul.mubr.bf16.gmra.mrb[20].mxu1 %v4138_v10  ;;  %v5428_v8 = vld [vmem:[%s7266_s0 + $0x3f8] ss:$72 sps:$4 sm:$0xff]   ;;  %v5434_v10 = vld [vmem:[%s7266_s0 + $0x48c] ss:$72 sps:$4 sm:$0xff]  }
  0x4b   :  { %2622 = vmatprep.mubr.bf16.mxu0 %v5364_v9  ;;  %2710 = vmatprep.mubr.bf16.mxu1 %v5368_v11  ;;  %v5429_v9 = vld [vmem:[%s7266_s0 + $0x370] ss:$72 sps:$4 sm:$0xff]   ;;  %v5436_v11 = vld [vmem:[%s7266_s0 + $0x404] ss:$72 sps:$4 sm:$0xff]  }
  0x52   :  { %2623 = vmatmul.mubr.bf16.gmra.mrb[24].mxu0 %v5369_v14  ;;  %2711 = vmatmul.mubr.bf16.vlgmr.msra.gmra.mrb[24].mxu1 %v5366_v13  ;;  %v5438_v13 = vld [vmem:[%s7266_s0 + $0x488] ss:$72 sps:$4 sm:$0xff]  }
  0x53   :  { %2718 = vmatprep.mubr.bf16.mxu1 %v5373_v15  ;;  %2846 = vmatprep.mubr.bf16.mxu0 %v5377_v16  ;;  %v5439_v14 = vld [vmem:[%s7266_s0 + $0x400] ss:$72 sps:$4 sm:$0xff]   ;;  %v5440_v15 = vld [vmem:[%s7266_s0 + $0x51c] ss:$72 sps:$4 sm:$0xff]  }
  0x54   :  { %4704 = vmatpush3.bf16.msra.mxu1 %v5378_v17  ;;  %v5442_v16 = vld [vmem:[%s7266_s0 + $0x494] ss:$72 sps:$4 sm:$0xff]   ;;  %v5445_v17 = vld [vmem:[%s7266_s0 + $0x518] ss:$72 sps:$4 sm:$0xff]  }
  0x55   :  { %4705 = vmatprep.subr.bf16.mxu1 %v5388_v18  ;;  %v5446_v18 = vld [vmem:[%s7266_s0 + $0x490] ss:$72 sps:$4 sm:$0xff]  }
  0x58   :  { %4706 = vmatpush3.bf16.msra.mxu1 %v5389_v21  ;;  %v5454_v21 = vld [vmem:[%s7266_s0 + $0x5a8] ss:$72 sps:$4 sm:$0xff]  }
  0x59   :  { %4707 = vmatprep.subr.bf16.mxu1 %v5404_v23  ;;  %v5459_v23 = vld [vmem:[%s7266_s0 + $0x63c] ss:$72 sps:$4 sm:$0xff]  }
  0x5a   :  { %2719 = vmatmul.mubr.bf16.gmra.mrb[28].mxu1 %v5379_v20  ;;  %2847 = vmatmul.mubr.bf16.vlgmr.msra.gmra.mrb[28].mxu0 %v5375_v19  ;;  %v5450_v19 = vld [vmem:[%s7266_s0 + $0x5ac] ss:$72 sps:$4 sm:$0xff]  }
  0x5b   :  { %4798 = vmatpush3.bf16.msra.mxu0 %v5381_v22  ;;  %2726 = vmatprep.mubr.bf16.mxu1 %v5382_v24  ;;  %v5452_v20 = vld [vmem:[%s7266_s0 + $0x524] ss:$72 sps:$4 sm:$0xff]   ;;  %v5455_v22 = vld [vmem:[%s7266_s0 + $0x520] ss:$72 sps:$4 sm:$0xff]   ;;  %v5461_v24 = vld [vmem:[%s7266_s0 + $0x5b4] ss:$72 sps:$4 sm:$0xff]  }
  0x5c   :  { %2854 = vmatprep.mubr.bf16.mxu0 %v5384_v25  ;;  %4799 = vmatprep.subr.bf16.mxu0 %v5390_v26  ;;  %v232_v25 = vld [vmem:[%s7266_s0 + $0x6c8] sm:$0xff]  ;;  %v5464_v26 = vld [vmem:[%s7266_s0 + $0x638] ss:$72 sps:$4 sm:$0xff]  }
  0x5d   :  { %4708 = vmatpush3.bf16.msra.mxu1 %v5405_v27  ;;  %v5465_v27 = vld [vmem:[%s7266_s0 + $0x5b0] ss:$72 sps:$4 sm:$0xff]  }
  0x5e   :  { %4709 = vmatprep.subr.bf16.mxu1 %v5414_v29  ;;  %v5467_v29 = vld [vmem:[%s7266_s0 + $0x644] ss:$72 sps:$4 sm:$0xff]  }
  0x5f   :  { %4800 = vmatpush3.bf16.msra.mxu0 %v5391_v28  ;;  %v4141_v28 = vcombine.high %v232_v25, %v232_v25 }
  0x60   :  { %4801 = vmatprep.subr.bf16.mxu0 %v5406_v32  ;;  %v5470_v32 = vld [vmem:[%s7266_s0 + $0x640] ss:$72 sps:$4 sm:$0xff]  }
  0x61   :  { %4710 = vmatpush3.bf16.msra.mxu1 %v5415_v33 }
  0x62   :  { %2727 = vmatmul.mubr.bf16.gmra.mrb[32].mxu1 %v5386_v30  ;;  %2855 = vmatmul.mubr.bf16.gmra.mrb[32].mxu0 %v5387_v31  ;;  %v233_v30 = vld [vmem:[%s7266_s0 + $0x6d0] sm:$0xff]  ;;  %v4140_v31 = vcombine.low %v232_v25, %v232_v25  ;;  %v5524_v25 = vld [vmem:[%s7266_s0 + $0x37c] ss:$72 sps:$4 sm:$0xff]  }
  0x63   :  { %2734 = vmatprep.mubr.bf16.mxu1 %v5392_v34  ;;  %2862 = vmatprep.mubr.bf16.mxu0 %v5394_v35  ;;  %v4143_v33 = vcombine.high %v233_v30, %v233_v30  ;;  %v5478_v34 = vld [vmem:[%s7266_s0 + $0x1c] ss:$72 sps:$4 sm:$0xff]   ;;  %v5476_v35 = vld [vmem:[%s7266_s0 + $0x18] ss:$72 sps:$4 sm:$0xff]  }
  0x64   :  { %4802 = vmatpush3.bf16.msra.mxu0 %v5407_v36  ;;  %4711 = vmatprep.subr.bf16.mxu1 %v5430_v43  ;;  %v4142_v36 = vcombine.low %v233_v30, %v233_v30  ;;  %v5497_v43 = vld [vmem:[%s7265_s1 + $0x288] sm:$0xff]  }
  0x65   :  { %4803 = vmatprep.subr.bf16.mxu0 %v5420_v37  ;;  %4712 = vmatpush3.bf16.msra.mxu1 %v5431_v44  ;;  %v5481_v37 = vld [vmem:[%s7266_s0 + $0xac] ss:$72 sps:$4 sm:$0xff]   ;;  %v5489_v44 = vld [vmem:[%s7265_s1 + $0x300] sm:$0xff]  }
  0x66   :  { %4713 = vmatprep.subr.bf16.mxu1 %v5444_v49  ;;  %v5513_v49 = vld [vmem:[%s7265_s1 + $0x290] sm:$0xff]   ;;  %v5534_v30 = vld [vmem:[%s7266_s0 + $0x384] ss:$72 sps:$4 sm:$0xff]  }
  0x68   :  { %4804 = vmatpush3.bf16.msra.mxu0 %v5423_v40  ;;  %v5496_v40 = vld [vmem:[%s7265_s1 + $0x2c8] sm:$0xff]  }
  0x69   :  { %4805 = vmatprep.subr.bf16.mxu0 %v5432_v45  ;;  %4714 = vmatpush3.bf16.msra.mxu1 %v5447_v52  ;;  %v5512_v45 = vld [vmem:[%s7265_s1 + $0x2d0] sm:$0xff]   ;;  %v5494_v52 = vld [vmem:[%s7266_s0 + $0x138] ss:$72 sps:$4 sm:$0xff]  }
  0x6a   :  { %2735 = vmatmul.mubr.bf16.gmra.mrb[36].mxu1 %v5396_v38  ;;  %2863 = vmatmul.mubr.bf16.gmra.mrb[36].mxu0 %v5397_v39  ;;  %v5485_v38 = vld [vmem:[%s7266_s0 + $0x24] ss:$72 sps:$4 sm:$0xff]  }
  0x6b   :  { %2742 = vmatprep.mubr.bf16.mxu1 %v5398_v41  ;;  %2870 = vmatprep.mubr.bf16.mxu0 %v5400_v42  ;;  %v5486_v39 = vld [vmem:[%s7265_s1 + $0x280] sm:$0xff]   ;;  %v5487_v42 = vld [vmem:[%s7266_s0 + $0xa8] ss:$72 sps:$4 sm:$0xff]  }
  0x6c   :  { %4806 = vmatpush3.bf16.msra.mxu0 %v5433_v46  ;;  %4715 = vmatprep.subr.bf16.mxu1 %v5456_v59  ;;  %v5483_v41 = vld [vmem:[%s7266_s0 + $0x20] ss:$72 sps:$4 sm:$0xff]   ;;  %v5490_v46 = vld [vmem:[%s7266_s0 + $0x13c] ss:$72 sps:$4 sm:$0xff]  }
  0x6d   :  { %4807 = vmatprep.subr.bf16.mxu0 %v5448_v53  ;;  %4716 = vmatpush3.bf16.msra.mxu1 %v5457_v60  ;;  %v5495_v53 = vld [vmem:[%s7266_s0 + $0xb0] ss:$72 sps:$4 sm:$0xff]   ;;  %v5538_v60 = vld [vmem:[%s7265_s1 + $0x2e0] sm:$0xff]  }
  0x6e   :  { %4717 = vmatprep.subr.bf16.mxu1 %v5471_v3  ;;  %v5528_v59 = vld [vmem:[%s7265_s1 + $0x358] sm:$0xff]  }
  0x6f   :  { %v5506_v3 = vld [vmem:[%s7266_s0 + $0x25c] ss:$72 sps:$4 sm:$0xff]  }
  0x70   :  { %4808 = vmatpush3.bf16.msra.mxu0 %v5449_v54  ;;  %v5514_v54 = vld [vmem:[%s7265_s1 + $0x350] sm:$0xff]  }
  0x71   :  { %4809 = vmatprep.subr.bf16.mxu0 %v5458_v61  ;;  %4718 = vmatpush3.bf16.msra.mxu1 %v5472_v4  ;;  %v5539_v61 = vld [vmem:[%s7265_s1 + $0x2a0] sm:$0xff]   ;;  %v5508_v4 = vld [vmem:[%s7266_s0 + $0x1d4] ss:$72 sps:$4 sm:$0xff]  }
  0x72   :  { %2743 = vmatmul.mubr.bf16.gmra.mrb[40].mxu1 %v5402_v47  ;;  %2871 = vmatmul.mubr.bf16.gmra.mrb[40].mxu0 %v5403_v48  ;;  %v5492_v47 = vld [vmem:[%s7266_s0 + $0xb4] ss:$72 sps:$4 sm:$0xff]   ;;  %v5498_v48 = vld [vmem:[%s7265_s1 + $0x348] sm:$0xff]  }
  0x73   :  { %2750 = vmatprep.mubr.bf16.mxu1 %v5408_v50  ;;  %2878 = vmatprep.mubr.bf16.mxu0 %v5410_v51  ;;  %v5522_v50 = vld [vmem:[%s7265_s1 + $0x2d8] sm:$0xff]   ;;  %v5499_v51 = vld [vmem:[%s7265_s1 + $0x308] sm:$0xff]  }
  0x74   :  { %4810 = vmatpush3.bf16.msra.mxu0 %v5463_v62  ;;  %4891 = vmatprep.subr.bf16.mxu1 %v5480_v7  ;;  %v5552_v62 = vld [vmem:[%s7265_s1 + $0x2e8] sm:$0xff]  }
  0x75   :  { %4811 = vmatprep.subr.bf16.mxu0 %v5473_v5  ;;  %v5555_v5 = vld [vmem:[%s7265_s1 + $0x2a8] sm:$0xff]  }
  0x76   :  { %v5556_v7 = vld [vmem:[%s7265_s1 + $0x368] sm:$0xff]  }
  0x78   :  { %4812 = vmatpush3.bf16.msra.mxu0 %v5474_v6  ;;  %v5541_v6 = vld [vmem:[%s7265_s1 + $0x320] sm:$0xff]  }
  0x79   :  { %4985 = vmatprep.subr.bf16.mxu0 %v5488_v12  ;;  %v5511_v12 = vld [vmem:[%s7266_s0 + $0x1d0] ss:$72 sps:$4 sm:$0xff]  }
  0x7a   :  { %2751 = vmatmul.mubr.bf16.gmra.mrb[44].mxu1 %v5412_v55  ;;  %2879 = vmatmul.mubr.bf16.gmra.mrb[44].mxu0 %v5413_v56  ;;  %v5523_v55 = vld [vmem:[%s7265_s1 + $0x298] sm:$0xff]   ;;  %v5500_v56 = vld [vmem:[%s7266_s0 + $0x1cc] ss:$72 sps:$4 sm:$0xff]  }
  0x7b   :  { %2758 = vmatprep.mubr.bf16.mxu1 %v5416_v57  ;;  %2886 = vmatprep.mubr.bf16.mxu0 %v5418_v58  ;;  %v5502_v57 = vld [vmem:[%s7266_s0 + $0x144] ss:$72 sps:$4 sm:$0xff]   ;;  %v5515_v58 = vld [vmem:[%s7265_s1 + $0x310] sm:$0xff]  }
  0x82   :  { %2759 = vmatmul.mubr.bf16.gmra.mrb[48].mxu1 %v5421_v63  ;;  %2887 = vmatmul.mubr.bf16.gmra.mrb[48].mxu0 %v5422_v0  ;;  %v5504_v63 = vld [vmem:[%s7266_s0 + $0x1c8] ss:$72 sps:$4 sm:$0xff]  }
  0x83   :  { %2766 = vmatprep.mubr.bf16.mxu1 %v5424_v1  ;;  %2894 = vmatprep.mubr.bf16.mxu0 %v5426_v2  ;;  %v5505_v0 = vld [vmem:[%s7266_s0 + $0x140] ss:$72 sps:$4 sm:$0xff]   ;;  %v5531_v1 = vld [vmem:[%s7265_s1 + $0x318] sm:$0xff]  }
  0x84   :  { %v5540_v2 = vld [vmem:[%s7265_s1 + $0x360] sm:$0xff]  }
  0x8a   :  { %2767 = vmatmul.mubr.bf16.gmra.mrb[52].mxu1 %v5428_v8  ;;  %2895 = vmatmul.mubr.bf16.gmra.mrb[52].mxu0 %v5429_v9  ;;  %v5564_v8 = vld [vmem:[%s7265_s1 + $0x2f0] sm:$0xff]  }
  0x8b   :  { %2774 = vmatprep.mubr.bf16.mxu1 %v5434_v10  ;;  %2902 = vmatprep.mubr.bf16.mxu0 %v5436_v11  ;;  %v5565_v9 = vld [vmem:[%s7265_s1 + $0x2b0] sm:$0xff]   ;;  %v5579_v10 = vld [vmem:[%s7265_s1 + $0x2f8] sm:$0xff]  }
  0x8c   :  { %v5510_v11 = vld [vmem:[%s7266_s0 + $0x258] ss:$72 sps:$4 sm:$0xff]  }
  0x92   :  { %2775 = vmatmul.mubr.bf16.gmra.mrb[56].mxu1 %v5438_v13  ;;  %2903 = vmatmul.mubr.bf16.gmra.mrb[56].mxu0 %v5439_v14  ;;  %v5557_v13 = vld [vmem:[%s7265_s1 + $0x328] sm:$0xff]  }
  0x93   :  { %2782 = vmatprep.mubr.bf16.mxu1 %v5440_v15  ;;  %2910 = vmatprep.mubr.bf16.mxu0 %v5442_v16  ;;  %v5516_v14 = vld [vmem:[%s7266_s0 + $0x2ec] ss:$72 sps:$4 sm:$0xff]   ;;  %v5580_v16 = vld [vmem:[%s7265_s1 + $0x2b8] sm:$0xff]  }
  0x94   :  { %v5566_v15 = vld [vmem:[%s7265_s1 + $0x370] sm:$0xff]  }
  0x9a   :  { %2783 = vmatmul.mubr.bf16.gmra.mrb[60].mxu1 %v5445_v17  ;;  %2911 = vmatmul.mubr.bf16.gmra.mrb[60].mxu0 %v5446_v18  ;;  %v5518_v17 = vld [vmem:[%s7266_s0 + $0x264] ss:$72 sps:$4 sm:$0xff]   ;;  %v5571_v18 = vld [vmem:[%s7265_s1 + $0x330] sm:$0xff]  }
  0x9b   :  { %2790 = vmatprep.mubr.bf16.mxu1 %v5450_v19  ;;  %2918 = vmatprep.mubr.bf16.mxu0 %v5452_v20  ;;  %v5588_v19 = vld [vmem:[%s7265_s1 + $0x3c0] sm:$0xff]   ;;  %v5581_v20 = vld [vmem:[%s7265_s1 + $0x378] sm:$0xff]  }
  0xa2   :  { %2791 = vmatmul.mubr.bf16.gmra.mrb[64].mxu1 %v5454_v21  ;;  %2919 = vmatmul.mubr.bf16.gmra.mrb[64].mxu0 %v5455_v22  ;;  %v5520_v21 = vld [vmem:[%s7266_s0 + $0x2e8] ss:$72 sps:$4 sm:$0xff]  }
  0xa3   :  { %2798 = vmatprep.mubr.bf16.mxu1 %v5459_v23  ;;  %2926 = vmatprep.mubr.bf16.mxu0 %v5461_v24  ;;  %v5521_v22 = vld [vmem:[%s7266_s0 + $0x260] ss:$72 sps:$4 sm:$0xff]   ;;  %v5582_v23 = vld [vmem:[%s7265_s1 + $0x338] sm:$0xff]  }
  0xa4   :  { %v5596_v24 = vld [vmem:[%s7265_s1 + $0x440] sm:$0xff]  }
  0xaa   :  { %2799 = vmatmul.mubr.bf16.gmra.mrb[68].mxu1 %v5464_v26  ;;  %2927 = vmatmul.mubr.bf16.gmra.mrb[68].mxu0 %v5465_v27  ;;  %v5526_v26 = vld [vmem:[%s7266_s0 + $0x2f4] ss:$72 sps:$4 sm:$0xff]   ;;  %v5529_v27 = vld [vmem:[%s7266_s0 + $0x378] ss:$72 sps:$4 sm:$0xff]  }
  0xab   :  { %2806 = vmatprep.mubr.bf16.mxu1 %v4141_v28  ;;  %2934 = vmatprep.mubr.bf16.mxu0 %v5467_v29  ;;  %v5530_v28 = vld [vmem:[%s7266_s0 + $0x2f0] ss:$72 sps:$4 sm:$0xff]   ;;  %v5532_v29 = vld [vmem:[%s7266_s0 + $0x40c] ss:$72 sps:$4 sm:$0xff]  }
  0xb2   :  { %2807 = vmatmul.mubr.bf16.gmra.mrb[72].mxu1 %v4140_v31  ;;  %2935 = vmatmul.mubr.bf16.gmra.mrb[72].mxu0 %v5470_v32  ;;  %v5536_v31 = vld [vmem:[%s7266_s0 + $0x408] ss:$72 sps:$4 sm:$0xff]  }
  0xb3   :  { %2942 = vmatprep.mubr.bf16.mxu0 %v4143_v33  ;;  %2982 = vmatprep.mubr.bf16.mxu1 %v5478_v34  ;;  %v5537_v32 = vld [vmem:[%s7266_s0 + $0x380] ss:$72 sps:$4 sm:$0xff]   ;;  %v5542_v33 = vld [vmem:[%s7266_s0 + $0x49c] ss:$72 sps:$4 sm:$0xff]  }
  0xb4   :  { %v5544_v34 = vld [vmem:[%s7266_s0 + $0x414] ss:$72 sps:$4 sm:$0xff]  }
  0xba   :  { %2943 = vmatmul.mubr.bf16.gmra.mrb[76].mxu0 %v4142_v36  ;;  %2983 = vmatmul.mubr.bf16.vlgmr.msra.gmra.mrb[76].mxu1 %v5476_v35  ;;  %v5546_v35 = vld [vmem:[%s7266_s0 + $0x498] ss:$72 sps:$4 sm:$0xff]  }
  0xbb   :  { %2990 = vmatprep.mubr.bf16.mxu1 %v5481_v37  ;;  %3118 = vmatprep.mubr.bf16.mxu0 %v5485_v38  ;;  %v5547_v38 = vld [vmem:[%s7266_s0 + $0x410] ss:$72 sps:$4 sm:$0xff]  }
  0xbc   :  { %4892 = vmatpush3.bf16.msra.mxu1 %v5486_v39  ;;  %v5548_v39 = vld [vmem:[%s7266_s0 + $0x52c] ss:$72 sps:$4 sm:$0xff]  }
  0xbd   :  { %4893 = vmatprep.subr.bf16.mxu1 %v5496_v40 }
  0xc0   :  { %4894 = vmatpush3.bf16.msra.mxu1 %v5497_v43 }
  0xc1   :  { %4895 = vmatprep.subr.bf16.mxu1 %v5512_v45 }
  0xc2   :  { %2991 = vmatmul.mubr.bf16.gmra.mrb[80].mxu1 %v5487_v42  ;;  %3119 = vmatmul.mubr.bf16.vlgmr.msra.gmra.mrb[80].mxu0 %v5483_v41  ;;  %v5550_v42 = vld [vmem:[%s7266_s0 + $0x4a4] ss:$72 sps:$4 sm:$0xff]  }
  0xc3   :  { %4986 = vmatpush3.bf16.msra.mxu0 %v5489_v44  ;;  %2998 = vmatprep.mubr.bf16.mxu1 %v5490_v46 }
  0xc4   :  { %3126 = vmatprep.mubr.bf16.mxu0 %v5492_v47  ;;  %4987 = vmatprep.subr.bf16.mxu0 %v5498_v48 }
  0xc5   :  { %4896 = vmatpush3.bf16.msra.mxu1 %v5513_v49 }
  0xc6   :  { %4897 = vmatprep.subr.bf16.mxu1 %v5522_v50 }
  0xc7   :  { %4988 = vmatpush3.bf16.msra.mxu0 %v5499_v51  ;;  %v5553_v51 = vld [vmem:[%s7266_s0 + $0x528] ss:$72 sps:$4 sm:$0xff]  }
  0xc8   :  { %4989 = vmatprep.subr.bf16.mxu0 %v5514_v54  ;;  %v5554_v54 = vld [vmem:[%s7266_s0 + $0x4a0] ss:$72 sps:$4 sm:$0xff]  }
  0xc9   :  { %4898 = vmatpush3.bf16.msra.mxu1 %v5523_v55 }
  0xca   :  { %2999 = vmatmul.mubr.bf16.gmra.mrb[84].mxu1 %v5494_v52  ;;  %3127 = vmatmul.mubr.bf16.gmra.mrb[84].mxu0 %v5495_v53 }
  0xcb   :  { %3006 = vmatprep.mubr.bf16.mxu1 %v5500_v56  ;;  %3134 = vmatprep.mubr.bf16.mxu0 %v5502_v57  ;;  %v5558_v57 = vld [vmem:[%s7266_s0 + $0x5bc] ss:$72 sps:$4 sm:$0xff]  }
  0xcc   :  { %4990 = vmatpush3.bf16.msra.mxu0 %v5515_v58  ;;  %4899 = vmatprep.subr.bf16.mxu1 %v5538_v60 }
  0xcd   :  { %4991 = vmatprep.subr.bf16.mxu0 %v5528_v59  ;;  %4900 = vmatpush3.bf16.msra.mxu1 %v5539_v61 }
  0xce   :  { %4901 = vmatprep.subr.bf16.mxu1 %v5552_v62  ;;  %v5560_v62 = vld [vmem:[%s7266_s0 + $0x534] ss:$72 sps:$4 sm:$0xff]  }
  0xd0   :  { %4992 = vmatpush3.bf16.msra.mxu0 %v5531_v1 }
  0xd1   :  { %4993 = vmatprep.subr.bf16.mxu0 %v5540_v2  ;;  %4902 = vmatpush3.bf16.msra.mxu1 %v5555_v5 }
  0xd2   :  { %3007 = vmatmul.mubr.bf16.gmra.mrb[88].mxu1 %v5504_v63  ;;  %3135 = vmatmul.mubr.bf16.gmra.mrb[88].mxu0 %v5505_v0  ;;  %v6489_v63 = vld [vmem:[%s7267_s2] ss:$0 sm:$0xff] }
  0xd3   :  { %3014 = vmatprep.mubr.bf16.mxu1 %v5506_v3  ;;  %3142 = vmatprep.mubr.bf16.mxu0 %v5508_v4 }
  0xd4   :  { %4994 = vmatpush3.bf16.msra.mxu0 %v5541_v6  ;;  %4903 = vmatprep.subr.bf16.mxu1 %v5564_v8  ;;  %v5562_v6 = vld [vmem:[%s7266_s0 + $0x5b8] ss:$72 sps:$4 sm:$0xff]  }
  0xd5   :  { %4995 = vmatprep.subr.bf16.mxu0 %v5556_v7  ;;  %4904 = vmatpush3.bf16.msra.mxu1 %v5565_v9  ;;  %v5563_v9 = vld [vmem:[%s7266_s0 + $0x530] ss:$72 sps:$4 sm:$0xff]  }
  0xd6   :  { %4905 = vmatprep.subr.bf16.mxu1 %v5579_v10 }
  0xd8   :  { %4996 = vmatpush3.bf16.msra.mxu0 %v5557_v13 }
  0xd9   :  { %4997 = vmatprep.subr.bf16.mxu0 %v5566_v15  ;;  %4906 = vmatpush3.bf16.msra.mxu1 %v5580_v16 }
  0xda   :  { %3015 = vmatmul.mubr.bf16.gmra.mrb[92].mxu1 %v5510_v11  ;;  %3143 = vmatmul.mubr.bf16.gmra.mrb[92].mxu0 %v5511_v12  ;;  %v5567_v12 = vld [vmem:[%s7266_s0 + $0x64c] ss:$72 sps:$4 sm:$0xff]  }
  0xdb   :  { %3022 = vmatprep.mubr.bf16.mxu1 %v5516_v14  ;;  %3150 = vmatprep.mubr.bf16.mxu0 %v5518_v17  ;;  %v5569_v17 = vld [vmem:[%s7266_s0 + $0x5c4] ss:$72 sps:$4 sm:$0xff]  }
  0xdc   :  { %4998 = vmatpush3.bf16.msra.mxu0 %v5571_v18  ;;  %5079 = vmatprep.subr.bf16.mxu1 %v5588_v19 }
  0xdd   :  { %4999 = vmatprep.subr.bf16.mxu0 %v5581_v20 }
  0xe0   :  { %5000 = vmatpush3.bf16.msra.mxu0 %v5582_v23  ;;  %v234_v23 = vld [vmem:[%s7266_s0 + $0x6d8] sm:$0xff] }
  0xe1   :  { %5173 = vmatprep.subr.bf16.mxu0 %v5596_v24 }
  0xe2   :  { %3023 = vmatmul.mubr.bf16.gmra.mrb[96].mxu1 %v5520_v21  ;;  %3151 = vmatmul.mubr.bf16.gmra.mrb[96].mxu0 %v5521_v22 }
  0xe3   :  { %3030 = vmatprep.mubr.bf16.mxu1 %v5524_v25  ;;  %3158 = vmatprep.mubr.bf16.mxu0 %v5526_v26  ;;  %v5572_v25 = vld [vmem:[%s7266_s0 + $0x648] ss:$72 sps:$4 sm:$0xff]  }
  0xe4   :  { %v5573_v26 = vld [vmem:[%s7266_s0 + $0x5c0] ss:$72 sps:$4 sm:$0xff]  }
  0xea   :  { %3031 = vmatmul.mubr.bf16.gmra.mrb[100].mxu1 %v5529_v27  ;;  %3159 = vmatmul.mubr.bf16.gmra.mrb[100].mxu0 %v5530_v28 }
  0xeb   :  { %3038 = vmatprep.mubr.bf16.mxu1 %v5532_v29  ;;  %3166 = vmatprep.mubr.bf16.mxu0 %v5534_v30 }
  0xf2   :  { %3039 = vmatmul.mubr.bf16.gmra.mrb[104].mxu1 %v5536_v31  ;;  %3167 = vmatmul.mubr.bf16.gmra.mrb[104].mxu0 %v5537_v32 }
  0xf3   :  { %3046 = vmatprep.mubr.bf16.mxu1 %v5542_v33  ;;  %3174 = vmatprep.mubr.bf16.mxu0 %v5544_v34 }
  0xf5   :  { %v4437_v36 = vpop.f32.mrb[0].mxu0  ;;  %v4479_v37 = vpop.f32.mrb[0].mxu1 }
  0xf6   :  { %v4438_v40 = vpop.f32.mrb[1].mxu0  ;;  %v4480_v41 = vpop.f32.mrb[1].mxu1 }
  0xf7   :  { %v6464_v43 = vadd.f32 %v4438_v40, %v4437_v36  ;;  %v4440_v44 = vpop.f32.mrb[2].mxu0  ;;  %v6466_v45 = vadd.f32 %v4480_v41, %v4479_v37  ;;  %v4482_v46 = vpop.f32.mrb[2].mxu1  ;;  %v5575_v36 = vld [vmem:[%s7266_s0 + $0x654] ss:$72 sps:$4 sm:$0xff]  }
  0xf8   :  { %v4441_v47 = vpop.f32.mrb[3].mxu0  ;;  %v4483_v48 = vpop.f32.mrb[3].mxu1 }
  0xf9   :  { %v6468_v49 = vadd.f32 %v4441_v47, %v4440_v44  ;;  %v6470_v50 = vadd.f32 %v4483_v48, %v4482_v46  ;;  %v5578_v46 = vld [vmem:[%s7266_s0 + $0x650] ss:$72 sps:$4 sm:$0xff]  }
  0xfa   :  { %3047 = vmatmul.mubr.bf16.gmra.mrb[108].mxu1 %v5546_v35  ;;  %3175 = vmatmul.mubr.bf16.gmra.mrb[108].mxu0 %v5547_v38  ;;  %v4145_v35 = vcombine.high %v234_v23, %v234_v23 }
  0xfb   :  { %3054 = vmatprep.mubr.bf16.mxu1 %v5548_v39  ;;  %3182 = vmatprep.mubr.bf16.mxu0 %v5550_v42  ;;  %v235_v42 = vld [vmem:[%s7266_s0 + $0x6e0] sm:$0xff] }
  0xfd   :  { %v4443_v52 = vpop.f32.mrb[4].mxu0  ;;  %v4485_v53 = vpop.f32.mrb[4].mxu1 }
  0xfe   :  { %v4444_v55 = vpop.f32.mrb[5].mxu0  ;;  %v4486_v56 = vpop.f32.mrb[5].mxu1 }
  0xff   :  { %v6481_v58 = vadd.f32 %v4444_v55, %v4443_v52  ;;  %v4446_v59 = vpop.f32.mrb[6].mxu0  ;;  %v4487_v60 = vadd.f32 %v4486_v56, %v4485_v53  ;;  %v4488_v61 = vpop.f32.mrb[6].mxu1  ;;  %v4144_v53 = vcombine.low %v234_v23, %v234_v23 }
 0x100   :  { %v4447_v0 = vpop.f32.mrb[7].mxu0  ;;  %v4489_v1 = vpop.f32.mrb[7].mxu1 }
 0x101   :  { %v6491_v2 = vadd.f32 %v4447_v0, %v4446_v59  ;;  %v6494_v3 = vadd.f32 %v4487_v60, %v6489_v63  ;;  %v4490_v4 = vadd.f32 %v4489_v1, %v4488_v61  ;;  %v4147_v59 = vcombine.high %v235_v42, %v235_v42  ;;  %v5586_v60 = vld [vmem:[%s7266_s0 + $0x2c] ss:$72 sps:$4 sm:$0xff]  }
 0x102   :  { %3055 = vmatmul.mubr.bf16.gmra.mrb[112].mxu1 %v5553_v51  ;;  %3183 = vmatmul.mubr.bf16.gmra.mrb[112].mxu0 %v5554_v54 }
 0x103   :  { %v6497_v5 = vadd.f32 %v4490_v4, %v6489_v63  ;;  %3062 = vmatprep.mubr.bf16.mxu1 %v5558_v57  ;;  %3190 = vmatprep.mubr.bf16.mxu0 %v5560_v62 }
 0x105   :  { %v4449_v7 = vpop.f32.mrb[8].mxu0  ;;  %v4491_v8 = vpop.f32.mrb[8].mxu1 }
 0x106   :  { %v4450_v10 = vpop.f32.mrb[9].mxu0  ;;  %v4492_v11 = vpop.f32.mrb[9].mxu1 }
 0x107   :  { %v6508_v13 = vadd.f32 %v4450_v10, %v4449_v7  ;;  %v4452_v14 = vpop.f32.mrb[10].mxu0  ;;  %v4493_v15 = vadd.f32 %v4492_v11, %v4491_v8  ;;  %v4494_v16 = vpop.f32.mrb[10].mxu1  ;;  %v5584_v10 = vld [vmem:[%s7266_s0 + $0x28] ss:$72 sps:$4 sm:$0xff]  }
 0x108   :  { %v4453_v18 = vpop.f32.mrb[11].mxu0  ;;  %v4495_v19 = vpop.f32.mrb[11].mxu1 }
 0x109   :  { %v6513_v20 = vadd.f32 %v4453_v18, %v4452_v14  ;;  %v6516_v21 = vadd.f32 %v4493_v15, %v6489_v63  ;;  %v4496_v22 = vadd.f32 %v4495_v19, %v4494_v16  ;;  %v5589_v18 = vld [vmem:[%s7266_s0 + $0xbc] ss:$72 sps:$4 sm:$0xff]  }
 0x10a   :  { %3063 = vmatmul.mubr.bf16.gmra.mrb[116].mxu1 %v5562_v6  ;;  %3191 = vmatmul.mubr.bf16.gmra.mrb[116].mxu0 %v5563_v9  ;;  %v5593_v19 = vld [vmem:[%s7266_s0 + $0x34] ss:$72 sps:$4 sm:$0xff]  }
 0x10b   :  { %v6522_v24 = vadd.f32 %v4496_v22, %v6489_v63  ;;  %3070 = vmatprep.mubr.bf16.mxu1 %v5567_v12  ;;  %3198 = vmatprep.mubr.bf16.mxu0 %v5569_v17  ;;  %v4146_v12 = vcombine.low %v235_v42, %v235_v42 }
 0x10d   :  { %v4455_v27 = vpop.f32.mrb[12].mxu0  ;;  %v4497_v28 = vpop.f32.mrb[12].mxu1 }
 0x10e   :  { %v4456_v29 = vpop.f32.mrb[13].mxu0  ;;  %v4498_v30 = vpop.f32.mrb[13].mxu1 }
 0x10f   :  { %v6530_v31 = vadd.f32 %v4456_v29, %v4455_v27  ;;  %v4458_v32 = vpop.f32.mrb[14].mxu0  ;;  %v4499_v33 = vadd.f32 %v4498_v30, %v4497_v28  ;;  %v4500_v34 = vpop.f32.mrb[14].mxu1  ;;  %v5604_v28 = vld [vmem:[%s7265_s1 + $0x3c8] sm:$0xff]  }
 0x110   :  { %v4459_v37 = vpop.f32.mrb[15].mxu0  ;;  %v4501_v38 = vpop.f32.mrb[15].mxu1  ;;  %v5605_v29 = vld [vmem:[%s7265_s1 + $0x388] sm:$0xff]  }
 0x111   :  { %v6535_v39 = vadd.f32 %v4459_v37, %v4458_v32  ;;  %v6538_v40 = vadd.f32 %v4499_v33, %v6489_v63  ;;  %v4502_v41 = vadd.f32 %v4501_v38, %v4500_v34  ;;  %v5620_v33 = vld [vmem:[%s7265_s1 + $0x3d0] sm:$0xff]   ;;  %v5595_v37 = vld [vmem:[%s7266_s0 + $0xb8] ss:$72 sps:$4 sm:$0xff]   ;;  %v2577_v38 = vadd.f32 %v6464_v43, %v6489_v63  ;;  %v5606_v43 = vld [vmem:[%s7265_s1 + $0x448] sm:$0xff]  }
 0x112   :  { %3071 = vmatmul.mubr.bf16.gmra.mrb[120].mxu1 %v5572_v25  ;;  %3199 = vmatmul.mubr.bf16.gmra.mrb[120].mxu0 %v5573_v26  ;;  %v5594_v25 = vld [vmem:[%s7265_s1 + $0x380] sm:$0xff]  }
 0x113   :  { %v6544_v44 = vadd.f32 %v4502_v41, %v6489_v63  ;;  %3078 = vmatprep.mubr.bf16.mxu1 %v4145_v35  ;;  %3206 = vmatprep.mubr.bf16.mxu0 %v5575_v36  ;;  %v5591_v36 = vld [vmem:[%s7266_s0 + $0x30] ss:$72 sps:$4 sm:$0xff]  }
 0x115   :  { %v4461_v47 = vpop.f32.mrb[16].mxu0  ;;  %v4503_v48 = vpop.f32.mrb[16].mxu1 }
 0x116   :  { %v4462_v51 = vpop.f32.mrb[17].mxu0  ;;  %v4504_v52 = vpop.f32.mrb[17].mxu1 }
 0x117   :  { %v6549_v54 = vadd.f32 %v4462_v51, %v4461_v47  ;;  %v4464_v55 = vpop.f32.mrb[18].mxu0  ;;  %v4505_v56 = vadd.f32 %v4504_v52, %v4503_v48  ;;  %v4506_v57 = vpop.f32.mrb[18].mxu1  ;;  %v5597_v48 = vld [vmem:[%s7265_s1 + $0x400] sm:$0xff]   ;;  %v5598_v51 = vld [vmem:[%s7266_s0 + $0x14c] ss:$72 sps:$4 sm:$0xff]  }
 0x118   :  { %v4465_v61 = vpop.f32.mrb[19].mxu0  ;;  %v4507_v62 = vpop.f32.mrb[19].mxu1 }
 0x119   :  { %v6554_v0 = vadd.f32 %v4465_v61, %v4464_v55  ;;  %v6557_v1 = vadd.f32 %v4505_v56, %v6489_v63  ;;  %v4508_v4 = vadd.f32 %v4507_v62, %v4506_v57  ;;  %v5600_v55 = vld [vmem:[%s7266_s0 + $0xc4] ss:$72 sps:$4 sm:$0xff]   ;;  %v2580_v56 = vadd.f32 %v6468_v49, %v6489_v63  ;;  %v5621_v61 = vld [vmem:[%s7265_s1 + $0x390] sm:$0xff]   ;;  %v5630_v62 = vld [vmem:[%s7265_s1 + $0x3d8] sm:$0xff]  }
 0x11a   :  { %3079 = vmatmul.mubr.bf16.gmra.mrb[124].mxu1 %v4144_v53  ;;  %3207 = vmatmul.mubr.bf16.gmra.mrb[124].mxu0 %v5578_v46  ;;  %v5607_v49 = vld [vmem:[%s7265_s1 + $0x408] sm:$0xff]  }
 0x11b   :  { %v6560_v6 = vadd.f32 %v4508_v4, %v6489_v63  ;;  %3214 = vmatprep.mubr.bf16.mxu0 %v4147_v59  ;;  %3254 = vmatprep.mubr.bf16.mxu1 %v5586_v60 }
 0x11d   :  { %v4467_v7 = vpop.f32.mrb[20].mxu0  ;;  %v4509_v8 = vpop.f32.mrb[20].mxu1 }
 0x11e   :  { %v4468_v9 = vpop.f32.mrb[21].mxu0  ;;  %v4510_v11 = vpop.f32.mrb[21].mxu1 }
 0x11f   :  { %v6565_v14 = vadd.f32 %v4468_v9, %v4467_v7  ;;  %v4470_v15 = vpop.f32.mrb[22].mxu0  ;;  %v4511_v16 = vadd.f32 %v4510_v11, %v4509_v8  ;;  %v4512_v17 = vpop.f32.mrb[22].mxu1  ;;  %v5622_v7 = vld [vmem:[%s7265_s1 + $0x450] sm:$0xff]  }
 0x120   :  { %v4471_v22 = vpop.f32.mrb[23].mxu0  ;;  %v4513_v23 = vpop.f32.mrb[23].mxu1  ;;  %v2585_v17 = vadd.f32 %v6481_v58, %v6489_v63  ;;  %v5623_v58 = vld [vmem:[%s7265_s1 + $0x410] sm:$0xff]  }
 0x121   :  { %v6576_v26 = vadd.f32 %v4471_v22, %v4470_v15  ;;  %v6579_v27 = vadd.f32 %v4511_v16, %v6489_v63  ;;  %v5602_v15 = vld [vmem:[%s7266_s0 + $0x148] ss:$72 sps:$4 sm:$0xff]  }
 0x122   :  { %3215 = vmatmul.mubr.bf16.gmra.mrb[128].mxu0 %v4146_v12  ;;  %3255 = vmatmul.mubr.bf16.vlgmr.msra.gmra.mrb[128].mxu1 %v5584_v10  ;;  %v5631_v10 = vld [vmem:[%s7265_s1 + $0x398] sm:$0xff]   ;;  %v5603_v16 = vld [vmem:[%s7266_s0 + $0xc0] ss:$72 sps:$4 sm:$0xff]  }
 0x123   :  { %3262 = vmatprep.mubr.bf16.mxu1 %v5589_v18  ;;  %3390 = vmatprep.mubr.bf16.mxu0 %v5593_v19 }
 0x124   :  { %5080 = vmatpush3.bf16.msra.mxu1 %v5594_v25  ;;  %v5608_v25 = vld [vmem:[%s7266_s0 + $0x1dc] ss:$72 sps:$4 sm:$0xff]  }
 0x125   :  { %v4473_v30 = vpop.f32.mrb[24].mxu0  ;;  %v4531_v32 = vpop.f32.mrb[24].mxu1  ;;  %5081 = vmatprep.subr.bf16.mxu1 %v5604_v28  ;;  %v5610_v28 = vld [vmem:[%s7266_s0 + $0x154] ss:$72 sps:$4 sm:$0xff]  }
 0x126   :  { %v4474_v34 = vpop.f32.mrb[25].mxu0  ;;  %v4532_v35 = vpop.f32.mrb[25].mxu1 }
 0x127   :  { %v6598_v41 = vadd.f32 %v4474_v34, %v4473_v30  ;;  %v4533_v42 = vadd.f32 %v4532_v35, %v4531_v32  ;;  %v4476_v46 = vpop.f32.mrb[26].mxu0  ;;  %v4534_v47 = vpop.f32.mrb[26].mxu1 }
 0x128   :  { %v4477_v52 = vpop.f32.mrb[27].mxu0  ;;  %v4535_v53 = vpop.f32.mrb[27].mxu1  ;;  %5082 = vmatpush3.bf16.msra.mxu1 %v5605_v29  ;;  %v2588_v29 = vadd.f32 %v6491_v2, %v6489_v63  ;;  %v5636_v2 = vld [vmem:[%s7265_s1 + $0x458] sm:$0xff]  }
 0x129   :  { %v2713_v57 = vadd.f32 %v4533_v42, %v2577_v38  ;;  %v6614_v59 = vadd.f32 %v4477_v52, %v4476_v46  ;;  %v4536_v60 = vadd.f32 %v4535_v53, %v4534_v47  ;;  %5083 = vmatprep.subr.bf16.mxu1 %v5620_v33  ;;  %v5646_v33 = vld [vmem:[%s7265_s1 + $0x3e0] sm:$0xff]   ;;  %v5660_v42 = vld [vmem:[%s7265_s1 + $0x3e8] sm:$0xff]  }
 0x12a   :  { %3263 = vmatmul.mubr.bf16.gmra.mrb[132].mxu1 %v5595_v37  ;;  %3391 = vmatmul.mubr.bf16.vlgmr.msra.gmra.mrb[132].mxu0 %v5591_v36  ;;  %v5647_v38 = vld [vmem:[%s7265_s1 + $0x3a0] sm:$0xff]  }
 0x12b   :  { %v2716_v4 = vadd.f32 %v4536_v60, %v2580_v56  ;;  %5174 = vmatpush3.bf16.msra.mxu0 %v5597_v48  ;;  %3270 = vmatprep.mubr.bf16.mxu1 %v5598_v51  ;;  %v5639_v48 = vld [vmem:[%s7265_s1 + $0x418] sm:$0xff]   ;;  %v5648_v53 = vld [vmem:[%s7265_s1 + $0x460] sm:$0xff]   ;;  %v2593_v60 = vadd.f32 %v6508_v13, %v6489_v63 }
 0x12c   :  { %3398 = vmatprep.mubr.bf16.mxu0 %v5600_v55  ;;  %5175 = vmatprep.subr.bf16.mxu0 %v5606_v43  ;;  %v5612_v56 = vld [vmem:[%s7266_s0 + $0x1d8] ss:$72 sps:$4 sm:$0xff]  }
 0x12d   :  { %v4537_v8 = vpop.f32.mrb[28].mxu1  ;;  %v4625_v9 = vpop.f32.mrb[28].mxu0  ;;  %5084 = vmatpush3.bf16.msra.mxu1 %v5621_v61  ;;  %v5649_v13 = vld [vmem:[%s7265_s1 + $0x420] sm:$0xff]  }
 0x12e   :  { %v4538_v11 = vpop.f32.mrb[29].mxu1  ;;  %v4626_v12 = vpop.f32.mrb[29].mxu0  ;;  %5085 = vmatprep.subr.bf16.mxu1 %v5630_v62 }
 0x12f   :  { %v4539_v18 = vadd.f32 %v4538_v11, %v4537_v8  ;;  %v4627_v19 = vadd.f32 %v4626_v12, %v4625_v9  ;;  %v4540_v22 = vpop.f32.mrb[30].mxu1  ;;  %v4628_v23 = vpop.f32.mrb[30].mxu0  ;;  %5176 = vmatpush3.bf16.msra.mxu0 %v5607_v49  ;;  %v5616_v8 = vld [vmem:[%s7266_s0 + $0x1e4] ss:$72 sps:$4 sm:$0xff]   ;;  %v2596_v9 = vadd.f32 %v6513_v20, %v6489_v63 }
 0x130   :  { %v4541_v30 = vpop.f32.mrb[31].mxu1  ;;  %v4629_v32 = vpop.f32.mrb[31].mxu0  ;;  %5177 = vmatprep.subr.bf16.mxu0 %v5622_v7  ;;  %v5614_v7 = vld [vmem:[%s7266_s0 + $0x26c] ss:$72 sps:$4 sm:$0xff]  }
 0x131   :  { %v2721_v34 = vadd.f32 %v4539_v18, %v2585_v17  ;;  %v6653_v35 = vadd.f32 %v4627_v19, %v2713_v57  ;;  %v4542_v36 = vadd.f32 %v4541_v30, %v4540_v22  ;;  %v4630_v37 = vadd.f32 %v4629_v32, %v4628_v23  ;;  %5086 = vmatpush3.bf16.msra.mxu1 %v5631_v10  ;;  %v5613_v57 = vld [vmem:[%s7266_s0 + $0x150] ss:$72 sps:$4 sm:$0xff]   ;;  %v5663_v12 = vld [vmem:[%s7265_s1 + $0x3a8] sm:$0xff]  }
 0x132   :  { %3271 = vmatmul.mubr.bf16.gmra.mrb[136].mxu1 %v5602_v15  ;;  %3399 = vmatmul.mubr.bf16.gmra.mrb[136].mxu0 %v5603_v16  ;;  %v5664_v20 = vld [vmem:[%s7265_s1 + $0x468] sm:$0xff]   ;;  %v5672_v19 = vld [vmem:[%s7265_s1 + $0x3f0] sm:$0xff]  }
 0x133   :  { %v2724_v46 = vadd.f32 %v4542_v36, %v2588_v29  ;;  %v6664_v47 = vadd.f32 %v4630_v37, %v2716_v4  ;;  %3278 = vmatprep.mubr.bf16.mxu1 %v5608_v25  ;;  %3406 = vmatprep.mubr.bf16.mxu0 %v5610_v28  ;;  %v5665_v25 = vld [vmem:[%s7265_s1 + $0x428] sm:$0xff]   ;;  %v5673_v28 = vld [vmem:[%s7265_s1 + $0x3b0] sm:$0xff]   ;;  %v2601_v37 = vadd.f32 %v6530_v31, %v6489_v63 }
 0x134   :  { %5178 = vmatpush3.bf16.msra.mxu0 %v5623_v58  ;;  %5087 = vmatprep.subr.bf16.mxu1 %v5646_v33  ;;  %v5674_v32 = vld [vmem:[%s7265_s1 + $0x470] sm:$0xff]   ;;  %v5619_v36 = vld [vmem:[%s7266_s0 + $0x1e0] ss:$72 sps:$4 sm:$0xff]  }
 0x135   :  { %v4543_v51 = vpop.f32.mrb[32].mxu1  ;;  %v4631_v52 = vpop.f32.mrb[32].mxu0  ;;  %5179 = vmatprep.subr.bf16.mxu0 %v5636_v2  ;;  %5088 = vmatpush3.bf16.msra.mxu1 %v5647_v38  ;;  %v5679_v31 = vld [vmem:[%s7265_s1 + $0x430] sm:$0xff]  }
 0x136   :  { %v4544_v55 = vpop.f32.mrb[33].mxu1  ;;  %v4632_v43 = vpop.f32.mrb[33].mxu0  ;;  %5089 = vmatprep.subr.bf16.mxu1 %v5660_v42 }
 0x137   :  { %v4545_v61 = vadd.f32 %v4544_v55, %v4543_v51  ;;  %v4633_v62 = vadd.f32 %v4632_v43, %v4631_v52  ;;  %v4546_v4 = vpop.f32.mrb[34].mxu1  ;;  %v4634_v49 = vpop.f32.mrb[34].mxu0  ;;  %v5626_v51 = vld [vmem:[%s7266_s0 + $0x274] ss:$72 sps:$4 sm:$0xff]   ;;  %v2604_v52 = vadd.f32 %v6535_v39, %v6489_v63 }
 0x138   :  { %v4547_v10 = vpop.f32.mrb[35].mxu1  ;;  %v4635_v11 = vpop.f32.mrb[35].mxu0  ;;  %5180 = vmatpush3.bf16.msra.mxu0 %v5639_v48  ;;  %v5624_v48 = vld [vmem:[%s7266_s0 + $0x2fc] ss:$72 sps:$4 sm:$0xff]  }
 0x139   :  { %v2729_v15 = vadd.f32 %v4545_v61, %v2593_v60  ;;  %v6694_v16 = vadd.f32 %v4633_v62, %v2721_v34  ;;  %v4548_v17 = vadd.f32 %v4547_v10, %v4546_v4  ;;  %v4636_v18 = vadd.f32 %v4635_v11, %v4634_v49  ;;  %5181 = vmatprep.subr.bf16.mxu0 %v5648_v53  ;;  %v5618_v34 = vld [vmem:[%s7266_s0 + $0x268] ss:$72 sps:$4 sm:$0xff]   ;;  %v5687_v43 = vld [vmem:[%s7265_s1 + $0x3f8] sm:$0xff]  }
 0x13a   :  { %3279 = vmatmul.mubr.bf16.gmra.mrb[140].mxu1 %v5612_v56  ;;  %3407 = vmatmul.mubr.bf16.gmra.mrb[140].mxu0 %v5613_v57  ;;  %v5688_v39 = vld [vmem:[%s7265_s1 + $0x3b8] sm:$0xff]  }
 0x13b   :  { %v2732_v22 = vadd.f32 %v4548_v17, %v2596_v9  ;;  %v6702_v23 = vadd.f32 %v4636_v18, %v2724_v46  ;;  %3286 = vmatprep.mubr.bf16.mxu1 %v5614_v7  ;;  %3414 = vmatprep.mubr.bf16.mxu0 %v5616_v8  ;;  %v5689_v62 = vld [vmem:[%s7265_s1 + $0x478] sm:$0xff]  }
 0x13c   :  { %5182 = vmatpush3.bf16.msra.mxu0 %v5649_v13  ;;  %5090 = vmatpush3.bf16.msra.mxu1 %v5663_v12  ;;  %v5690_v7 = vld [vmem:[%s7265_s1 + $0x438] sm:$0xff]  }
 0x13d   :  { %v4549_v29 = vpop.f32.mrb[36].mxu1  ;;  %v4637_v30 = vpop.f32.mrb[36].mxu0  ;;  %5183 = vmatprep.subr.bf16.mxu0 %v5664_v20  ;;  %5091 = vmatprep.subr.bf16.mxu1 %v5672_v19  ;;  %v5628_v13 = vld [vmem:[%s7266_s0 + $0x2f8] ss:$72 sps:$4 sm:$0xff]  }
 0x13e   :  { %v4550_v58 = vpop.f32.mrb[37].mxu1  ;;  %v4638_v33 = vpop.f32.mrb[37].mxu0  ;;  %v5629_v12 = vld [vmem:[%s7266_s0 + $0x270] ss:$72 sps:$4 sm:$0xff]  }
 0x13f   :  { %v4551_v2 = vadd.f32 %v4550_v58, %v4549_v29  ;;  %v4639_v38 = vadd.f32 %v4638_v33, %v4637_v30  ;;  %v4552_v42 = vpop.f32.mrb[38].mxu1  ;;  %v4640_v46 = vpop.f32.mrb[38].mxu0 }
 0x140   :  { %v4553_v53 = vpop.f32.mrb[39].mxu1  ;;  %v4641_v55 = vpop.f32.mrb[39].mxu0  ;;  %5184 = vmatpush3.bf16.msra.mxu0 %v5665_v25  ;;  %5092 = vmatpush3.bf16.msra.mxu1 %v5673_v28  ;;  %v5634_v25 = vld [vmem:[%s7266_s0 + $0x304] ss:$72 sps:$4 sm:$0xff]   ;;  %v2612_v28 = vadd.f32 %v6554_v0, %v6489_v63  ;;  %v5637_v0 = vld [vmem:[%s7266_s0 + $0x388] ss:$72 sps:$4 sm:$0xff]  }
 0x141   :  { %v2737_v56 = vadd.f32 %v4551_v2, %v2601_v37  ;;  %v6735_v57 = vadd.f32 %v4639_v38, %v2729_v15  ;;  %v4554_v60 = vadd.f32 %v4553_v53, %v4552_v42  ;;  %v4642_v61 = vadd.f32 %v4641_v55, %v4640_v46  ;;  %5185 = vmatprep.subr.bf16.mxu0 %v5674_v32  ;;  %v5638_v46 = vld [vmem:[%s7266_s0 + $0x300] ss:$72 sps:$4 sm:$0xff]  }
 0x142   :  { %3287 = vmatmul.mubr.bf16.gmra.mrb[144].mxu1 %v5618_v34  ;;  %3415 = vmatmul.mubr.bf16.gmra.mrb[144].mxu0 %v5619_v36  ;;  %v2609_v15 = vadd.f32 %v6549_v54, %v6489_v63 }
 0x143   :  { %v2740_v4 = vadd.f32 %v4554_v60, %v2604_v52  ;;  %v6743_v49 = vadd.f32 %v4642_v61, %v2732_v22  ;;  %3294 = vmatprep.mubr.bf16.mxu1 %v5624_v48  ;;  %3422 = vmatprep.mubr.bf16.mxu0 %v5626_v51  ;;  %v5632_v22 = vld [vmem:[%s7266_s0 + $0x38c] ss:$72 sps:$4 sm:$0xff]   ;;  %v2617_v48 = vadd.f32 %v6565_v14, %v6489_v63 }
 0x144   :  { %5186 = vmatpush3.bf16.msra.mxu0 %v5679_v31  ;;  %5093 = vmatprep.subr.bf16.mxu1 %v5687_v43  ;;  %v5640_v31 = vld [vmem:[%s7266_s0 + $0x41c] ss:$72 sps:$4 sm:$0xff]  }
 0x145   :  { %v4555_v8 = vpop.f32.mrb[40].mxu1  ;;  %v4643_v9 = vpop.f32.mrb[40].mxu0  ;;  %5094 = vmatpush3.bf16.msra.mxu1 %v5688_v39  ;;  %5187 = vmatprep.subr.bf16.mxu0 %v5689_v62  ;;  %v5642_v43 = vld [vmem:[%s7266_s0 + $0x394] ss:$72 sps:$4 sm:$0xff]  }
 0x146   :  { %v4556_v10 = vpop.f32.mrb[41].mxu1  ;;  %v4644_v11 = vpop.f32.mrb[41].mxu0 }
 0x147   :  { %v4557_v17 = vadd.f32 %v4556_v10, %v4555_v8  ;;  %v4645_v18 = vadd.f32 %v4644_v11, %v4643_v9  ;;  %v4558_v20 = vpop.f32.mrb[42].mxu1  ;;  %v4646_v19 = vpop.f32.mrb[42].mxu0 }
 0x148   :  { %v4559_v29 = vpop.f32.mrb[43].mxu1  ;;  %v4647_v30 = vpop.f32.mrb[43].mxu0  ;;  %5188 = vmatpush3.bf16.msra.mxu0 %v5690_v7 }
 0x149   :  { %v2745_v32 = vadd.f32 %v4557_v17, %v2609_v15  ;;  %v6764_v54 = vadd.f32 %v4645_v18, %v2737_v56  ;;  %v4560_v58 = vadd.f32 %v4559_v29, %v4558_v20  ;;  %v4648_v33 = vadd.f32 %v4647_v30, %v4646_v19 }
 0x14a   :  { %3295 = vmatmul.mubr.bf16.gmra.mrb[148].mxu1 %v5628_v13  ;;  %3423 = vmatmul.mubr.bf16.gmra.mrb[148].mxu0 %v5629_v12  ;;  %v2620_v56 = vadd.f32 %v6576_v26, %v6489_v63  ;;  %v5644_v26 = vld [vmem:[%s7266_s0 + $0x418] ss:$72 sps:$4 sm:$0xff]   ;;  %v2625_v15 = vadd.f32 %v6598_v41, %v6489_v63 }
 0x14b   :  { %v2748_v34 = vadd.f32 %v4560_v58, %v2612_v28  ;;  %v6766_v36 = vadd.f32 %v4648_v33, %v2740_v4  ;;  %3302 = vmatprep.mubr.bf16.mxu1 %v5632_v22  ;;  %3430 = vmatprep.mubr.bf16.mxu0 %v5634_v25  ;;  %v5645_v12 = vld [vmem:[%s7266_s0 + $0x390] ss:$72 sps:$4 sm:$0xff]   ;;  %v5650_v22 = vld [vmem:[%s7266_s0 + $0x4ac] ss:$72 sps:$4 sm:$0xff]   ;;  %v2628_v28 = vadd.f32 %v6614_v59, %v6489_v63 }
 0x14c   :  { %v5652_v25 = vld [vmem:[%s7266_s0 + $0x424] ss:$72 sps:$4 sm:$0xff]   ;;  %v5654_v59 = vld [vmem:[%s7266_s0 + $0x4a8] ss:$72 sps:$4 sm:$0xff]  }
 0x14d   :  { %v4561_v37 = vpop.f32.mrb[44].mxu1  ;;  %v4649_v2 = vpop.f32.mrb[44].mxu0 }
 0x14e   :  { %v4562_v38 = vpop.f32.mrb[45].mxu1  ;;  %v4650_v42 = vpop.f32.mrb[45].mxu0 }
 0x14f   :  { %v4563_v51 = vadd.f32 %v4562_v38, %v4561_v37  ;;  %v4651_v52 = vadd.f32 %v4650_v42, %v4649_v2  ;;  %v4564_v53 = vpop.f32.mrb[46].mxu1  ;;  %v4652_v55 = vpop.f32.mrb[46].mxu0 }
 0x150   :  { %v4565_v60 = vpop.f32.mrb[47].mxu1  ;;  %v4653_v61 = vpop.f32.mrb[47].mxu0 }
 0x151   :  { %v2753_v39 = vadd.f32 %v4563_v51, %v2617_v48  ;;  %v6784_v62 = vadd.f32 %v4651_v52, %v2745_v32  ;;  %v4566_v14 = vadd.f32 %v4565_v60, %v4564_v53  ;;  %v4654_v4 = vadd.f32 %v4653_v61, %v4652_v55 }
 0x152   :  { %3303 = vmatmul.mubr.bf16.gmra.mrb[152].mxu1 %v5637_v0  ;;  %3431 = vmatmul.mubr.bf16.gmra.mrb[152].mxu0 %v5638_v46  ;;  %v5655_v46 = vld [vmem:[%s7266_s0 + $0x420] ss:$72 sps:$4 sm:$0xff]   ;;  %v2633_v48 = vadd.f32 %v6466_v45, %v6489_v63 }
 0x153   :  { %v2756_v7 = vadd.f32 %v4566_v14, %v2620_v56  ;;  %v6786_v8 = vadd.f32 %v4654_v4, %v2748_v34  ;;  %3310 = vmatprep.mubr.bf16.mxu1 %v5640_v31  ;;  %3438 = vmatprep.mubr.bf16.mxu0 %v5642_v43  ;;  %v5656_v31 = vld [vmem:[%s7266_s0 + $0x53c] ss:$72 sps:$4 sm:$0xff]   ;;  %v2636_v56 = vadd.f32 %v6470_v50, %v6489_v63  ;;  %v5661_v50 = vld [vmem:[%s7266_s0 + $0x538] ss:$72 sps:$4 sm:$0xff]  }
 0x154   :  { %v5658_v43 = vld [vmem:[%s7266_s0 + $0x4b4] ss:$72 sps:$4 sm:$0xff]   ;;  %v5662_v63 = vld [vmem:[%s7266_s0 + $0x4b0] ss:$72 sps:$4 sm:$0xff]  }
 0x155   :  { %v4567_v9 = vpop.f32.mrb[48].mxu1  ;;  %v4655_v10 = vpop.f32.mrb[48].mxu0 }
 0x156   :  { %v4568_v11 = vpop.f32.mrb[49].mxu1  ;;  %v4656_v13 = vpop.f32.mrb[49].mxu0 }
 0x157   :  { %v4569_v17 = vadd.f32 %v4568_v11, %v4567_v9  ;;  %v4657_v18 = vadd.f32 %v4656_v13, %v4655_v10  ;;  %v4570_v20 = vpop.f32.mrb[50].mxu1  ;;  %v4658_v19 = vpop.f32.mrb[50].mxu0 }
 0x158   :  { %v4571_v29 = vpop.f32.mrb[51].mxu1  ;;  %v4659_v30 = vpop.f32.mrb[51].mxu0 }
 0x159   :  { %v2761_v32 = vadd.f32 %v4569_v17, %v2625_v15  ;;  %v6804_v58 = vadd.f32 %v4657_v18, %v2753_v39  ;;  %v4572_v41 = vadd.f32 %v4571_v29, %v4570_v20  ;;  %v4660_v33 = vadd.f32 %v4659_v30, %v4658_v19  ;;  %v5666_v20 = vld [vmem:[%s7266_s0 + $0x5cc] ss:$72 sps:$4 sm:$0xff]  }
 0x15a   :  { %3311 = vmatmul.mubr.bf16.gmra.mrb[156].mxu1 %v5644_v26  ;;  %3439 = vmatmul.mubr.bf16.gmra.mrb[156].mxu0 %v5645_v12  ;;  %v5668_v19 = vld [vmem:[%s7266_s0 + $0x544] ss:$72 sps:$4 sm:$0xff]  }
 0x15b   :  { %v2764_v34 = vadd.f32 %v4572_v41, %v2628_v28  ;;  %v6806_v37 = vadd.f32 %v4660_v33, %v2756_v7  ;;  %3318 = vmatprep.mubr.bf16.mxu1 %v5650_v22  ;;  %3446 = vmatprep.mubr.bf16.mxu0 %v5652_v25 }
 0x15d   :  { %v4573_v2 = vpop.f32.mrb[52].mxu1  ;;  %v4661_v38 = vpop.f32.mrb[52].mxu0 }
 0x15e   :  { %v4574_v42 = vpop.f32.mrb[53].mxu1  ;;  %v4662_v0 = vpop.f32.mrb[53].mxu0 }
 0x15f   :  { %v4575_v51 = vadd.f32 %v4574_v42, %v4573_v2  ;;  %v4663_v52 = vadd.f32 %v4662_v0, %v4661_v38  ;;  %v4576_v53 = vpop.f32.mrb[54].mxu1  ;;  %v4664_v55 = vpop.f32.mrb[54].mxu0  ;;  %v5671_v0 = vld [vmem:[%s7266_s0 + $0x540] ss:$72 sps:$4 sm:$0xff]  }
 0x160   :  { %v4577_v60 = vpop.f32.mrb[55].mxu1  ;;  %v4665_v61 = vpop.f32.mrb[55].mxu0 }
 0x161   :  { %v2769_v39 = vadd.f32 %v4575_v51, %v2633_v48  ;;  %v6824_v14 = vadd.f32 %v4663_v52, %v2761_v32  ;;  %v4578_v45 = vadd.f32 %v4577_v60, %v4576_v53  ;;  %v4666_v4 = vadd.f32 %v4665_v61, %v4664_v55  ;;  %v5675_v51 = vld [vmem:[%s7266_s0 + $0x65c] ss:$72 sps:$4 sm:$0xff]  }
 0x162   :  { %3319 = vmatmul.mubr.bf16.gmra.mrb[160].mxu1 %v5654_v59  ;;  %3447 = vmatmul.mubr.bf16.gmra.mrb[160].mxu0 %v5655_v46  ;;  %v5677_v52 = vld [vmem:[%s7266_s0 + $0x5d4] ss:$72 sps:$4 sm:$0xff]  }
 0x163   :  { %v2772_v7 = vadd.f32 %v4578_v45, %v2636_v56  ;;  %v6826_v9 = vadd.f32 %v4666_v4, %v2764_v34  ;;  %3326 = vmatprep.mubr.bf16.mxu1 %v5656_v31  ;;  %3454 = vmatprep.mubr.bf16.mxu0 %v5658_v43  ;;  %v236_v45 = vld [vmem:[%s7266_s0 + $0x6e8] sm:$0xff] }
 0x165   :  { %v4579_v10 = vpop.f32.mrb[56].mxu1  ;;  %v4667_v11 = vpop.f32.mrb[56].mxu0 }
 0x166   :  { %v4580_v13 = vpop.f32.mrb[57].mxu1  ;;  %v4668_v26 = vpop.f32.mrb[57].mxu0 }
 0x167   :  { %v4581_v12 = vadd.f32 %v4580_v13, %v4579_v10  ;;  %v4669_v15 = vadd.f32 %v4668_v26, %v4667_v11  ;;  %v4582_v17 = vpop.f32.mrb[58].mxu1  ;;  %v4670_v18 = vpop.f32.mrb[58].mxu0  ;;  %v5680_v11 = vld [vmem:[%s7266_s0 + $0x658] ss:$72 sps:$4 sm:$0xff]  }
 0x168   :  { %v4583_v22 = vpop.f32.mrb[59].mxu1  ;;  %v4671_v25 = vpop.f32.mrb[59].mxu0 }
 0x169   :  { %v2777_v28 = vadd.f32 %v4581_v12, %v6494_v3  ;;  %v6841_v29 = vadd.f32 %v4669_v15, %v2769_v39  ;;  %v4584_v30 = vadd.f32 %v4583_v22, %v4582_v17  ;;  %v4672_v32 = vadd.f32 %v4671_v25, %v4670_v18  ;;  %v5670_v3 = vld [vmem:[%s7266_s0 + $0x5c8] ss:$72 sps:$4 sm:$0xff]   ;;  %v5683_v15 = vld [vmem:[%s7266_s0 + $0x664] ss:$72 sps:$4 sm:$0xff]  }
 0x16a   :  { %3327 = vmatmul.mubr.bf16.gmra.mrb[164].mxu1 %v5661_v50  ;;  %3455 = vmatmul.mubr.bf16.gmra.mrb[164].mxu0 %v5662_v63  ;;  %v4149_v12 = vcombine.high %v236_v45, %v236_v45 }
 0x16b   :  { %v2780_v41 = vadd.f32 %v4584_v30, %v6497_v5  ;;  %v6844_v33 = vadd.f32 %v4672_v32, %v2772_v7  ;;  %3334 = vmatprep.mubr.bf16.mxu1 %v5666_v20  ;;  %3462 = vmatprep.mubr.bf16.mxu0 %v5668_v19  ;;  %v237_v32 = vld [vmem:[%s7266_s0 + $0x6f0] sm:$0xff] }
 0x16d   :  { %v4585_v34 = vpop.f32.mrb[60].mxu1  ;;  %v4673_v2 = vpop.f32.mrb[60].mxu0 }
 0x16e   :  { %v4586_v38 = vpop.f32.mrb[61].mxu1  ;;  %v4674_v42 = vpop.f32.mrb[61].mxu0 }
 0x16f   :  { %v4587_v59 = vadd.f32 %v4586_v38, %v4585_v34  ;;  %v4675_v46 = vadd.f32 %v4674_v42, %v4673_v2  ;;  %v4588_v48 = vpop.f32.mrb[62].mxu1  ;;  %v4676_v5 = vpop.f32.mrb[62].mxu0  ;;  %v4148_v38 = vcombine.low %v236_v45, %v236_v45  ;;  %v5686_v42 = vld [vmem:[%s7266_s0 + $0x660] ss:$72 sps:$4 sm:$0xff]  }
 0x170   :  { %v4589_v53 = vpop.f32.mrb[63].mxu1  ;;  %v4677_v55 = vpop.f32.mrb[63].mxu0 }
 0x171   :  { %v2785_v31 = vadd.f32 %v4587_v59, %v6516_v21  ;;  %v6859_v43 = vadd.f32 %v4675_v46, %v2777_v28  ;;  %v4590_v56 = vadd.f32 %v4589_v53, %v4588_v48  ;;  %v4678_v60 = vadd.f32 %v4677_v55, %v4676_v5  ;;  %v5694_v48 = vld [vmem:[%s7266_s0 + $0x3c] ss:$72 sps:$4 sm:$0xff]  }
 0x172   :  { %3335 = vmatmul.mubr.bf16.gmra.mrb[168].mxu1 %v5670_v3  ;;  %3463 = vmatmul.mubr.bf16.gmra.mrb[168].mxu0 %v5671_v0  ;;  %v4151_v46 = vcombine.high %v237_v32, %v237_v32 }
 0x173   :  { %v2788_v61 = vadd.f32 %v4590_v56, %v6522_v24  ;;  %v6862_v39 = vadd.f32 %v4678_v60, %v2780_v41  ;;  %3342 = vmatprep.mubr.bf16.mxu1 %v5675_v51  ;;  %3470 = vmatprep.mubr.bf16.mxu0 %v5677_v52  ;;  %v5681_v24 = vld [vmem:[%s7266_s0 + $0x5d0] ss:$72 sps:$4 sm:$0xff]  }
 0x175   :  { %v4591_v4 = vpop.f32.mrb[64].mxu1  ;;  %v4679_v7 = vpop.f32.mrb[64].mxu0 }
 0x176   :  { %v4592_v10 = vpop.f32.mrb[65].mxu1  ;;  %v4680_v21 = vpop.f32.mrb[65].mxu0 }
 0x177   :  { %v4593_v13 = vadd.f32 %v4592_v10, %v4591_v4  ;;  %v4681_v26 = vadd.f32 %v4680_v21, %v4679_v7  ;;  %v4594_v50 = vpop.f32.mrb[66].mxu1  ;;  %v4682_v63 = vpop.f32.mrb[66].mxu0  ;;  %v4150_v10 = vcombine.low %v237_v32, %v237_v32  ;;  %v5698_v32 = vld [vmem:[%s7266_s0 + $0x40] ss:$72 sps:$4 sm:$0xff]  }
 0x178   :  { %v4595_v17 = vpop.f32.mrb[67].mxu1  ;;  %v4683_v18 = vpop.f32.mrb[67].mxu0 }
 0x179   :  { %v2793_v20 = vadd.f32 %v4593_v13, %v6538_v40  ;;  %v6877_v19 = vadd.f32 %v4681_v26, %v2785_v31  ;;  %v4596_v22 = vadd.f32 %v4595_v17, %v4594_v50  ;;  %v4684_v25 = vadd.f32 %v4683_v18, %v4682_v63  ;;  %v5700_v26 = vld [vmem:[%s7266_s0 + $0x44] ss:$72 sps:$4 sm:$0xff]  }
 0x17a   :  { %3343 = vmatmul.mubr.bf16.gmra.mrb[172].mxu1 %v5680_v11  ;;  %3471 = vmatmul.mubr.bf16.gmra.mrb[172].mxu0 %v5681_v24 }
 0x17b   :  { %v2796_v28 = vadd.f32 %v4596_v22, %v6544_v44  ;;  %v6880_v30 = vadd.f32 %v4684_v25, %v2788_v61  ;;  %3350 = vmatprep.mubr.bf16.mxu1 %v4149_v12  ;;  %3478 = vmatprep.mubr.bf16.mxu0 %v5683_v15 }
 0x17d   :  { %v4597_v41 = vpop.f32.mrb[68].mxu1  ;;  %v4685_v34 = vpop.f32.mrb[68].mxu0 }
 0x17e   :  { %v4598_v2 = vpop.f32.mrb[69].mxu1  ;;  %v4686_v40 = vpop.f32.mrb[69].mxu0 }
 0x17f   :  { %v4599_v3 = vadd.f32 %v4598_v2, %v4597_v41  ;;  %v4687_v0 = vadd.f32 %v4686_v40, %v4685_v34  ;;  %v4600_v44 = vpop.f32.mrb[70].mxu1  ;;  %v4688_v59 = vpop.f32.mrb[70].mxu0 }
 0x180   :  { %v4601_v5 = vpop.f32.mrb[71].mxu1  ;;  %v4689_v51 = vpop.f32.mrb[71].mxu0 }
 0x181   :  { %v2801_v52 = vadd.f32 %v4599_v3, %v6557_v1  ;;  %v6892_v53 = vadd.f32 %v4687_v0, %v2793_v20  ;;  %v4602_v55 = vadd.f32 %v4601_v5, %v4600_v44  ;;  %v4690_v31 = vadd.f32 %v4689_v51, %v4688_v59  ;;  %v5692_v1 = vld [vmem:[%s7266_s0 + $0x38] ss:$72 sps:$4 sm:$0xff]  }
 0x182   :  { %3351 = vmatmul.mubr.bf16.gmra.mrb[176].mxu1 %v4148_v38  ;;  %3479 = vmatmul.mubr.bf16.gmra.mrb[176].mxu0 %v5686_v42  ;;  %v5702_v38 = vld [vmem:[%s7266_s0 + $0x15c] ss:$72 sps:$4 sm:$0xff]  }
 0x183   :  { %v2804_v56 = vadd.f32 %v4602_v55, %v6560_v6  ;;  %v6895_v60 = vadd.f32 %v4690_v31, %v2796_v28  ;;  %3486 = vmatprep.mubr.bf16.mxu0 %v4151_v46  ;;  %3526 = vmatprep.mubr.bf16.mxu1 %v5694_v48  ;;  %v5696_v6 = vld [vmem:[%s7266_s0 + $0xcc] ss:$72 sps:$4 sm:$0xff]   ;;  %v5706_v31 = vld [vmem:[%s7266_s0 + $0x158] ss:$72 sps:$4 sm:$0xff]  }
 0x184   :  { %v5704_v42 = vld [vmem:[%s7266_s0 + $0xd4] ss:$72 sps:$4 sm:$0xff]  }
 0x185   :  { %v4603_v61 = vpop.f32.mrb[72].mxu1  ;;  %v4691_v45 = vpop.f32.mrb[72].mxu0 }
 0x186   :  { %v4604_v4 = vpop.f32.mrb[73].mxu1  ;;  %v4692_v7 = vpop.f32.mrb[73].mxu0 }
 0x187   :  { %v4605_v21 = vadd.f32 %v4604_v4, %v4603_v61  ;;  %v4693_v11 = vadd.f32 %v4692_v7, %v4691_v45  ;;  %v4694_v24 = vpop.f32.mrb[74].mxu0  ;;  %v4606_v13 = vpop.f32.mrb[74].mxu1  ;;  %v5710_v7 = vld [vmem:[%s7266_s0 + $0x164] ss:$72 sps:$4 sm:$0xff]  }
 0x188   :  { %v4695_v50 = vpop.f32.mrb[75].mxu0  ;;  %v4607_v63 = vpop.f32.mrb[75].mxu1 }
 0x189   :  { %v2809_v12 = vadd.f32 %v4605_v21, %v6579_v27  ;;  %v6907_v15 = vadd.f32 %v4693_v11, %v2801_v52  ;;  %v4696_v17 = vadd.f32 %v4695_v50, %v4694_v24  ;;  %v5701_v27 = vld [vmem:[%s7266_s0 + $0xc8] ss:$72 sps:$4 sm:$0xff]  }
 0x18a   :  { %3487 = vmatmul.mubr.bf16.gmra.mrb[180].mxu0 %v4150_v10  ;;  %3527 = vmatmul.mubr.bf16.vlgmr.msra.gmra.mrb[180].mxu1 %v5692_v1 }
 0x18b   :  { %v6909_v18 = vadd.f32 %v4696_v17, %v2804_v56  ;;  %3534 = vmatprep.mubr.bf16.mxu1 %v5696_v6  ;;  %3662 = vmatprep.mubr.bf16.mxu0 %v5700_v26  ;;  %v5707_v56 = vld [vmem:[%s7266_s0 + $0xd0] ss:$72 sps:$4 sm:$0xff]  }
 0x18d   :  { %v4697_v20 = vpop.f32.mrb[76].mxu0  ;;  %v4719_v22 = vpop.f32.mrb[76].mxu1 }
 0x18e   :  { %v4698_v25 = vpop.f32.mrb[77].mxu0  ;;  %v4720_v28 = vpop.f32.mrb[77].mxu1 }
 0x18f   :  { %v4699_v41 = vadd.f32 %v4698_v25, %v4697_v20  ;;  %v4721_v34 = vadd.f32 %v4720_v28, %v4719_v22  ;;  %v4700_v2 = vpop.f32.mrb[78].mxu0  ;;  %v4722_v40 = vpop.f32.mrb[78].mxu1  ;;  %v5713_v20 = vld [vmem:[%s7266_s0 + $0x160] ss:$72 sps:$4 sm:$0xff]  }
 0x190   :  { %v4701_v3 = vpop.f32.mrb[79].mxu0  ;;  %v4723_v0 = vpop.f32.mrb[79].mxu1 }
 0x191   :  { %v6923_v44 = vadd.f32 %v4699_v41, %v2809_v12  ;;  %v2985_v59 = vadd.f32 %v4721_v34, %v6653_v35  ;;  %v4724_v46 = vadd.f32 %v4723_v0, %v4722_v40 }
 0x192   :  { %3535 = vmatmul.mubr.bf16.gmra.mrb[184].mxu1 %v5701_v27  ;;  %3663 = vmatmul.mubr.bf16.vlgmr.msra.gmra.mrb[184].mxu0 %v5698_v32  ;;  %v5714_v32 = vld [vmem:[%s7266_s0 + $0x27c] ss:$72 sps:$4 sm:$0xff]  }
 0x193   :  { %v2988_v48 = vadd.f32 %v4724_v46, %v6664_v47  ;;  %3542 = vmatprep.mubr.bf16.mxu1 %v5702_v38  ;;  %3670 = vmatprep.mubr.bf16.mxu0 %v5704_v42  ;;  %v5708_v47 = vld [vmem:[%s7266_s0 + $0x1ec] ss:$72 sps:$4 sm:$0xff]  }
 0x194   :  { %v5716_v27 = vld [vmem:[%s7266_s0 + $0x1f4] ss:$72 sps:$4 sm:$0xff]  }
 0x195   :  { %v4725_v5 = vpop.f32.mrb[80].mxu1  ;;  %v4813_v51 = vpop.f32.mrb[80].mxu0 }
 0x196   :  { %v4726_v52 = vpop.f32.mrb[81].mxu1  ;;  %v4814_v55 = vpop.f32.mrb[81].mxu0 }
 0x197   :  { %v4727_v35 = vadd.f32 %v4726_v52, %v4725_v5  ;;  %v4815_v61 = vadd.f32 %v4814_v55, %v4813_v51  ;;  %v4728_v45 = vpop.f32.mrb[82].mxu1  ;;  %v4816_v4 = vpop.f32.mrb[82].mxu0  ;;  %v5719_v51 = vld [vmem:[%s7266_s0 + $0x1f0] ss:$72 sps:$4 sm:$0xff]  }
 0x198   :  { %v4729_v1 = vpop.f32.mrb[83].mxu1  ;;  %v4817_v10 = vpop.f32.mrb[83].mxu0 }
 0x199   :  { %v2993_v21 = vadd.f32 %v4727_v35, %v6694_v16  ;;  %v6940_v11 = vadd.f32 %v4815_v61, %v2985_v59  ;;  %v4730_v24 = vadd.f32 %v4729_v1, %v4728_v45  ;;  %v4818_v13 = vadd.f32 %v4817_v10, %v4816_v4  ;;  %v5712_v16 = vld [vmem:[%s7266_s0 + $0x1e8] ss:$72 sps:$4 sm:$0xff]   ;;  %v5722_v35 = vld [vmem:[%s7266_s0 + $0x284] ss:$72 sps:$4 sm:$0xff]  }
 0x19a   :  { %3543 = vmatmul.mubr.bf16.gmra.mrb[188].mxu1 %v5706_v31  ;;  %3671 = vmatmul.mubr.bf16.gmra.mrb[188].mxu0 %v5707_v56  ;;  %v5720_v56 = vld [vmem:[%s7266_s0 + $0x30c] ss:$72 sps:$4 sm:$0xff]  }
 0x19b   :  { %v2996_v6 = vadd.f32 %v4730_v24, %v6702_v23  ;;  %v6943_v26 = vadd.f32 %v4818_v13, %v2988_v48  ;;  %3550 = vmatprep.mubr.bf16.mxu1 %v5708_v47  ;;  %3678 = vmatprep.mubr.bf16.mxu0 %v5710_v7 }
 0x19d   :  { %v4731_v50 = vpop.f32.mrb[84].mxu1  ;;  %v4819_v63 = vpop.f32.mrb[84].mxu0 }
 0x19e   :  { %v4732_v12 = vpop.f32.mrb[85].mxu1  ;;  %v4820_v17 = vpop.f32.mrb[85].mxu0 }
 0x19f   :  { %v4733_v22 = vadd.f32 %v4732_v12, %v4731_v50  ;;  %v4821_v25 = vadd.f32 %v4820_v17, %v4819_v63  ;;  %v4734_v28 = vpop.f32.mrb[86].mxu1  ;;  %v4822_v23 = vpop.f32.mrb[86].mxu0  ;;  %v5725_v63 = vld [vmem:[%s7266_s0 + $0x280] ss:$72 sps:$4 sm:$0xff]  }
 0x1a0   :  { %v4735_v41 = vpop.f32.mrb[87].mxu1  ;;  %v4823_v34 = vpop.f32.mrb[87].mxu0 }
 0x1a1   :  { %v3001_v2 = vadd.f32 %v4733_v22, %v6735_v57  ;;  %v6958_v40 = vadd.f32 %v4821_v25, %v2993_v21  ;;  %v4736_v38 = vadd.f32 %v4735_v41, %v4734_v28  ;;  %v4824_v42 = vadd.f32 %v4823_v34, %v4822_v23  ;;  %v5718_v57 = vld [vmem:[%s7266_s0 + $0x278] ss:$72 sps:$4 sm:$0xff]   ;;  %v5728_v22 = vld [vmem:[%s7266_s0 + $0x314] ss:$72 sps:$4 sm:$0xff]  }
 0x1a2   :  { %3551 = vmatmul.mubr.bf16.gmra.mrb[192].mxu1 %v5712_v16  ;;  %3679 = vmatmul.mubr.bf16.gmra.mrb[192].mxu0 %v5713_v20  ;;  %v5726_v20 = vld [vmem:[%s7266_s0 + $0x39c] ss:$72 sps:$4 sm:$0xff]  }
 0x1a3   :  { %v3004_v3 = vadd.f32 %v4736_v38, %v6743_v49  ;;  %v6961_v0 = vadd.f32 %v4824_v42, %v2996_v6  ;;  %3558 = vmatprep.mubr.bf16.mxu1 %v5714_v32  ;;  %3686 = vmatprep.mubr.bf16.mxu0 %v5716_v27 }
 0x1a5   :  { %v4737_v59 = vpop.f32.mrb[88].mxu1  ;;  %v4825_v46 = vpop.f32.mrb[88].mxu0 }
 0x1a6   :  { %v4738_v48 = vpop.f32.mrb[89].mxu1  ;;  %v4826_v5 = vpop.f32.mrb[89].mxu0 }
 0x1a7   :  { %v4739_v52 = vadd.f32 %v4738_v48, %v4737_v59  ;;  %v4827_v55 = vadd.f32 %v4826_v5, %v4825_v46  ;;  %v4740_v31 = vpop.f32.mrb[90].mxu1  ;;  %v4828_v49 = vpop.f32.mrb[90].mxu0  ;;  %v5731_v46 = vld [vmem:[%s7266_s0 + $0x310] ss:$72 sps:$4 sm:$0xff]  }
 0x1a8   :  { %v4741_v61 = vpop.f32.mrb[91].mxu1  ;;  %v4829_v45 = vpop.f32.mrb[91].mxu0 }
 0x1a9   :  { %v3009_v4 = vadd.f32 %v4739_v52, %v6764_v54  ;;  %v6976_v47 = vadd.f32 %v4827_v55, %v3001_v2  ;;  %v4742_v7 = vadd.f32 %v4741_v61, %v4740_v31  ;;  %v4830_v1 = vadd.f32 %v4829_v45, %v4828_v49  ;;  %v5724_v54 = vld [vmem:[%s7266_s0 + $0x308] ss:$72 sps:$4 sm:$0xff]   ;;  %v5734_v52 = vld [vmem:[%s7266_s0 + $0x3a4] ss:$72 sps:$4 sm:$0xff]  }
 0x1aa   :  { %3559 = vmatmul.mubr.bf16.gmra.mrb[196].mxu1 %v5718_v57  ;;  %3687 = vmatmul.mubr.bf16.gmra.mrb[196].mxu0 %v5719_v51  ;;  %v5732_v51 = vld [vmem:[%s7266_s0 + $0x42c] ss:$72 sps:$4 sm:$0xff]  }
 0x1ab   :  { %v3012_v10 = vadd.f32 %v4742_v7, %v6766_v36  ;;  %v6979_v21 = vadd.f32 %v4830_v1, %v3004_v3  ;;  %3566 = vmatprep.mubr.bf16.mxu1 %v5720_v56  ;;  %3694 = vmatprep.mubr.bf16.mxu0 %v5722_v35 }
 0x1ad   :  { %v4743_v24 = vpop.f32.mrb[92].mxu1  ;;  %v4831_v13 = vpop.f32.mrb[92].mxu0 }
 0x1ae   :  { %v4744_v6 = vpop.f32.mrb[93].mxu1  ;;  %v4832_v50 = vpop.f32.mrb[93].mxu0 }
 0x1af   :  { %v4745_v12 = vadd.f32 %v4744_v6, %v4743_v24  ;;  %v4833_v17 = vadd.f32 %v4832_v50, %v4831_v13  ;;  %v4746_v16 = vpop.f32.mrb[94].mxu1  ;;  %v4834_v36 = vpop.f32.mrb[94].mxu0  ;;  %v5737_v13 = vld [vmem:[%s7266_s0 + $0x3a0] ss:$72 sps:$4 sm:$0xff]  }
 0x1b0   :  { %v4747_v25 = vpop.f32.mrb[95].mxu1  ;;  %v4835_v28 = vpop.f32.mrb[95].mxu0 }
 0x1b1   :  { %v3017_v23 = vadd.f32 %v4745_v12, %v6784_v62  ;;  %v6994_v32 = vadd.f32 %v4833_v17, %v3009_v4  ;;  %v4748_v27 = vadd.f32 %v4747_v25, %v4746_v16  ;;  %v4836_v41 = vadd.f32 %v4835_v28, %v4834_v36  ;;  %v5730_v62 = vld [vmem:[%s7266_s0 + $0x398] ss:$72 sps:$4 sm:$0xff]   ;;  %v5740_v12 = vld [vmem:[%s7266_s0 + $0x434] ss:$72 sps:$4 sm:$0xff]  }
 0x1b2   :  { %3567 = vmatmul.mubr.bf16.gmra.mrb[200].mxu1 %v5724_v54  ;;  %3695 = vmatmul.mubr.bf16.gmra.mrb[200].mxu0 %v5725_v63  ;;  %v5738_v63 = vld [vmem:[%s7266_s0 + $0x4bc] ss:$72 sps:$4 sm:$0xff]  }
 0x1b3   :  { %v3020_v34 = vadd.f32 %v4748_v27, %v6786_v8  ;;  %v6997_v2 = vadd.f32 %v4836_v41, %v3012_v10  ;;  %3574 = vmatprep.mubr.bf16.mxu1 %v5726_v20  ;;  %3702 = vmatprep.mubr.bf16.mxu0 %v5728_v22 }
 0x1b5   :  { %v4749_v38 = vpop.f32.mrb[96].mxu1  ;;  %v4837_v42 = vpop.f32.mrb[96].mxu0 }
 0x1b6   :  { %v4750_v3 = vpop.f32.mrb[97].mxu1  ;;  %v4838_v59 = vpop.f32.mrb[97].mxu0 }
 0x1b7   :  { %v4751_v48 = vadd.f32 %v4750_v3, %v4749_v38  ;;  %v4839_v5 = vadd.f32 %v4838_v59, %v4837_v42  ;;  %v4752_v57 = vpop.f32.mrb[98].mxu1  ;;  %v4840_v8 = vpop.f32.mrb[98].mxu0  ;;  %v5743_v42 = vld [vmem:[%s7266_s0 + $0x430] ss:$72 sps:$4 sm:$0xff]  }
 0x1b8   :  { %v4753_v55 = vpop.f32.mrb[99].mxu1  ;;  %v4841_v31 = vpop.f32.mrb[99].mxu0 }
 0x1b9   :  { %v3025_v49 = vadd.f32 %v4751_v48, %v6804_v58  ;;  %v7012_v56 = vadd.f32 %v4839_v5, %v3017_v23  ;;  %v4754_v35 = vadd.f32 %v4753_v55, %v4752_v57  ;;  %v4842_v61 = vadd.f32 %v4841_v31, %v4840_v8  ;;  %v5736_v58 = vld [vmem:[%s7266_s0 + $0x428] ss:$72 sps:$4 sm:$0xff]   ;;  %v5746_v48 = vld [vmem:[%s7266_s0 + $0x4c4] ss:$72 sps:$4 sm:$0xff]  }
 0x1ba   :  { %3575 = vmatmul.mubr.bf16.gmra.mrb[204].mxu1 %v5730_v62  ;;  %3703 = vmatmul.mubr.bf16.gmra.mrb[204].mxu0 %v5731_v46  ;;  %v5744_v46 = vld [vmem:[%s7266_s0 + $0x54c] ss:$72 sps:$4 sm:$0xff]  }
 0x1bb   :  { %v3028_v45 = vadd.f32 %v4754_v35, %v6806_v37  ;;  %v7015_v4 = vadd.f32 %v4842_v61, %v3020_v34  ;;  %3582 = vmatprep.mubr.bf16.mxu1 %v5732_v51  ;;  %3710 = vmatprep.mubr.bf16.mxu0 %v5734_v52 }
 0x1bd   :  { %v4755_v7 = vpop.f32.mrb[100].mxu1  ;;  %v4843_v1 = vpop.f32.mrb[100].mxu0 }
 0x1be   :  { %v4756_v10 = vpop.f32.mrb[101].mxu1  ;;  %v4844_v24 = vpop.f32.mrb[101].mxu0 }
 0x1bf   :  { %v4757_v6 = vadd.f32 %v4756_v10, %v4755_v7  ;;  %v4845_v50 = vadd.f32 %v4844_v24, %v4843_v1  ;;  %v4758_v54 = vpop.f32.mrb[102].mxu1  ;;  %v4846_v37 = vpop.f32.mrb[102].mxu0  ;;  %v5749_v1 = vld [vmem:[%s7266_s0 + $0x4c0] ss:$72 sps:$4 sm:$0xff]  }
 0x1c0   :  { %v4759_v17 = vpop.f32.mrb[103].mxu1  ;;  %v4847_v16 = vpop.f32.mrb[103].mxu0 }
 0x1c1   :  { %v3033_v36 = vadd.f32 %v4757_v6, %v6824_v14  ;;  %v7030_v20 = vadd.f32 %v4845_v50, %v3025_v49  ;;  %v4760_v22 = vadd.f32 %v4759_v17, %v4758_v54  ;;  %v4848_v25 = vadd.f32 %v4847_v16, %v4846_v37  ;;  %v5742_v14 = vld [vmem:[%s7266_s0 + $0x4b8] ss:$72 sps:$4 sm:$0xff]   ;;  %v5752_v6 = vld [vmem:[%s7266_s0 + $0x554] ss:$72 sps:$4 sm:$0xff]  }
 0x1c2   :  { %3583 = vmatmul.mubr.bf16.gmra.mrb[208].mxu1 %v5736_v58  ;;  %3711 = vmatmul.mubr.bf16.gmra.mrb[208].mxu0 %v5737_v13  ;;  %v5750_v13 = vld [vmem:[%s7266_s0 + $0x5dc] ss:$72 sps:$4 sm:$0xff]  }
 0x1c3   :  { %v3036_v28 = vadd.f32 %v4760_v22, %v6826_v9  ;;  %v7033_v23 = vadd.f32 %v4848_v25, %v3028_v45  ;;  %3590 = vmatprep.mubr.bf16.mxu1 %v5738_v63  ;;  %3718 = vmatprep.mubr.bf16.mxu0 %v5740_v12 }
 0x1c5   :  { %v4761_v27 = vpop.f32.mrb[104].mxu1  ;;  %v4849_v41 = vpop.f32.mrb[104].mxu0 }
 0x1c6   :  { %v4762_v34 = vpop.f32.mrb[105].mxu1  ;;  %v4850_v38 = vpop.f32.mrb[105].mxu0 }
 0x1c7   :  { %v4763_v3 = vadd.f32 %v4762_v34, %v4761_v27  ;;  %v4851_v59 = vadd.f32 %v4850_v38, %v4849_v41  ;;  %v4764_v62 = vpop.f32.mrb[106].mxu1  ;;  %v4852_v9 = vpop.f32.mrb[106].mxu0  ;;  %v5755_v41 = vld [vmem:[%s7266_s0 + $0x550] ss:$72 sps:$4 sm:$0xff]  }
 0x1c8   :  { %v4765_v5 = vpop.f32.mrb[107].mxu1  ;;  %v4853_v57 = vpop.f32.mrb[107].mxu0 }
 0x1c9   :  { %v3041_v8 = vadd.f32 %v4763_v3, %v6841_v29  ;;  %v7048_v51 = vadd.f32 %v4851_v59, %v3033_v36  ;;  %v4766_v52 = vadd.f32 %v4765_v5, %v4764_v62  ;;  %v4854_v55 = vadd.f32 %v4853_v57, %v4852_v9  ;;  %v5748_v29 = vld [vmem:[%s7266_s0 + $0x548] ss:$72 sps:$4 sm:$0xff]   ;;  %v5758_v3 = vld [vmem:[%s7266_s0 + $0x5e4] ss:$72 sps:$4 sm:$0xff]  }
 0x1ca   :  { %3591 = vmatmul.mubr.bf16.gmra.mrb[212].mxu1 %v5742_v14  ;;  %3719 = vmatmul.mubr.bf16.gmra.mrb[212].mxu0 %v5743_v42  ;;  %v5756_v42 = vld [vmem:[%s7266_s0 + $0x66c] ss:$72 sps:$4 sm:$0xff]  }
 0x1cb   :  { %v3044_v31 = vadd.f32 %v4766_v52, %v6844_v33  ;;  %v7051_v49 = vadd.f32 %v4854_v55, %v3036_v28  ;;  %3598 = vmatprep.mubr.bf16.mxu1 %v5744_v46  ;;  %3726 = vmatprep.mubr.bf16.mxu0 %v5746_v48  ;;  %v238_v52 = vld [vmem:[%s7266_s0 + $0x6f8] sm:$0xff] }
 0x1cd   :  { %v4767_v35 = vpop.f32.mrb[108].mxu1  ;;  %v4855_v61 = vpop.f32.mrb[108].mxu0 }
 0x1ce   :  { %v4768_v45 = vpop.f32.mrb[109].mxu1  ;;  %v4856_v7 = vpop.f32.mrb[109].mxu0 }
 0x1cf   :  { %v4769_v10 = vadd.f32 %v4768_v45, %v4767_v35  ;;  %v4857_v24 = vadd.f32 %v4856_v7, %v4855_v61  ;;  %v4770_v58 = vpop.f32.mrb[110].mxu1  ;;  %v4858_v33 = vpop.f32.mrb[110].mxu0  ;;  %v5760_v61 = vld [vmem:[%s7266_s0 + $0x668] ss:$72 sps:$4 sm:$0xff]  }
 0x1d0   :  { %v4771_v50 = vpop.f32.mrb[111].mxu1  ;;  %v4859_v54 = vpop.f32.mrb[111].mxu0 }
 0x1d1   :  { %v3049_v37 = vadd.f32 %v4769_v10, %v6859_v43  ;;  %v7066_v63 = vadd.f32 %v4857_v24, %v3041_v8  ;;  %v4772_v12 = vadd.f32 %v4771_v50, %v4770_v58  ;;  %v4860_v17 = vadd.f32 %v4859_v54, %v4858_v33  ;;  %v5754_v43 = vld [vmem:[%s7266_s0 + $0x5d8] ss:$72 sps:$4 sm:$0xff]   ;;  %v5763_v24 = vld [vmem:[%s7266_s0 + $0x674] ss:$72 sps:$4 sm:$0xff]  }
 0x1d2   :  { %3599 = vmatmul.mubr.bf16.gmra.mrb[216].mxu1 %v5748_v29  ;;  %3727 = vmatmul.mubr.bf16.gmra.mrb[216].mxu0 %v5749_v1  ;;  %v4153_v10 = vcombine.high %v238_v52, %v238_v52 }
 0x1d3   :  { %v3052_v16 = vadd.f32 %v4772_v12, %v6862_v39  ;;  %v7069_v36 = vadd.f32 %v4860_v17, %v3044_v31  ;;  %3606 = vmatprep.mubr.bf16.mxu1 %v5750_v13  ;;  %3734 = vmatprep.mubr.bf16.mxu0 %v5752_v6  ;;  %v239_v17 = vld [vmem:[%s7266_s0 + $0x700] sm:$0xff] }
 0x1d5   :  { %v4773_v22 = vpop.f32.mrb[112].mxu1  ;;  %v4861_v25 = vpop.f32.mrb[112].mxu0 }
 0x1d6   :  { %v4774_v28 = vpop.f32.mrb[113].mxu1  ;;  %v4862_v27 = vpop.f32.mrb[113].mxu0 }
 0x1d7   :  { %v4775_v34 = vadd.f32 %v4774_v28, %v4773_v22  ;;  %v4863_v38 = vadd.f32 %v4862_v27, %v4861_v25  ;;  %v4776_v14 = vpop.f32.mrb[114].mxu1  ;;  %v4864_v39 = vpop.f32.mrb[114].mxu0  ;;  %v4152_v28 = vcombine.low %v238_v52, %v238_v52  ;;  %v5766_v27 = vld [vmem:[%s7266_s0 + $0x670] ss:$72 sps:$4 sm:$0xff]  }
 0x1d8   :  { %v4777_v59 = vpop.f32.mrb[115].mxu1  ;;  %v4865_v62 = vpop.f32.mrb[115].mxu0 }
 0x1d9   :  { %v3057_v9 = vadd.f32 %v4775_v34, %v6877_v19  ;;  %v7084_v46 = vadd.f32 %v4863_v38, %v3049_v37  ;;  %v4778_v48 = vadd.f32 %v4777_v59, %v4776_v14  ;;  %v4866_v5 = vadd.f32 %v4865_v62, %v4864_v39 }
 0x1da   :  { %3607 = vmatmul.mubr.bf16.gmra.mrb[220].mxu1 %v5754_v43  ;;  %3735 = vmatmul.mubr.bf16.gmra.mrb[220].mxu0 %v5755_v41  ;;  %v4155_v38 = vcombine.high %v239_v17, %v239_v17 }
 0x1db   :  { %v3060_v57 = vadd.f32 %v4778_v48, %v6880_v30  ;;  %v7087_v8 = vadd.f32 %v4866_v5, %v3052_v16  ;;  %3614 = vmatprep.mubr.bf16.mxu1 %v5756_v42  ;;  %3742 = vmatprep.mubr.bf16.mxu0 %v5758_v3  ;;  %v5761_v30 = vld [vmem:[%s7266_s0 + $0x5e0] ss:$72 sps:$4 sm:$0xff]  }
 0x1dd   :  { %v4779_v55 = vpop.f32.mrb[116].mxu1  ;;  %v4867_v31 = vpop.f32.mrb[116].mxu0 }
 0x1de   :  { %v4780_v35 = vpop.f32.mrb[117].mxu1  ;;  %v4868_v19 = vpop.f32.mrb[117].mxu0 }
 0x1df   :  { %v4781_v45 = vadd.f32 %v4780_v35, %v4779_v55  ;;  %v4869_v7 = vadd.f32 %v4868_v19, %v4867_v31  ;;  %v4782_v29 = vpop.f32.mrb[118].mxu1  ;;  %v4870_v1 = vpop.f32.mrb[118].mxu0  ;;  %v4154_v31 = vcombine.low %v239_v17, %v239_v17 }
 0x1e0   :  { %v4783_v58 = vpop.f32.mrb[119].mxu1  ;;  %v4871_v33 = vpop.f32.mrb[119].mxu0 }
 0x1e1   :  { %v3065_v13 = vadd.f32 %v4781_v45, %v6892_v53  ;;  %v7102_v6 = vadd.f32 %v4869_v7, %v3057_v9  ;;  %v4784_v50 = vadd.f32 %v4783_v58, %v4782_v29  ;;  %v4872_v54 = vadd.f32 %v4871_v33, %v4870_v1 }
 0x1e2   :  { %3615 = vmatmul.mubr.bf16.gmra.mrb[224].mxu1 %v5760_v61  ;;  %3743 = vmatmul.mubr.bf16.gmra.mrb[224].mxu0 %v5761_v30 }
 0x1e3   :  { %v3068_v37 = vadd.f32 %v4784_v50, %v6895_v60  ;;  %v7105_v12 = vadd.f32 %v4872_v54, %v3060_v57  ;;  %3622 = vmatprep.mubr.bf16.mxu1 %v4153_v10  ;;  %3750 = vmatprep.mubr.bf16.mxu0 %v5763_v24 }
 0x1e5   :  { %v4785_v16 = vpop.f32.mrb[120].mxu1  ;;  %v4873_v22 = vpop.f32.mrb[120].mxu0 }
 0x1e6   :  { %v4786_v25 = vpop.f32.mrb[121].mxu1  ;;  %v4874_v53 = vpop.f32.mrb[121].mxu0 }
 0x1e7   :  { %v4787_v43 = vadd.f32 %v4786_v25, %v4785_v16  ;;  %v4875_v41 = vadd.f32 %v4874_v53, %v4873_v22  ;;  %v4788_v60 = vpop.f32.mrb[122].mxu1  ;;  %v4876_v34 = vpop.f32.mrb[122].mxu0 }
 0x1e8   :  { %v4789_v14 = vpop.f32.mrb[123].mxu1  ;;  %v4877_v39 = vpop.f32.mrb[123].mxu0 }
 0x1e9   :  { %v3073_v42 = vadd.f32 %v4787_v43, %v6907_v15  ;;  %v7114_v3 = vadd.f32 %v4875_v41, %v3065_v13  ;;  %v4790_v59 = vadd.f32 %v4789_v14, %v4788_v60  ;;  %v4878_v62 = vadd.f32 %v4877_v39, %v4876_v34 }
 0x1ea   :  { %3623 = vmatmul.mubr.bf16.gmra.mrb[228].mxu1 %v4152_v28  ;;  %3751 = vmatmul.mubr.bf16.gmra.mrb[228].mxu0 %v5766_v27 }
 0x1eb   :  { %v3076_v9 = vadd.f32 %v4790_v59, %v6909_v18  ;;  %v7117_v48 = vadd.f32 %v4878_v62, %v3068_v37  ;;  %3758 = vmatprep.mubr.bf16.mxu0 %v4155_v38 }
 0x1ed   :  { %v4791_v5 = vpop.f32.mrb[124].mxu1  ;;  %v4879_v57 = vpop.f32.mrb[124].mxu0 }
 0x1ee   :  { %v4792_v52 = vpop.f32.mrb[125].mxu1  ;;  %v4880_v55 = vpop.f32.mrb[125].mxu0 }
 0x1ef   :  { %v4793_v35 = vadd.f32 %v4792_v52, %v4791_v5  ;;  %v4881_v19 = vadd.f32 %v4880_v55, %v4879_v57  ;;  %v4882_v61 = vpop.f32.mrb[126].mxu0  ;;  %v4794_v15 = vpop.f32.mrb[126].mxu1 }
 0x1f0   :  { %v4883_v30 = vpop.f32.mrb[127].mxu0  ;;  %v4795_v45 = vpop.f32.mrb[127].mxu1 }
 0x1f1   :  { %v3081_v7 = vadd.f32 %v4793_v35, %v6923_v44  ;;  %v7120_v29 = vadd.f32 %v4881_v19, %v3073_v42  ;;  %v4884_v1 = vadd.f32 %v4883_v30, %v4882_v61 }
 0x1f2   :  { %3759 = vmatmul.mubr.bf16.gmra.mrb[232].mxu0 %v4154_v31 }
 0x1f3   :  { %v7122_v18 = vadd.f32 %v4884_v1, %v3076_v9 }
 0x1f5   :  { %v4885_v10 = vpop.f32.mrb[128].mxu0  ;;  %v4907_v24 = vpop.f32.mrb[128].mxu1 }
 0x1f6   :  { %v4886_v58 = vpop.f32.mrb[129].mxu0  ;;  %v4908_v33 = vpop.f32.mrb[129].mxu1 }
 0x1f7   :  { %v4887_v13 = vadd.f32 %v4886_v58, %v4885_v10  ;;  %v4909_v50 = vadd.f32 %v4908_v33, %v4907_v24  ;;  %v4888_v54 = vpop.f32.mrb[130].mxu0  ;;  %v4910_v37 = vpop.f32.mrb[130].mxu1 }
 0x1f8   :  { %v4889_v17 = vpop.f32.mrb[131].mxu0  ;;  %v4911_v16 = vpop.f32.mrb[131].mxu1 }
 0x1f9   :  { %v7124_v22 = vadd.f32 %v4887_v13, %v3081_v7  ;;  %v3257_v44 = vadd.f32 %v4909_v50, %v6940_v11  ;;  %v4912_v25 = vadd.f32 %v4911_v16, %v4910_v37 }
 0x1fb   :  { %v3260_v53 = vadd.f32 %v4912_v25, %v6943_v26 }
 0x1fd   :  { %v4913_v28 = vpop.f32.mrb[132].mxu1  ;;  %v5001_v27 = vpop.f32.mrb[132].mxu0 }
 0x1fe   :  { %v4914_v43 = vpop.f32.mrb[133].mxu1  ;;  %v5002_v41 = vpop.f32.mrb[133].mxu0 }
 0x1ff   :  { %v4915_v60 = vadd.f32 %v4914_v43, %v4913_v28  ;;  %v5003_v34 = vadd.f32 %v5002_v41, %v5001_v27  ;;  %v4916_v38 = vpop.f32.mrb[134].mxu1  ;;  %v5004_v14 = vpop.f32.mrb[134].mxu0 }
 0x200   :  { %v4917_v39 = vpop.f32.mrb[135].mxu1  ;;  %v5005_v42 = vpop.f32.mrb[135].mxu0 }
 0x201   :  { %v3265_v59 = vadd.f32 %v4915_v60, %v6958_v40  ;;  %v7129_v62 = vadd.f32 %v5003_v34, %v3257_v44  ;;  %v4918_v9 = vadd.f32 %v4917_v39, %v4916_v38  ;;  %v5006_v5 = vadd.f32 %v5005_v42, %v5004_v14 }
 0x203   :  { %v3268_v11 = vadd.f32 %v4918_v9, %v6961_v0  ;;  %v7132_v57 = vadd.f32 %v5006_v5, %v3260_v53 }
 0x205   :  { %v4919_v26 = vpop.f32.mrb[136].mxu1  ;;  %v5007_v52 = vpop.f32.mrb[136].mxu0 }
 0x206   :  { %v4920_v55 = vpop.f32.mrb[137].mxu1  ;;  %v5008_v31 = vpop.f32.mrb[137].mxu0 }
 0x207   :  { %v4921_v35 = vadd.f32 %v4920_v55, %v4919_v26  ;;  %v5009_v19 = vadd.f32 %v5008_v31, %v5007_v52  ;;  %v4922_v61 = vpop.f32.mrb[138].mxu1  ;;  %v5010_v15 = vpop.f32.mrb[138].mxu0 }
 0x208   :  { %v4923_v30 = vpop.f32.mrb[139].mxu1  ;;  %v5011_v45 = vpop.f32.mrb[139].mxu0 }
 0x209   :  { %v3273_v40 = vadd.f32 %v4921_v35, %v6976_v47  ;;  %v7135_v7 = vadd.f32 %v5009_v19, %v3265_v59  ;;  %v4924_v1 = vadd.f32 %v4923_v30, %v4922_v61  ;;  %v5012_v10 = vadd.f32 %v5011_v45, %v5010_v15 }
 0x20b   :  { %v3276_v0 = vadd.f32 %v4924_v1, %v6979_v21  ;;  %v7138_v24 = vadd.f32 %v5012_v10, %v3268_v11 }
 0x20d   :  { %v4925_v58 = vpop.f32.mrb[140].mxu1  ;;  %v5013_v33 = vpop.f32.mrb[140].mxu0 }
 0x20e   :  { %v4926_v13 = vpop.f32.mrb[141].mxu1  ;;  %v5014_v50 = vpop.f32.mrb[141].mxu0 }
 0x20f   :  { %v4927_v54 = vadd.f32 %v4926_v13, %v4925_v58  ;;  %v5015_v37 = vadd.f32 %v5014_v50, %v5013_v33  ;;  %v4928_v17 = vpop.f32.mrb[142].mxu1  ;;  %v5016_v16 = vpop.f32.mrb[142].mxu0 }
 0x210   :  { %v4929_v44 = vpop.f32.mrb[143].mxu1  ;;  %v5017_v25 = vpop.f32.mrb[143].mxu0 }
 0x211   :  { %v3281_v47 = vadd.f32 %v4927_v54, %v6994_v32  ;;  %v7141_v53 = vadd.f32 %v5015_v37, %v3273_v40  ;;  %v4930_v28 = vadd.f32 %v4929_v44, %v4928_v17  ;;  %v5018_v27 = vadd.f32 %v5017_v25, %v5016_v16 }
 0x213   :  { %v3284_v21 = vadd.f32 %v4930_v28, %v6997_v2  ;;  %v7144_v43 = vadd.f32 %v5018_v27, %v3276_v0 }
 0x215   :  { %v4931_v41 = vpop.f32.mrb[144].mxu1  ;;  %v5019_v60 = vpop.f32.mrb[144].mxu0 }
 0x216   :  { %v4932_v34 = vpop.f32.mrb[145].mxu1  ;;  %v5020_v38 = vpop.f32.mrb[145].mxu0 }
 0x217   :  { %v4933_v14 = vadd.f32 %v4932_v34, %v4931_v41  ;;  %v5021_v39 = vadd.f32 %v5020_v38, %v5019_v60  ;;  %v4934_v42 = vpop.f32.mrb[146].mxu1  ;;  %v5022_v59 = vpop.f32.mrb[146].mxu0 }
 0x218   :  { %v4935_v9 = vpop.f32.mrb[147].mxu1  ;;  %v5023_v5 = vpop.f32.mrb[147].mxu0 }
 0x219   :  { %v3289_v32 = vadd.f32 %v4933_v14, %v7012_v56  ;;  %v7147_v11 = vadd.f32 %v5021_v39, %v3281_v47  ;;  %v4936_v26 = vadd.f32 %v4935_v9, %v4934_v42  ;;  %v5024_v52 = vadd.f32 %v5023_v5, %v5022_v59 }
 0x21b   :  { %v3292_v2 = vadd.f32 %v4936_v26, %v7015_v4  ;;  %v7150_v55 = vadd.f32 %v5024_v52, %v3284_v21 }
 0x21d   :  { %v4937_v31 = vpop.f32.mrb[148].mxu1  ;;  %v5025_v35 = vpop.f32.mrb[148].mxu0 }
 0x21e   :  { %v4938_v19 = vpop.f32.mrb[149].mxu1  ;;  %v5026_v61 = vpop.f32.mrb[149].mxu0 }
 0x21f   :  { %v4939_v15 = vadd.f32 %v4938_v19, %v4937_v31  ;;  %v5027_v30 = vadd.f32 %v5026_v61, %v5025_v35  ;;  %v4940_v45 = vpop.f32.mrb[150].mxu1  ;;  %v5028_v40 = vpop.f32.mrb[150].mxu0 }
 0x220   :  { %v4941_v1 = vpop.f32.mrb[151].mxu1  ;;  %v5029_v10 = vpop.f32.mrb[151].mxu0 }
 0x221   :  { %v3297_v56 = vadd.f32 %v4939_v15, %v7030_v20  ;;  %v7153_v0 = vadd.f32 %v5027_v30, %v3289_v32  ;;  %v4942_v58 = vadd.f32 %v4941_v1, %v4940_v45  ;;  %v5030_v33 = vadd.f32 %v5029_v10, %v5028_v40 }
 0x223   :  { %v3300_v4 = vadd.f32 %v4942_v58, %v7033_v23  ;;  %v7156_v13 = vadd.f32 %v5030_v33, %v3292_v2 }
 0x225   :  { %v4943_v50 = vpop.f32.mrb[152].mxu1  ;;  %v5031_v54 = vpop.f32.mrb[152].mxu0 }
 0x226   :  { %v4944_v37 = vpop.f32.mrb[153].mxu1  ;;  %v5032_v17 = vpop.f32.mrb[153].mxu0 }
 0x227   :  { %v4945_v16 = vadd.f32 %v4944_v37, %v4943_v50  ;;  %v5033_v44 = vadd.f32 %v5032_v17, %v5031_v54  ;;  %v4946_v25 = vpop.f32.mrb[154].mxu1  ;;  %v5034_v47 = vpop.f32.mrb[154].mxu0 }
 0x228   :  { %v4947_v28 = vpop.f32.mrb[155].mxu1  ;;  %v5035_v27 = vpop.f32.mrb[155].mxu0 }
 0x229   :  { %v3305_v20 = vadd.f32 %v4945_v16, %v7048_v51  ;;  %v7159_v21 = vadd.f32 %v5033_v44, %v3297_v56  ;;  %v4948_v41 = vadd.f32 %v4947_v28, %v4946_v25  ;;  %v5036_v60 = vadd.f32 %v5035_v27, %v5034_v47 }
 0x22b   :  { %v3308_v23 = vadd.f32 %v4948_v41, %v7051_v49  ;;  %v7162_v34 = vadd.f32 %v5036_v60, %v3300_v4 }
 0x22d   :  { %v4949_v38 = vpop.f32.mrb[156].mxu1  ;;  %v5037_v14 = vpop.f32.mrb[156].mxu0 }
 0x22e   :  { %v4950_v39 = vpop.f32.mrb[157].mxu1  ;;  %v5038_v42 = vpop.f32.mrb[157].mxu0 }
 0x22f   :  { %v4951_v59 = vadd.f32 %v4950_v39, %v4949_v38  ;;  %v5039_v9 = vadd.f32 %v5038_v42, %v5037_v14  ;;  %v4952_v5 = vpop.f32.mrb[158].mxu1  ;;  %v5040_v32 = vpop.f32.mrb[158].mxu0 }
 0x230   :  { %v4953_v26 = vpop.f32.mrb[159].mxu1  ;;  %v5041_v52 = vpop.f32.mrb[159].mxu0 }
 0x231   :  { %v3313_v51 = vadd.f32 %v4951_v59, %v7066_v63  ;;  %v7165_v2 = vadd.f32 %v5039_v9, %v3305_v20  ;;  %v4954_v31 = vadd.f32 %v4953_v26, %v4952_v5  ;;  %v5042_v35 = vadd.f32 %v5041_v52, %v5040_v32 }
 0x233   :  { %v3316_v49 = vadd.f32 %v4954_v31, %v7069_v36  ;;  %v7168_v19 = vadd.f32 %v5042_v35, %v3308_v23 }
 0x235   :  { %v4955_v61 = vpop.f32.mrb[160].mxu1  ;;  %v5043_v15 = vpop.f32.mrb[160].mxu0 }
 0x236   :  { %v4956_v30 = vpop.f32.mrb[161].mxu1  ;;  %v5044_v45 = vpop.f32.mrb[161].mxu0 }
 0x237   :  { %v4957_v40 = vadd.f32 %v4956_v30, %v4955_v61  ;;  %v5045_v1 = vadd.f32 %v5044_v45, %v5043_v15  ;;  %v4958_v10 = vpop.f32.mrb[162].mxu1  ;;  %v5046_v56 = vpop.f32.mrb[162].mxu0 }
 0x238   :  { %v4959_v58 = vpop.f32.mrb[163].mxu1  ;;  %v5047_v33 = vpop.f32.mrb[163].mxu0 }
 0x239   :  { %v3321_v63 = vadd.f32 %v4957_v40, %v7084_v46  ;;  %v7171_v4 = vadd.f32 %v5045_v1, %v3313_v51  ;;  %v4960_v50 = vadd.f32 %v4959_v58, %v4958_v10  ;;  %v5048_v54 = vadd.f32 %v5047_v33, %v5046_v56 }
 0x23b   :  { %v3324_v36 = vadd.f32 %v4960_v50, %v7087_v8  ;;  %v7174_v37 = vadd.f32 %v5048_v54, %v3316_v49 }
 0x23d   :  { %v4961_v17 = vpop.f32.mrb[164].mxu1  ;;  %v5049_v16 = vpop.f32.mrb[164].mxu0 }
 0x23e   :  { %v4962_v44 = vpop.f32.mrb[165].mxu1  ;;  %v5050_v25 = vpop.f32.mrb[165].mxu0 }
 0x23f   :  { %v4963_v47 = vadd.f32 %v4962_v44, %v4961_v17  ;;  %v5051_v28 = vadd.f32 %v5050_v25, %v5049_v16  ;;  %v4964_v27 = vpop.f32.mrb[166].mxu1  ;;  %v5052_v20 = vpop.f32.mrb[166].mxu0 }
 0x240   :  { %v4965_v41 = vpop.f32.mrb[167].mxu1  ;;  %v5053_v60 = vpop.f32.mrb[167].mxu0 }
 0x241   :  { %v3329_v46 = vadd.f32 %v4963_v47, %v7102_v6  ;;  %v7177_v23 = vadd.f32 %v5051_v28, %v3321_v63  ;;  %v4966_v38 = vadd.f32 %v4965_v41, %v4964_v27  ;;  %v5054_v14 = vadd.f32 %v5053_v60, %v5052_v20 }
 0x243   :  { %v3332_v8 = vadd.f32 %v4966_v38, %v7105_v12  ;;  %v7180_v39 = vadd.f32 %v5054_v14, %v3324_v36 }
 0x245   :  { %v4967_v42 = vpop.f32.mrb[168].mxu1  ;;  %v5055_v59 = vpop.f32.mrb[168].mxu0 }
 0x246   :  { %v4968_v9 = vpop.f32.mrb[169].mxu1  ;;  %v5056_v5 = vpop.f32.mrb[169].mxu0 }
 0x247   :  { %v4969_v32 = vadd.f32 %v4968_v9, %v4967_v42  ;;  %v5057_v26 = vadd.f32 %v5056_v5, %v5055_v59  ;;  %v4970_v52 = vpop.f32.mrb[170].mxu1  ;;  %v5058_v51 = vpop.f32.mrb[170].mxu0 }
 0x248   :  { %v4971_v31 = vpop.f32.mrb[171].mxu1  ;;  %v5059_v35 = vpop.f32.mrb[171].mxu0 }
 0x249   :  { %v3337_v6 = vadd.f32 %v4969_v32, %v7114_v3  ;;  %v7183_v49 = vadd.f32 %v5057_v26, %v3329_v46  ;;  %v4972_v61 = vadd.f32 %v4971_v31, %v4970_v52  ;;  %v5060_v15 = vadd.f32 %v5059_v35, %v5058_v51 }
 0x24b   :  { %v3340_v12 = vadd.f32 %v4972_v61, %v7117_v48  ;;  %v7186_v30 = vadd.f32 %v5060_v15, %v3332_v8 }
 0x24d   :  { %v4973_v45 = vpop.f32.mrb[172].mxu1  ;;  %v5061_v40 = vpop.f32.mrb[172].mxu0 }
 0x24e   :  { %v4974_v1 = vpop.f32.mrb[173].mxu1  ;;  %v5062_v10 = vpop.f32.mrb[173].mxu0 }
 0x24f   :  { %v4975_v56 = vadd.f32 %v4974_v1, %v4973_v45  ;;  %v5063_v58 = vadd.f32 %v5062_v10, %v5061_v40  ;;  %v4976_v33 = vpop.f32.mrb[174].mxu1  ;;  %v5064_v63 = vpop.f32.mrb[174].mxu0 }
 0x250   :  { %v4977_v50 = vpop.f32.mrb[175].mxu1  ;;  %v5065_v54 = vpop.f32.mrb[175].mxu0 }
 0x251   :  { %v3345_v3 = vadd.f32 %v4975_v56, %v7120_v29  ;;  %v7189_v36 = vadd.f32 %v5063_v58, %v3337_v6  ;;  %v4978_v17 = vadd.f32 %v4977_v50, %v4976_v33  ;;  %v5066_v16 = vadd.f32 %v5065_v54, %v5064_v63 }
 0x253   :  { %v3348_v48 = vadd.f32 %v4978_v17, %v7122_v18  ;;  %v7192_v44 = vadd.f32 %v5066_v16, %v3340_v12 }
 0x255   :  { %v4979_v25 = vpop.f32.mrb[176].mxu1  ;;  %v5067_v47 = vpop.f32.mrb[176].mxu0 }
 0x256   :  { %v4980_v28 = vpop.f32.mrb[177].mxu1  ;;  %v5068_v27 = vpop.f32.mrb[177].mxu0 }
 0x257   :  { %v4981_v20 = vadd.f32 %v4980_v28, %v4979_v25  ;;  %v5069_v41 = vadd.f32 %v5068_v27, %v5067_v47  ;;  %v5070_v60 = vpop.f32.mrb[178].mxu0  ;;  %v4982_v46 = vpop.f32.mrb[178].mxu1 }
 0x258   :  { %v5071_v38 = vpop.f32.mrb[179].mxu0  ;;  %v4983_v14 = vpop.f32.mrb[179].mxu1 }
 0x259   :  { %v3353_v29 = vadd.f32 %v4981_v20, %v7124_v22  ;;  %v7195_v8 = vadd.f32 %v5069_v41, %v3345_v3  ;;  %v5072_v42 = vadd.f32 %v5071_v38, %v5070_v60 }
 0x25b   :  { %v7197_v59 = vadd.f32 %v5072_v42, %v3348_v48 }
 0x25d   :  { %v5073_v18 = vpop.f32.mrb[180].mxu0  ;;  %v5095_v9 = vpop.f32.mrb[180].mxu1 }
 0x25e   :  { %v5074_v5 = vpop.f32.mrb[181].mxu0  ;;  %v5096_v32 = vpop.f32.mrb[181].mxu1 }
 0x25f   :  { %v5075_v26 = vadd.f32 %v5074_v5, %v5073_v18  ;;  %v5097_v52 = vadd.f32 %v5096_v32, %v5095_v9  ;;  %v5076_v51 = vpop.f32.mrb[182].mxu0  ;;  %v5098_v31 = vpop.f32.mrb[182].mxu1 }
 0x260   :  { %v5077_v35 = vpop.f32.mrb[183].mxu0  ;;  %v5099_v6 = vpop.f32.mrb[183].mxu1 }
 0x261   :  { %v7199_v61 = vadd.f32 %v5075_v26, %v3353_v29  ;;  %v3529_v15 = vadd.f32 %v5097_v52, %v7129_v62  ;;  %v5100_v22 = vadd.f32 %v5099_v6, %v5098_v31 }
 0x263   :  { %v3532_v12 = vadd.f32 %v5100_v22, %v7132_v57 }
 0x265   :  { %v5101_v45 = vpop.f32.mrb[184].mxu1  ;;  %v5189_v40 = vpop.f32.mrb[184].mxu0 }
 0x266   :  { %v5102_v1 = vpop.f32.mrb[185].mxu1  ;;  %v5190_v10 = vpop.f32.mrb[185].mxu0 }
 0x267   :  { %v5103_v56 = vadd.f32 %v5102_v1, %v5101_v45  ;;  %v5191_v58 = vadd.f32 %v5190_v10, %v5189_v40  ;;  %v5104_v33 = vpop.f32.mrb[186].mxu1  ;;  %v5192_v63 = vpop.f32.mrb[186].mxu0 }
 0x268   :  { %v5105_v50 = vpop.f32.mrb[187].mxu1  ;;  %v5193_v54 = vpop.f32.mrb[187].mxu0 }
 0x269   :  { %v3537_v3 = vadd.f32 %v5103_v56, %v7135_v7  ;;  %v3665_v17 = vadd.f32 %v5191_v58, %v3529_v15  ;;  %v5106_v16 = vadd.f32 %v5105_v50, %v5104_v33  ;;  %v5194_v48 = vadd.f32 %v5193_v54, %v5192_v63 }
 0x26b   :  { %v3540_v62 = vadd.f32 %v5106_v16, %v7138_v24  ;;  %v3668_v25 = vadd.f32 %v5194_v48, %v3532_v12  ;;  %v3766_v47 = vmax.f32 %v3665_v17, 0.0 }
 0x26d   :  { %v3767_v57 = vmax.f32 %v3668_v25, 0.0  ;;  %v5107_v28 = vpop.f32.mrb[188].mxu1  ;;  %v5195_v27 = vpop.f32.mrb[188].mxu0 }
 0x26e   :  { %v5108_v20 = vpop.f32.mrb[189].mxu1  ;;  %v5196_v41 = vpop.f32.mrb[189].mxu0 }
 0x26f   :  { %v4353_v60 = vpack.c.bf16 %v3767_v57, %v3766_v47  ;;  %v5109_v46 = vadd.f32 %v5108_v20, %v5107_v28  ;;  %v5197_v38 = vadd.f32 %v5196_v41, %v5195_v27  ;;  %v5110_v14 = vpop.f32.mrb[190].mxu1  ;;  %v5198_v29 = vpop.f32.mrb[190].mxu0 }
 0x270   :  { %v5111_v42 = vpop.f32.mrb[191].mxu1  ;;  %v5199_v18 = vpop.f32.mrb[191].mxu0 }
 0x271   :  { %4354 = vst [vmem:[%s7268_s3] sm:$0xff] %v4353_v60   ;;  %v3545_v7 = vadd.f32 %v5109_v46, %v7141_v53  ;;  %v3673_v24 = vadd.f32 %v5197_v38, %v3537_v3  ;;  %v5112_v9 = vadd.f32 %v5111_v42, %v5110_v14  ;;  %v5200_v5 = vadd.f32 %v5199_v18, %v5198_v29 }
 0x273   :  { %v3548_v32 = vadd.f32 %v5112_v9, %v7144_v43  ;;  %v3676_v26 = vadd.f32 %v5200_v5, %v3540_v62  ;;  %v3768_v52 = vmax.f32 %v3673_v24, 0.0 }
 0x275   :  { %v3769_v51 = vmax.f32 %v3676_v26, 0.0  ;;  %v5113_v31 = vpop.f32.mrb[192].mxu1  ;;  %v5201_v35 = vpop.f32.mrb[192].mxu0 }
 0x276   :  { %v5114_v6 = vpop.f32.mrb[193].mxu1  ;;  %v5202_v15 = vpop.f32.mrb[193].mxu0 }
 0x277   :  { %v4358_v22 = vpack.c.bf16 %v3769_v51, %v3768_v52  ;;  %v5115_v12 = vadd.f32 %v5114_v6, %v5113_v31  ;;  %v5203_v45 = vadd.f32 %v5202_v15, %v5201_v35  ;;  %v5116_v40 = vpop.f32.mrb[194].mxu1  ;;  %v5204_v1 = vpop.f32.mrb[194].mxu0 }
 0x278   :  { %v5117_v10 = vpop.f32.mrb[195].mxu1  ;;  %v5205_v56 = vpop.f32.mrb[195].mxu0 }
 0x279   :  { %4410 = vst [vmem:[%s7268_s3 + $0x8] sm:$0xff] %v4358_v22   ;;  %v3553_v53 = vadd.f32 %v5115_v12, %v7147_v11  ;;  %v3681_v43 = vadd.f32 %v5203_v45, %v3545_v7  ;;  %v5118_v58 = vadd.f32 %v5117_v10, %v5116_v40  ;;  %v5206_v33 = vadd.f32 %v5205_v56, %v5204_v1 }
 0x27b   :  { %v3556_v63 = vadd.f32 %v5118_v58, %v7150_v55  ;;  %v3684_v50 = vadd.f32 %v5206_v33, %v3548_v32  ;;  %v3770_v54 = vmax.f32 %v3681_v43, 0.0 }
 0x27d   :  { %v3771_v3 = vmax.f32 %v3684_v50, 0.0  ;;  %v5119_v17 = vpop.f32.mrb[196].mxu1  ;;  %v5207_v16 = vpop.f32.mrb[196].mxu0 }
 0x27e   :  { %v5120_v48 = vpop.f32.mrb[197].mxu1  ;;  %v5208_v62 = vpop.f32.mrb[197].mxu0 }
 0x27f   :  { %v4363_v25 = vpack.c.bf16 %v3771_v3, %v3770_v54  ;;  %v5121_v47 = vadd.f32 %v5120_v48, %v5119_v17  ;;  %v5209_v57 = vadd.f32 %v5208_v62, %v5207_v16  ;;  %v5122_v28 = vpop.f32.mrb[198].mxu1  ;;  %v5210_v27 = vpop.f32.mrb[198].mxu0 }
 0x280   :  { %v5123_v20 = vpop.f32.mrb[199].mxu1  ;;  %v5211_v41 = vpop.f32.mrb[199].mxu0 }
 0x281   :  { %4411 = vst [vmem:[%s7268_s3 + $0x10] sm:$0xff] %v4363_v25   ;;  %v3561_v11 = vadd.f32 %v5121_v47, %v7153_v0  ;;  %v3689_v55 = vadd.f32 %v5209_v57, %v3553_v53  ;;  %v5124_v60 = vadd.f32 %v5123_v20, %v5122_v28  ;;  %v5212_v46 = vadd.f32 %v5211_v41, %v5210_v27 }
 0x283   :  { %v3564_v38 = vadd.f32 %v5124_v60, %v7156_v13  ;;  %v3692_v14 = vadd.f32 %v5212_v46, %v3556_v63  ;;  %v3772_v29 = vmax.f32 %v3689_v55, 0.0 }
 0x285   :  { %v3773_v42 = vmax.f32 %v3692_v14, 0.0  ;;  %v5125_v18 = vpop.f32.mrb[200].mxu1  ;;  %v5213_v7 = vpop.f32.mrb[200].mxu0 }
 0x286   :  { %v5126_v24 = vpop.f32.mrb[201].mxu1  ;;  %v5214_v9 = vpop.f32.mrb[201].mxu0 }
 0x287   :  { %v4368_v5 = vpack.c.bf16 %v3773_v42, %v3772_v29  ;;  %v5127_v32 = vadd.f32 %v5126_v24, %v5125_v18  ;;  %v5215_v26 = vadd.f32 %v5214_v9, %v5213_v7  ;;  %v5128_v52 = vpop.f32.mrb[202].mxu1  ;;  %v5216_v51 = vpop.f32.mrb[202].mxu0 }
 0x288   :  { %v5129_v31 = vpop.f32.mrb[203].mxu1  ;;  %v5217_v35 = vpop.f32.mrb[203].mxu0 }
 0x289   :  { %4412 = vst [vmem:[%s7268_s3 + $0x18] sm:$0xff] %v4368_v5   ;;  %v3569_v0 = vadd.f32 %v5127_v32, %v7159_v21  ;;  %v3697_v13 = vadd.f32 %v5215_v26, %v3561_v11  ;;  %v5130_v6 = vadd.f32 %v5129_v31, %v5128_v52  ;;  %v5218_v15 = vadd.f32 %v5217_v35, %v5216_v51 }
 0x28b   :  { %v3572_v22 = vadd.f32 %v5130_v6, %v7162_v34  ;;  %v3700_v12 = vadd.f32 %v5218_v15, %v3564_v38  ;;  %v3774_v45 = vmax.f32 %v3697_v13, 0.0 }
 0x28d   :  { %v3775_v40 = vmax.f32 %v3700_v12, 0.0  ;;  %v5131_v1 = vpop.f32.mrb[204].mxu1  ;;  %v5219_v10 = vpop.f32.mrb[204].mxu0 }
 0x28e   :  { %v5132_v56 = vpop.f32.mrb[205].mxu1  ;;  %v5220_v53 = vpop.f32.mrb[205].mxu0 }
 0x28f   :  { %v4373_v43 = vpack.c.bf16 %v3775_v40, %v3774_v45  ;;  %v5133_v58 = vadd.f32 %v5132_v56, %v5131_v1  ;;  %v5221_v33 = vadd.f32 %v5220_v53, %v5219_v10  ;;  %v5134_v63 = vpop.f32.mrb[206].mxu1  ;;  %v5222_v50 = vpop.f32.mrb[206].mxu0 }
 0x290   :  { %v5135_v54 = vpop.f32.mrb[207].mxu1  ;;  %v5223_v3 = vpop.f32.mrb[207].mxu0 }
 0x291   :  { %4413 = vst [vmem:[%s7268_s3 + $0x20] sm:$0xff] %v4373_v43   ;;  %v3577_v21 = vadd.f32 %v5133_v58, %v7165_v2  ;;  %v3705_v34 = vadd.f32 %v5221_v33, %v3569_v0  ;;  %v5136_v17 = vadd.f32 %v5135_v54, %v5134_v63  ;;  %v5224_v16 = vadd.f32 %v5223_v3, %v5222_v50 }
 0x293   :  { %v3580_v48 = vadd.f32 %v5136_v17, %v7168_v19  ;;  %v3708_v62 = vadd.f32 %v5224_v16, %v3572_v22  ;;  %v3776_v25 = vmax.f32 %v3705_v34, 0.0 }
 0x295   :  { %v3777_v47 = vmax.f32 %v3708_v62, 0.0  ;;  %v5137_v57 = vpop.f32.mrb[208].mxu1  ;;  %v5225_v28 = vpop.f32.mrb[208].mxu0 }
 0x296   :  { %v5138_v27 = vpop.f32.mrb[209].mxu1  ;;  %v5226_v20 = vpop.f32.mrb[209].mxu0 }
 0x297   :  { %v4378_v41 = vpack.c.bf16 %v3777_v47, %v3776_v25  ;;  %v5139_v11 = vadd.f32 %v5138_v27, %v5137_v57  ;;  %v5227_v55 = vadd.f32 %v5226_v20, %v5225_v28  ;;  %v5140_v60 = vpop.f32.mrb[210].mxu1  ;;  %v5228_v46 = vpop.f32.mrb[210].mxu0 }
 0x298   :  { %v5141_v38 = vpop.f32.mrb[211].mxu1  ;;  %v5229_v14 = vpop.f32.mrb[211].mxu0 }
 0x299   :  { %4414 = vst [vmem:[%s7268_s3 + $0x28] sm:$0xff] %v4378_v41   ;;  %v3585_v2 = vadd.f32 %v5139_v11, %v7171_v4  ;;  %v3713_v19 = vadd.f32 %v5227_v55, %v3577_v21  ;;  %v5142_v29 = vadd.f32 %v5141_v38, %v5140_v60  ;;  %v5230_v42 = vadd.f32 %v5229_v14, %v5228_v46 }
 0x29b   :  { %v3588_v18 = vadd.f32 %v5142_v29, %v7174_v37  ;;  %v3716_v7 = vadd.f32 %v5230_v42, %v3580_v48  ;;  %v3778_v24 = vmax.f32 %v3713_v19, 0.0 }
 0x29d   :  { %v3779_v9 = vmax.f32 %v3716_v7, 0.0  ;;  %v5143_v5 = vpop.f32.mrb[212].mxu1  ;;  %v5231_v32 = vpop.f32.mrb[212].mxu0 }
 0x29e   :  { %v5144_v26 = vpop.f32.mrb[213].mxu1  ;;  %v5232_v52 = vpop.f32.mrb[213].mxu0 }
 0x29f   :  { %v4383_v51 = vpack.c.bf16 %v3779_v9, %v3778_v24  ;;  %v5145_v31 = vadd.f32 %v5144_v26, %v5143_v5  ;;  %v5233_v35 = vadd.f32 %v5232_v52, %v5231_v32  ;;  %v5146_v0 = vpop.f32.mrb[214].mxu1  ;;  %v5234_v13 = vpop.f32.mrb[214].mxu0 }
 0x2a0   :  { %v5147_v6 = vpop.f32.mrb[215].mxu1  ;;  %v5235_v15 = vpop.f32.mrb[215].mxu0 }
 0x2a1   :  { %4415 = vst [vmem:[%s7268_s3 + $0x30] sm:$0xff] %v4383_v51   ;;  %v3593_v4 = vadd.f32 %v5145_v31, %v7177_v23  ;;  %v3721_v37 = vadd.f32 %v5233_v35, %v3585_v2  ;;  %v5148_v22 = vadd.f32 %v5147_v6, %v5146_v0  ;;  %v5236_v12 = vadd.f32 %v5235_v15, %v5234_v13 }
 0x2a3   :  { %v3596_v45 = vadd.f32 %v5148_v22, %v7180_v39  ;;  %v3724_v40 = vadd.f32 %v5236_v12, %v3588_v18  ;;  %v3780_v1 = vmax.f32 %v3721_v37, 0.0 }
 0x2a5   :  { %v3781_v10 = vmax.f32 %v3724_v40, 0.0  ;;  %v5149_v56 = vpop.f32.mrb[216].mxu1  ;;  %v5237_v53 = vpop.f32.mrb[216].mxu0 }
 0x2a6   :  { %v5150_v43 = vpop.f32.mrb[217].mxu1  ;;  %v5238_v58 = vpop.f32.mrb[217].mxu0 }
 0x2a7   :  { %v4388_v33 = vpack.c.bf16 %v3781_v10, %v3780_v1  ;;  %v5151_v63 = vadd.f32 %v5150_v43, %v5149_v56  ;;  %v5239_v50 = vadd.f32 %v5238_v58, %v5237_v53  ;;  %v5152_v54 = vpop.f32.mrb[218].mxu1  ;;  %v5240_v3 = vpop.f32.mrb[218].mxu0 }
 0x2a8   :  { %v5153_v21 = vpop.f32.mrb[219].mxu1  ;;  %v5241_v34 = vpop.f32.mrb[219].mxu0 }
 0x2a9   :  { %4416 = vst [vmem:[%s7268_s3 + $0x38] sm:$0xff] %v4388_v33   ;;  %v3601_v23 = vadd.f32 %v5151_v63, %v7183_v49  ;;  %v3729_v39 = vadd.f32 %v5239_v50, %v3593_v4  ;;  %v5154_v17 = vadd.f32 %v5153_v21, %v5152_v54  ;;  %v5242_v16 = vadd.f32 %v5241_v34, %v5240_v3 }
 0x2ab   :  { %v3604_v48 = vadd.f32 %v5154_v17, %v7186_v30  ;;  %v3732_v62 = vadd.f32 %v5242_v16, %v3596_v45  ;;  %v3782_v25 = vmax.f32 %v3729_v39, 0.0 }
 0x2ad   :  { %v3783_v47 = vmax.f32 %v3732_v62, 0.0  ;;  %v5155_v57 = vpop.f32.mrb[220].mxu1  ;;  %v5243_v28 = vpop.f32.mrb[220].mxu0 }
 0x2ae   :  { %v5156_v27 = vpop.f32.mrb[221].mxu1  ;;  %v5244_v20 = vpop.f32.mrb[221].mxu0 }
 0x2af   :  { %v4393_v41 = vpack.c.bf16 %v3783_v47, %v3782_v25  ;;  %v5157_v11 = vadd.f32 %v5156_v27, %v5155_v57  ;;  %v5245_v55 = vadd.f32 %v5244_v20, %v5243_v28  ;;  %v5158_v60 = vpop.f32.mrb[222].mxu1  ;;  %v5246_v46 = vpop.f32.mrb[222].mxu0 }
 0x2b0   :  { %v5159_v38 = vpop.f32.mrb[223].mxu1  ;;  %v5247_v14 = vpop.f32.mrb[223].mxu0 }
 0x2b1   :  { %4417 = vst [vmem:[%s7268_s3 + $0x40] sm:$0xff] %v4393_v41   ;;  %v3609_v49 = vadd.f32 %v5157_v11, %v7189_v36  ;;  %v3737_v30 = vadd.f32 %v5245_v55, %v3601_v23  ;;  %v5160_v2 = vadd.f32 %v5159_v38, %v5158_v60  ;;  %v5248_v19 = vadd.f32 %v5247_v14, %v5246_v46 }
 0x2b3   :  { %v3612_v29 = vadd.f32 %v5160_v2, %v7192_v44  ;;  %v3740_v42 = vadd.f32 %v5248_v19, %v3604_v48  ;;  %v3784_v18 = vmax.f32 %v3737_v30, 0.0 }
 0x2b5   :  { %v3785_v7 = vmax.f32 %v3740_v42, 0.0  ;;  %v5161_v24 = vpop.f32.mrb[224].mxu1  ;;  %v5249_v9 = vpop.f32.mrb[224].mxu0 }
 0x2b6   :  { %v5162_v5 = vpop.f32.mrb[225].mxu1  ;;  %v5250_v32 = vpop.f32.mrb[225].mxu0 }
 0x2b7   :  { %v4398_v26 = vpack.c.bf16 %v3785_v7, %v3784_v18  ;;  %v5163_v52 = vadd.f32 %v5162_v5, %v5161_v24  ;;  %v5251_v51 = vadd.f32 %v5250_v32, %v5249_v9  ;;  %v5164_v31 = vpop.f32.mrb[226].mxu1  ;;  %v5252_v35 = vpop.f32.mrb[226].mxu0 }
 0x2b8   :  { %v5165_v0 = vpop.f32.mrb[227].mxu1  ;;  %v5253_v13 = vpop.f32.mrb[227].mxu0 }
 0x2b9   :  { %4418 = vst [vmem:[%s7268_s3 + $0x48] sm:$0xff] %v4398_v26   ;;  %v3617_v36 = vadd.f32 %v5163_v52, %v7195_v8  ;;  %v3745_v44 = vadd.f32 %v5251_v51, %v3609_v49  ;;  %v5166_v6 = vadd.f32 %v5165_v0, %v5164_v31  ;;  %v5254_v15 = vadd.f32 %v5253_v13, %v5252_v35 }
 0x2bb   :  { %v3620_v4 = vadd.f32 %v5166_v6, %v7197_v59  ;;  %v3748_v37 = vadd.f32 %v5254_v15, %v3612_v29  ;;  %v3786_v22 = vmax.f32 %v3745_v44, 0.0 }
 0x2bd   :  { %v3787_v12 = vmax.f32 %v3748_v37, 0.0  ;;  %v5167_v45 = vpop.f32.mrb[228].mxu1  ;;  %v5255_v40 = vpop.f32.mrb[228].mxu0 }
 0x2be   :  { %v5168_v1 = vpop.f32.mrb[229].mxu1  ;;  %v5256_v10 = vpop.f32.mrb[229].mxu0 }
 0x2bf   :  { %v4403_v56 = vpack.c.bf16 %v3787_v12, %v3786_v22  ;;  %v5169_v53 = vadd.f32 %v5168_v1, %v5167_v45  ;;  %v5257_v43 = vadd.f32 %v5256_v10, %v5255_v40  ;;  %v5258_v58 = vpop.f32.mrb[230].mxu0  ;;  %v5170_v33 = vpop.f32.mrb[230].mxu1 }
 0x2c0   :  { %v5259_v63 = vpop.f32.mrb[231].mxu0  ;;  %v5171_v50 = vpop.f32.mrb[231].mxu1 }
 0x2c1   :  { %4419 = vst [vmem:[%s7268_s3 + $0x50] sm:$0xff] %v4403_v56   ;;  %v3625_v8 = vadd.f32 %v5169_v53, %v7199_v61  ;;  %v3753_v59 = vadd.f32 %v5257_v43, %v3617_v36  ;;  %v5260_v54 = vadd.f32 %v5259_v63, %v5258_v58 }
 0x2c3   :  { %v3756_v3 = vadd.f32 %v5260_v54, %v3620_v4  ;;  %v3788_v21 = vmax.f32 %v3753_v59, 0.0 }
 0x2c5   :  { %v3789_v34 = vmax.f32 %v3756_v3, 0.0  ;;  %v5261_v23 = vpop.f32.mrb[232].mxu0 }
 0x2c6   :  { %v5262_v39 = vpop.f32.mrb[233].mxu0 }
 0x2c7   :  { %v4408_v17 = vpack.c.bf16 %v3789_v34, %v3788_v21  ;;  %v5263_v16 = vadd.f32 %v5262_v39, %v5261_v23  ;;  %v5264_v48 = vpop.f32.mrb[234].mxu0 }
 0x2c8   :  { %v5265_v62 = vpop.f32.mrb[235].mxu0 }
 0x2c9   :  { %4420 = vst [vmem:[%s7268_s3 + $0x58] sm:$0xff] %v4408_v17   ;;  %v3761_v25 = vadd.f32 %v5263_v16, %v3625_v8 }
 0x2cb   :  { %v3790_v47 = vmax.f32 %v3761_v25, 0.0 }
 0x2cd   :  { %v4349_v57 = vpack.c.bf16 %v3790_v47, %v3790_v47 }
 0x2cf   :  { %3916 = vst [vmem:[%s7268_s3 + $0x60] sm:$0xf] %v4349_v57 }

// kernel: cnn_forward.7
= control target key start
LH: loop header
LB: loop body
LE: loop exit
PB: predicated region body
PF: predicated region fallthrough
CT: control target
= control target key end

     0   :  { %vm1123_vm0 = vmmov 0   ;;  %s1381_s1 = inlined_call_operand.vmem [shape: bf16[1152,128], index: 1, kind: input, shape index: {}]   ;;  %s1382_s0 = inlined_call_operand.vmem [shape: bf16[8,1152], index: 0, kind: input, shape index: {}]   ;;  %s1383_s2 = inlined_call_operand.vmem [shape: f32[1,128], index: 2, kind: input, shape index: {}]   ;;  %s1384_s3 = inlined_call_operand.vmem [shape: f32[8,128], index: 3, kind: output, shape index: {}]  }
   0x1   :  { %v1041_v0 = vld [vmem:[%s1381_s1 + $0x40] sm:$0xff]   ;;  %v1045_v4 = vld [vmem:[%s1381_s1 + $0x48] sm:$0xff]   ;;  %v1049_v8 = vld [vmem:[%s1381_s1 + $0x50] sm:$0xff]  }
   0x2   :  { %v1042_v1 = vld [vmem:[%s1381_s1] sm:$0xff]   ;;  %922 = vmatprep.subr.bf16.mxu0 %v1041_v0  ;;  %v1046_v5 = vld [vmem:[%s1381_s1 + $0x8] sm:$0xff]   ;;  %v1050_v9 = vld [vmem:[%s1381_s1 + $0x10] sm:$0xff]  }
   0x3   :  { %v1043_v2 = vld [vmem:[%s1381_s1 + $0xc0] sm:$0xff]   ;;  %923 = vmatpush3.bf16.msra.mxu0 %v1042_v1  ;;  %v1047_v6 = vld [vmem:[%s1381_s1 + $0xc8] sm:$0xff]   ;;  %v1051_v10 = vld [vmem:[%s1381_s1 + $0xd0] sm:$0xff]  }
   0x4   :  { %v1044_v3 = vld [vmem:[%s1381_s1 + $0x80] sm:$0xff]   ;;  %944 = vmatprep.subr.bf16.mxu1 %v1043_v2  ;;  %924 = vmatprep.subr.bf16.mxu0 %v1045_v4  ;;  %v1048_v7 = vld [vmem:[%s1381_s1 + $0x88] sm:$0xff]   ;;  %v1052_v11 = vld [vmem:[%s1381_s1 + $0x90] sm:$0xff]  }
   0x5   :  { %945 = vmatpush3.bf16.msra.mxu1 %v1044_v3  ;;  %v1053_v12 = vld [vmem:[%s1381_s1 + $0x58] sm:$0xff]   ;;  %v1057_v16 = vld [vmem:[%s1381_s1 + $0x60] sm:$0xff]   ;;  %v1061_v20 = vld [vmem:[%s1381_s1 + $0x68] sm:$0xff]  }
   0x6   :  { %946 = vmatprep.subr.bf16.mxu1 %v1047_v6  ;;  %v1054_v13 = vld [vmem:[%s1381_s1 + $0x18] sm:$0xff]   ;;  %v1058_v17 = vld [vmem:[%s1381_s1 + $0x20] sm:$0xff]   ;;  %v1062_v21 = vld [vmem:[%s1381_s1 + $0x28] sm:$0xff]  }
   0x7   :  { %925 = vmatpush3.bf16.msra.mxu0 %v1046_v5  ;;  %v1055_v14 = vld [vmem:[%s1381_s1 + $0xd8] sm:$0xff]   ;;  %v1059_v18 = vld [vmem:[%s1381_s1 + $0xe0] sm:$0xff]   ;;  %v1063_v22 = vld [vmem:[%s1381_s1 + $0xe8] sm:$0xff]  }
   0x8   :  { %926 = vmatprep.subr.bf16.mxu0 %v1049_v8  ;;  %v1056_v15 = vld [vmem:[%s1381_s1 + $0x98] sm:$0xff]   ;;  %v1060_v19 = vld [vmem:[%s1381_s1 + $0xa0] sm:$0xff]   ;;  %v1064_v23 = vld [vmem:[%s1381_s1 + $0xa8] sm:$0xff]  }
   0x9   :  { %947 = vmatpush3.bf16.msra.mxu1 %v1048_v7  ;;  %v1065_v24 = vld [vmem:[%s1381_s1 + $0x70] sm:$0xff]   ;;  %v1069_v28 = vld [vmem:[%s1381_s1 + $0x78] sm:$0xff]   ;;  %v15_v31 = vld [vmem:[%s1382_s0] sm:$0xff] }
   0xa   :  { %948 = vmatprep.subr.bf16.mxu1 %v1051_v10  ;;  %v1066_v25 = vld [vmem:[%s1381_s1 + $0x30] sm:$0xff]   ;;  %v1070_v29 = vld [vmem:[%s1381_s1 + $0x38] sm:$0xff]   ;;  %v841_v32 = vcombine.low %v15_v31, %v15_v31  ;;  %v842_v33 = vcombine.high %v15_v31, %v15_v31  ;;  %v1075_v35 = vld [vmem:[%s1381_s1 + $0x140] sm:$0xff]  }
   0xb   :  { %927 = vmatpush3.bf16.msra.mxu0 %v1050_v9  ;;  %v1067_v26 = vld [vmem:[%s1381_s1 + $0xf0] sm:$0xff]   ;;  %v1071_v30 = vld [vmem:[%s1381_s1 + $0xf8] sm:$0xff]   ;;  %v16_v36 = vld [vmem:[%s1382_s0 + $0x8] sm:$0xff]  ;;  %v1122_v9 = vmov 0.0  }
   0xc   :  { %928 = vmatprep.subr.bf16.mxu0 %v1053_v12  ;;  %v1068_v27 = vld [vmem:[%s1381_s1 + $0xb0] sm:$0xff]   ;;  %v1074_v34 = vld [vmem:[%s1381_s1 + $0xb8] sm:$0xff]   ;;  %667 = vmatprep.mubr.bf16.mxu0 %v842_v33  ;;  %v843_v37 = vcombine.low %v16_v36, %v16_v36  ;;  %v844_v38 = vcombine.high %v16_v36, %v16_v36  ;;  %v1078_v39 = vld [vmem:[%s1381_s1 + $0x100] sm:$0xff]  }
   0xd   :  { %949 = vmatpush3.bf16.msra.mxu1 %v1052_v11  ;;  %v1079_v40 = vld [vmem:[%s1381_s1 + $0x1c0] sm:$0xff]   ;;  %v1081_v42 = vld [vmem:[%s1381_s1 + $0x148] sm:$0xff]   ;;  %v1085_v46 = vld [vmem:[%s1381_s1 + $0x150] sm:$0xff]  }
   0xe   :  { %950 = vmatprep.subr.bf16.mxu1 %v1055_v14  ;;  %707 = vmatprep.mubr.bf16.mxu1 %v844_v38  ;;  %v1080_v41 = vld [vmem:[%s1381_s1 + $0x180] sm:$0xff]   ;;  %v1082_v43 = vld [vmem:[%s1381_s1 + $0x108] sm:$0xff]   ;;  %v1086_v47 = vld [vmem:[%s1381_s1 + $0x110] sm:$0xff]  }
   0xf   :  { %929 = vmatpush3.bf16.msra.mxu0 %v1054_v13  ;;  %v1083_v44 = vld [vmem:[%s1381_s1 + $0x1c8] sm:$0xff]   ;;  %v1087_v48 = vld [vmem:[%s1381_s1 + $0x1d0] sm:$0xff]   ;;  %v1089_v50 = vld [vmem:[%s1381_s1 + $0x158] sm:$0xff]  }
  0x10   :  { %930 = vmatprep.subr.bf16.mxu0 %v1057_v16  ;;  %v1084_v45 = vld [vmem:[%s1381_s1 + $0x188] sm:$0xff]   ;;  %v1088_v49 = vld [vmem:[%s1381_s1 + $0x190] sm:$0xff]   ;;  %v1090_v51 = vld [vmem:[%s1381_s1 + $0x118] sm:$0xff]  }
  0x11   :  { %951 = vmatpush3.bf16.msra.mxu1 %v1056_v15  ;;  %v1091_v52 = vld [vmem:[%s1381_s1 + $0x1d8] sm:$0xff]   ;;  %v1093_v54 = vld [vmem:[%s1381_s1 + $0x160] sm:$0xff]   ;;  %v1097_v58 = vld [vmem:[%s1381_s1 + $0x168] sm:$0xff]  }
  0x12   :  { %952 = vmatprep.subr.bf16.mxu1 %v1059_v18  ;;  %v1092_v53 = vld [vmem:[%s1381_s1 + $0x198] sm:$0xff]   ;;  %v1094_v55 = vld [vmem:[%s1381_s1 + $0x120] sm:$0xff]   ;;  %v1098_v59 = vld [vmem:[%s1381_s1 + $0x128] sm:$0xff]  }
  0x13   :  { %931 = vmatpush3.bf16.msra.mxu0 %v1058_v17  ;;  %v1095_v56 = vld [vmem:[%s1381_s1 + $0x1e0] sm:$0xff]   ;;  %v1099_v60 = vld [vmem:[%s1381_s1 + $0x1e8] sm:$0xff]   ;;  %v1101_v62 = vld [vmem:[%s1381_s1 + $0x170] sm:$0xff]  }
  0x14   :  { %932 = vmatprep.subr.bf16.mxu0 %v1061_v20  ;;  %v1096_v57 = vld [vmem:[%s1381_s1 + $0x1a0] sm:$0xff]   ;;  %v1100_v61 = vld [vmem:[%s1381_s1 + $0x1a8] sm:$0xff]   ;;  %v1102_v63 = vld [vmem:[%s1381_s1 + $0x130] sm:$0xff]  }
  0x15   :  { %953 = vmatpush3.bf16.msra.mxu1 %v1060_v19  ;;  %v1103_v0 = vld [vmem:[%s1381_s1 + $0x1f0] sm:$0xff]   ;;  %v1105_v2 = vld [vmem:[%s1381_s1 + $0x178] sm:$0xff]   ;;  %v1113_v13 = vld [vmem:[%s1381_s1 + $0x200] sm:$0xff]  }
  0x16   :  { %954 = vmatprep.subr.bf16.mxu1 %v1063_v22  ;;  %v1104_v1 = vld [vmem:[%s1381_s1 + $0x1b0] sm:$0xff]   ;;  %v1106_v3 = vld [vmem:[%s1381_s1 + $0x138] sm:$0xff]   ;;  %v1114_v14 = vld [vmem:[%s1381_s1 + $0x208] sm:$0xff]  }
  0x17   :  { %933 = vmatpush3.bf16.msra.mxu0 %v1062_v21  ;;  %v1107_v4 = vld [vmem:[%s1381_s1 + $0x1f8] sm:$0xff]   ;;  %v17_v5 = vld [vmem:[%s1382_s0 + $0x10] sm:$0xff]  ;;  %v1117_v17 = vld [vmem:[%s1381_s1 + $0x220] sm:$0xff]  }
  0x18   :  { %934 = vmatprep.subr.bf16.mxu0 %v1065_v24  ;;  %v845_v6 = vcombine.low %v17_v5, %v17_v5  ;;  %v846_v7 = vcombine.high %v17_v5, %v17_v5  ;;  %v1110_v8 = vld [vmem:[%s1381_s1 + $0x1b8] sm:$0xff]   ;;  %v1115_v15 = vld [vmem:[%s1381_s1 + $0x210] sm:$0xff]   ;;  %v1118_v18 = vld [vmem:[%s1381_s1 + $0x228] sm:$0xff]  }
  0x19   :  { %955 = vmatpush3.bf16.msra.mxu1 %v1064_v23  ;;  %v18_v10 = vld [vmem:[%s1382_s0 + $0x18] sm:$0xff]  ;;  %v1119_v19 = vld [vmem:[%s1381_s1 + $0x230] sm:$0xff]   ;;  %v1121_v21 = vld [vmem:[%s1382_s0 + $0x20] ss:$0 sps:$4 sm:$0xff]  }
  0x1a   :  { %956 = vmatprep.subr.bf16.mxu1 %v1067_v26  ;;  %v847_v11 = vcombine.low %v18_v10, %v18_v10  ;;  %v848_v12 = vcombine.high %v18_v10, %v18_v10  ;;  %v1116_v16 = vld [vmem:[%s1381_s1 + $0x218] sm:$0xff]   ;;  %v840_v23 = vld [vmem:[%s1383_s2] ss:$0 sm:$0xff] }
  0x1b   :  { %935 = vmatpush3.bf16.msra.mxu0 %v1066_v25  ;;  %v1120_v20 = vld [vmem:[%s1381_s1 + $0x238] sm:$0xff]  }
  0x1c   :  { %936 = vmatprep.subr.bf16.mxu0 %v1069_v28 }
  0x1d   :  { %957 = vmatpush3.bf16.msra.mxu1 %v1068_v27 }
  0x1e   :  { %958 = vmatprep.subr.bf16.mxu1 %v1071_v30 }
  0x1f   :  { %937 = vmatpush3.bf16.msra.mxu0 %v1070_v29 }
  0x20   :  { %966 = vmatprep.subr.bf16.mxu0 %v1075_v35 }
  0x21   :  { %959 = vmatpush3.bf16.msra.mxu1 %v1074_v34 }
  0x22   :  { %668 = vmatmul.mubr.bf16.vlgmr.msra.gmra.mrb[0].mxu0 %v841_v32  ;;  %988 = vmatprep.subr.bf16.mxu1 %v1079_v40 }
  0x23   :  { %967 = vmatpush3.bf16.msra.mxu0 %v1078_v39  ;;  %747 = vmatprep.mubr.bf16.mxu0 %v846_v7 }
  0x24   :  { %708 = vmatmul.mubr.bf16.vlgmr.msra.gmra.mrb[0].mxu1 %v843_v37  ;;  %968 = vmatprep.subr.bf16.mxu0 %v1081_v42 }
  0x25   :  { %989 = vmatpush3.bf16.msra.mxu1 %v1080_v41  ;;  %787 = vmatprep.mubr.bf16.mxu1 %v848_v12 }
  0x26   :  { %990 = vmatprep.subr.bf16.mxu1 %v1083_v44 }
  0x27   :  { %969 = vmatpush3.bf16.msra.mxu0 %v1082_v43 }
  0x28   :  { %970 = vmatprep.subr.bf16.mxu0 %v1085_v46 }
  0x29   :  { %991 = vmatpush3.bf16.msra.mxu1 %v1084_v45 }
  0x2a   :  { %992 = vmatprep.subr.bf16.mxu1 %v1087_v48 }
  0x2b   :  { %971 = vmatpush3.bf16.msra.mxu0 %v1086_v47 }
  0x2c   :  { %972 = vmatprep.subr.bf16.mxu0 %v1089_v50 }
  0x2d   :  { %993 = vmatpush3.bf16.msra.mxu1 %v1088_v49 }
  0x2e   :  { %994 = vmatprep.subr.bf16.mxu1 %v1091_v52 }
  0x2f   :  { %973 = vmatpush3.bf16.msra.mxu0 %v1090_v51 }
  0x30   :  { %974 = vmatprep.subr.bf16.mxu0 %v1093_v54 }
  0x31   :  { %995 = vmatpush3.bf16.msra.mxu1 %v1092_v53 }
  0x32   :  { %996 = vmatprep.subr.bf16.mxu1 %v1095_v56 }
  0x33   :  { %975 = vmatpush3.bf16.msra.mxu0 %v1094_v55 }
  0x34   :  { %976 = vmatprep.subr.bf16.mxu0 %v1097_v58 }
  0x35   :  { %997 = vmatpush3.bf16.msra.mxu1 %v1096_v57 }
  0x36   :  { %998 = vmatprep.subr.bf16.mxu1 %v1099_v60 }
  0x37   :  { %977 = vmatpush3.bf16.msra.mxu0 %v1098_v59 }
  0x38   :  { %978 = vmatprep.subr.bf16.mxu0 %v1101_v62 }
  0x39   :  { %999 = vmatpush3.bf16.msra.mxu1 %v1100_v61 }
  0x3a   :  { %1000 = vmatprep.subr.bf16.mxu1 %v1103_v0 }
  0x3b   :  { %979 = vmatpush3.bf16.msra.mxu0 %v1102_v63 }
  0x3c   :  { %980 = vmatprep.subr.bf16.mxu0 %v1105_v2 }
  0x3d   :  { %1001 = vmatpush3.bf16.msra.mxu1 %v1104_v1 }
  0x3e   :  { %1002 = vmatprep.subr.bf16.mxu1 %v1107_v4 }
  0x3f   :  { %981 = vmatpush3.bf16.msra.mxu0 %v1106_v3 }
  0x40   :  { %1019 = vmatprep.subr.bf16.mxu0 %v1122_v9 }
  0x41   :  { %1003 = vmatpush3.bf16.msra.mxu1 %v1110_v8 }
  0x42   :  { %748 = vmatmul.mubr.bf16.vlgmr.msra.gmra.mrb[4].mxu0 %v845_v6 }
  0x43   :  { %1020 = vmatpush3.bf16.msra.mxu0 %v1113_v13  ;;  %1035 = vmatprep.mubr.msk.bf16.mxu0 %vm1123_vm0, %v1122_v9 }
  0x44   :  { %788 = vmatmul.mubr.bf16.vlgmr.msra.gmra.mrb[4].mxu1 %v847_v11  ;;  %1021 = vmatprep.subr.bf16.mxu0 %v1122_v9 }
  0x47   :  { %1022 = vmatpush3.bf16.msra.mxu0 %v1114_v14 }
  0x48   :  { %1023 = vmatprep.subr.bf16.mxu0 %v1122_v9 }
  0x4b   :  { %1024 = vmatpush3.bf16.msra.mxu0 %v1115_v15 }
  0x4c   :  { %1025 = vmatprep.subr.bf16.mxu0 %v1122_v9 }
  0x4f   :  { %1026 = vmatpush3.bf16.msra.mxu0 %v1116_v16 }
  0x50   :  { %1027 = vmatprep.subr.bf16.mxu0 %v1122_v9 }
  0x53   :  { %1028 = vmatpush3.bf16.msra.mxu0 %v1117_v17 }
  0x54   :  { %1029 = vmatprep.subr.bf16.mxu0 %v1122_v9 }
  0x57   :  { %1030 = vmatpush3.bf16.msra.mxu0 %v1118_v18 }
  0x58   :  { %1031 = vmatprep.subr.bf16.mxu0 %v1122_v9 }
  0x5b   :  { %1032 = vmatpush3.bf16.msra.mxu0 %v1119_v19 }
  0x5c   :  { %1033 = vmatprep.subr.bf16.mxu0 %v1122_v9 }
  0x5f   :  { %1034 = vmatpush3.bf16.msra.mxu0 %v1120_v20 }
  0x62   :  { %1036 = vmatmul.mubr.bf16.vlgmr.msra.gmra.mrb[8].mxu0 %v1121_v21 }
  0xf5   :  { %v938_v22 = vpop.f32.mrb[0].mxu0 }
  0xf6   :  { %v939_v24 = vpop.f32.mrb[1].mxu0 }
  0xf7   :  { %v940_v25 = vadd.f32 %v939_v24, %v938_v22  ;;  %v941_v26 = vpop.f32.mrb[2].mxu0  ;;  %v960_v27 = vpop.f32.mrb[0].mxu1 }
  0xf8   :  { %v942_v28 = vpop.f32.mrb[3].mxu0  ;;  %v961_v29 = vpop.f32.mrb[1].mxu1 }
  0xf9   :  { %v670_v30 = vadd.f32 %v940_v25, %v840_v23  ;;  %v962_v31 = vadd.f32 %v961_v29, %v960_v27  ;;  %v963_v32 = vpop.f32.mrb[2].mxu1 }
  0xfa   :  { %v964_v33 = vpop.f32.mrb[3].mxu1 }
  0xfb   :  { %v710_v34 = vadd.f32 %v962_v31, %v670_v30 }
 0x115   :  { %v982_v35 = vpop.f32.mrb[4].mxu0 }
 0x116   :  { %v983_v36 = vpop.f32.mrb[5].mxu0 }
 0x117   :  { %v984_v37 = vadd.f32 %v983_v36, %v982_v35  ;;  %v985_v38 = vpop.f32.mrb[6].mxu0  ;;  %v1004_v39 = vpop.f32.mrb[4].mxu1 }
 0x118   :  { %v986_v40 = vpop.f32.mrb[7].mxu0  ;;  %v1005_v41 = vpop.f32.mrb[5].mxu1 }
 0x119   :  { %v750_v42 = vadd.f32 %v984_v37, %v710_v34  ;;  %v1006_v43 = vadd.f32 %v1005_v41, %v1004_v39  ;;  %v1007_v44 = vpop.f32.mrb[6].mxu1 }
 0x11a   :  { %v1008_v45 = vpop.f32.mrb[7].mxu1 }
 0x11b   :  { %v790_v46 = vadd.f32 %v1006_v43, %v750_v42 }
 0x135   :  { %v829_v47 = vpop.f32.mrb[8].mxu0 }
 0x136   :  { %v830_v48 = vadd.f32 %v829_v47, %v790_v46  ;;  %v1037_v49 = vpop.f32.mrb[9].mxu0 }
 0x137   :  { %v832_v50 = vpop.f32.mrb[10].mxu0 }
 0x138   :  { %835 = vst [vmem:[%s1384_s3] sm:$0xff] %v830_v48  ;;  %v1038_v51 = vpop.f32.mrb[11].mxu0 }

// kernel: cnn_forward.6
= control target key start
LH: loop header
LB: loop body
LE: loop exit
PB: predicated region body
PF: predicated region fallthrough
CT: control target
= control target key end

     0   :  { %s4155_s1 = inlined_call_operand.vmem [shape: bf16[3200,128], index: 1, kind: input, shape index: {}]   ;;  %s4156_s0 = inlined_call_operand.vmem [shape: bf16[24,3200], index: 0, kind: input, shape index: {}]   ;;  %s4157_s2 = inlined_call_operand.vmem [shape: f32[1,128], index: 2, kind: input, shape index: {}]   ;;  %s4158_s3 = inlined_call_operand.vmem [shape: bf16[24,128], index: 3, kind: output, shape index: {}]  }
   0x1   :  { %v3150_v0 = vld [vmem:[%s4155_s1 + $0x40] sm:$0xff]   ;;  %v3154_v4 = vld [vmem:[%s4155_s1 + $0x48] sm:$0xff]   ;;  %v3158_v8 = vld [vmem:[%s4155_s1 + $0x50] sm:$0xff]  }
   0x2   :  { %v3151_v1 = vld [vmem:[%s4155_s1] sm:$0xff]   ;;  %2784 = vmatprep.subr.bf16.mxu0 %v3150_v0  ;;  %v3155_v5 = vld [vmem:[%s4155_s1 + $0x8] sm:$0xff]   ;;  %v3159_v9 = vld [vmem:[%s4155_s1 + $0x10] sm:$0xff]  }
   0x3   :  { %v3152_v2 = vld [vmem:[%s4155_s1 + $0xc0] sm:$0xff]   ;;  %2785 = vmatpush3.bf16.msra.mxu0 %v3151_v1  ;;  %v3156_v6 = vld [vmem:[%s4155_s1 + $0xc8] sm:$0xff]   ;;  %v3160_v10 = vld [vmem:[%s4155_s1 + $0xd0] sm:$0xff]  }
   0x4   :  { %v3153_v3 = vld [vmem:[%s4155_s1 + $0x80] sm:$0xff]   ;;  %2812 = vmatprep.subr.bf16.mxu1 %v3152_v2  ;;  %2786 = vmatprep.subr.bf16.mxu0 %v3154_v4  ;;  %v3157_v7 = vld [vmem:[%s4155_s1 + $0x88] sm:$0xff]   ;;  %v3161_v11 = vld [vmem:[%s4155_s1 + $0x90] sm:$0xff]  }
   0x5   :  { %2813 = vmatpush3.bf16.msra.mxu1 %v3153_v3  ;;  %v3162_v12 = vld [vmem:[%s4155_s1 + $0x58] sm:$0xff]   ;;  %v3166_v16 = vld [vmem:[%s4155_s1 + $0x60] sm:$0xff]   ;;  %v3170_v20 = vld [vmem:[%s4155_s1 + $0x68] sm:$0xff]  }
   0x6   :  { %2814 = vmatprep.subr.bf16.mxu1 %v3156_v6  ;;  %v3163_v13 = vld [vmem:[%s4155_s1 + $0x18] sm:$0xff]   ;;  %v3167_v17 = vld [vmem:[%s4155_s1 + $0x20] sm:$0xff]   ;;  %v3171_v21 = vld [vmem:[%s4155_s1 + $0x28] sm:$0xff]  }
   0x7   :  { %2787 = vmatpush3.bf16.msra.mxu0 %v3155_v5  ;;  %v3164_v14 = vld [vmem:[%s4155_s1 + $0xd8] sm:$0xff]   ;;  %v3168_v18 = vld [vmem:[%s4155_s1 + $0xe0] sm:$0xff]   ;;  %v3172_v22 = vld [vmem:[%s4155_s1 + $0xe8] sm:$0xff]  }
   0x8   :  { %2788 = vmatprep.subr.bf16.mxu0 %v3158_v8  ;;  %v3165_v15 = vld [vmem:[%s4155_s1 + $0x98] sm:$0xff]   ;;  %v3169_v19 = vld [vmem:[%s4155_s1 + $0xa0] sm:$0xff]   ;;  %v3173_v23 = vld [vmem:[%s4155_s1 + $0xa8] sm:$0xff]  }
   0x9   :  { %2815 = vmatpush3.bf16.msra.mxu1 %v3157_v7  ;;  %v3174_v24 = vld [vmem:[%s4155_s1 + $0x70] sm:$0xff]   ;;  %v3178_v28 = vld [vmem:[%s4155_s1 + $0x78] sm:$0xff]   ;;  %v3181_v31 = vld [vmem:[%s4156_s0] ss:$100 sps:$4 sm:$0xff]  }
   0xa   :  { %2816 = vmatprep.subr.bf16.mxu1 %v3160_v10  ;;  %v3175_v25 = vld [vmem:[%s4155_s1 + $0x30] sm:$0xff]   ;;  %v3179_v29 = vld [vmem:[%s4155_s1 + $0x38] sm:$0xff]   ;;  %v3183_v32 = vld [vmem:[%s4156_s0 + $0x4] ss:$100 sps:$4 sm:$0xff]  }
   0xb   :  { %2789 = vmatpush3.bf16.msra.mxu0 %v3159_v9  ;;  %v3176_v26 = vld [vmem:[%s4155_s1 + $0xf0] sm:$0xff]   ;;  %v3180_v30 = vld [vmem:[%s4155_s1 + $0xf8] sm:$0xff]   ;;  %1907 = vmatprep.mubr.bf16.mxu0 %v3183_v32  ;;  %v3185_v34 = vld [vmem:[%s4155_s1 + $0x140] sm:$0xff]  }
   0xc   :  { %2790 = vmatprep.subr.bf16.mxu0 %v3162_v12  ;;  %v3177_v27 = vld [vmem:[%s4155_s1 + $0xb0] sm:$0xff]   ;;  %v3184_v33 = vld [vmem:[%s4155_s1 + $0xb8] sm:$0xff]   ;;  %v3186_v35 = vld [vmem:[%s4156_s0 + $0x8] ss:$100 sps:$4 sm:$0xff]  }
   0xd   :  { %2817 = vmatpush3.bf16.msra.mxu1 %v3161_v11  ;;  %v3188_v36 = vld [vmem:[%s4156_s0 + $0xc] ss:$100 sps:$4 sm:$0xff]   ;;  %v3189_v37 = vld [vmem:[%s4155_s1 + $0x100] sm:$0xff]   ;;  %v3200_v48 = vld [vmem:[%s4155_s1 + $0x158] sm:$0xff]  }
   0xe   :  { %2818 = vmatprep.subr.bf16.mxu1 %v3164_v14  ;;  %1955 = vmatprep.mubr.bf16.mxu1 %v3188_v36  ;;  %v3190_v38 = vld [vmem:[%s4155_s1 + $0x1c0] sm:$0xff]   ;;  %v3192_v40 = vld [vmem:[%s4155_s1 + $0x148] sm:$0xff]   ;;  %v3196_v44 = vld [vmem:[%s4155_s1 + $0x150] sm:$0xff]  }
   0xf   :  { %2791 = vmatpush3.bf16.msra.mxu0 %v3163_v13  ;;  %v3191_v39 = vld [vmem:[%s4155_s1 + $0x180] sm:$0xff]   ;;  %v3193_v41 = vld [vmem:[%s4155_s1 + $0x108] sm:$0xff]   ;;  %v3197_v45 = vld [vmem:[%s4155_s1 + $0x110] sm:$0xff]  }
  0x10   :  { %2792 = vmatprep.subr.bf16.mxu0 %v3166_v16  ;;  %v3194_v42 = vld [vmem:[%s4155_s1 + $0x1c8] sm:$0xff]   ;;  %v3198_v46 = vld [vmem:[%s4155_s1 + $0x1d0] sm:$0xff]   ;;  %v3201_v49 = vld [vmem:[%s4155_s1 + $0x118] sm:$0xff]  }
  0x11   :  { %2819 = vmatpush3.bf16.msra.mxu1 %v3165_v15  ;;  %v3195_v43 = vld [vmem:[%s4155_s1 + $0x188] sm:$0xff]   ;;  %v3199_v47 = vld [vmem:[%s4155_s1 + $0x190] sm:$0xff]   ;;  %v3202_v50 = vld [vmem:[%s4155_s1 + $0x1d8] sm:$0xff]  }
  0x12   :  { %2820 = vmatprep.subr.bf16.mxu1 %v3168_v18  ;;  %v3203_v51 = vld [vmem:[%s4155_s1 + $0x198] sm:$0xff]   ;;  %v3204_v52 = vld [vmem:[%s4155_s1 + $0x160] sm:$0xff]   ;;  %v3208_v56 = vld [vmem:[%s4155_s1 + $0x168] sm:$0xff]  }
  0x13   :  { %2793 = vmatpush3.bf16.msra.mxu0 %v3167_v17  ;;  %v3205_v53 = vld [vmem:[%s4155_s1 + $0x120] sm:$0xff]   ;;  %v41_v57 = vld [vmem:[%s4156_s0 + $0xc8] sm:$0xff]  ;;  %v3214_v63 = vld [vmem:[%s4155_s1 + $0x170] sm:$0xff]  }
  0x14   :  { %2794 = vmatprep.subr.bf16.mxu0 %v3170_v20  ;;  %v3206_v54 = vld [vmem:[%s4155_s1 + $0x1e0] sm:$0xff]   ;;  %v2549_v58 = vcombine.high %v41_v57, %v41_v57  ;;  %v3210_v59 = vld [vmem:[%s4155_s1 + $0x128] sm:$0xff]   ;;  %v2548_v60 = vcombine.low %v41_v57, %v41_v57  ;;  %v42_v0 = vld [vmem:[%s4156_s0 + $0xd0] sm:$0xff] }
  0x15   :  { %2821 = vmatpush3.bf16.msra.mxu1 %v3169_v19  ;;  %v3207_v55 = vld [vmem:[%s4155_s1 + $0x1a0] sm:$0xff]   ;;  %v3212_v61 = vld [vmem:[%s4155_s1 + $0x1e8] sm:$0xff]   ;;  %v2551_v1 = vcombine.high %v42_v0, %v42_v0  ;;  %v3216_v2 = vld [vmem:[%s4155_s1 + $0x130] sm:$0xff]   ;;  %v2550_v3 = vcombine.low %v42_v0, %v42_v0 }
  0x16   :  { %2822 = vmatprep.subr.bf16.mxu1 %v3172_v22  ;;  %v3213_v62 = vld [vmem:[%s4155_s1 + $0x1a8] sm:$0xff]   ;;  %v3218_v4 = vld [vmem:[%s4155_s1 + $0x1f0] sm:$0xff]   ;;  %v3220_v6 = vld [vmem:[%s4155_s1 + $0x178] sm:$0xff]  }
  0x17   :  { %2795 = vmatpush3.bf16.msra.mxu0 %v3171_v21  ;;  %v3219_v5 = vld [vmem:[%s4155_s1 + $0x1b0] sm:$0xff]   ;;  %v3221_v7 = vld [vmem:[%s4155_s1 + $0x138] sm:$0xff]   ;;  %v3227_v12 = vld [vmem:[%s4155_s1 + $0x240] sm:$0xff]  }
  0x18   :  { %2796 = vmatprep.subr.bf16.mxu0 %v3174_v24  ;;  %v3222_v8 = vld [vmem:[%s4155_s1 + $0x1f8] sm:$0xff]   ;;  %v3223_v9 = vld [vmem:[%s4156_s0 + $0x10] ss:$100 sps:$4 sm:$0xff]   ;;  %v3231_v15 = vld [vmem:[%s4155_s1 + $0x200] sm:$0xff]  }
  0x19   :  { %2823 = vmatpush3.bf16.msra.mxu1 %v3173_v23  ;;  %v3225_v10 = vld [vmem:[%s4156_s0 + $0x14] ss:$100 sps:$4 sm:$0xff]   ;;  %v3230_v14 = vld [vmem:[%s4156_s0 + $0x1c] ss:$100 sps:$4 sm:$0xff]   ;;  %v3234_v18 = vld [vmem:[%s4155_s1 + $0x248] sm:$0xff]  }
  0x1a   :  { %2824 = vmatprep.subr.bf16.mxu1 %v3176_v26  ;;  %v3226_v11 = vld [vmem:[%s4155_s1 + $0x1b8] sm:$0xff]   ;;  %v3232_v16 = vld [vmem:[%s4155_s1 + $0x2c0] sm:$0xff]   ;;  %v3235_v19 = vld [vmem:[%s4155_s1 + $0x208] sm:$0xff]  }
  0x1b   :  { %2797 = vmatpush3.bf16.msra.mxu0 %v3175_v25  ;;  %v3228_v13 = vld [vmem:[%s4156_s0 + $0x18] ss:$100 sps:$4 sm:$0xff]   ;;  %v3233_v17 = vld [vmem:[%s4155_s1 + $0x280] sm:$0xff]   ;;  %v3236_v20 = vld [vmem:[%s4155_s1 + $0x2c8] sm:$0xff]  }
  0x1c   :  { %2798 = vmatprep.subr.bf16.mxu0 %v3178_v28  ;;  %v43_v21 = vld [vmem:[%s4156_s0 + $0xd8] sm:$0xff]  ;;  %v3238_v23 = vld [vmem:[%s4155_s1 + $0x288] sm:$0xff]   ;;  %v3240_v25 = vld [vmem:[%s4155_s1 + $0x250] sm:$0xff]  }
  0x1d   :  { %2825 = vmatpush3.bf16.msra.mxu1 %v3177_v27  ;;  %v2553_v22 = vcombine.high %v43_v21, %v43_v21  ;;  %v2552_v24 = vcombine.low %v43_v21, %v43_v21  ;;  %v44_v26 = vld [vmem:[%s4156_s0 + $0xe0] sm:$0xff]  ;;  %v3242_v28 = vld [vmem:[%s4155_s1 + $0x210] sm:$0xff]   ;;  %v3246_v32 = vld [vmem:[%s4155_s1 + $0x258] sm:$0xff]  }
  0x1e   :  { %2826 = vmatprep.subr.bf16.mxu1 %v3180_v30  ;;  %v2555_v27 = vcombine.high %v44_v26, %v44_v26  ;;  %v3244_v30 = vld [vmem:[%s4155_s1 + $0x2d0] sm:$0xff]   ;;  %v3250_v36 = vld [vmem:[%s4155_s1 + $0x260] sm:$0xff]   ;;  %v3299_v21 = vld [vmem:[%s4155_s1 + $0x3a8] sm:$0xff]  }
  0x1f   :  { %2799 = vmatpush3.bf16.msra.mxu0 %v3179_v29  ;;  %v2554_v29 = vcombine.low %v44_v26, %v44_v26  ;;  %v3273_v57 = vld [vmem:[%s4155_s1 + $0x300] sm:$0xff]   ;;  %v3304_v26 = vld [vmem:[%s4155_s1 + $0x378] sm:$0xff]  }
  0x20   :  { %2840 = vmatprep.subr.bf16.mxu0 %v3185_v34  ;;  %v3248_v34 = vld [vmem:[%s4155_s1 + $0x2d8] sm:$0xff]  }
  0x21   :  { %2827 = vmatpush3.bf16.msra.mxu1 %v3184_v33  ;;  %v3247_v33 = vld [vmem:[%s4155_s1 + $0x218] sm:$0xff]  }
  0x22   :  { %1908 = vmatmul.mubr.bf16.vlgmr.msra.gmra.mrb[0].mxu0 %v3181_v31  ;;  %2868 = vmatprep.subr.bf16.mxu1 %v3190_v38  ;;  %v3245_v31 = vld [vmem:[%s4155_s1 + $0x290] sm:$0xff]   ;;  %v3252_v38 = vld [vmem:[%s4155_s1 + $0x2e0] sm:$0xff]  }
  0x23   :  { %2841 = vmatpush3.bf16.msra.mxu0 %v3189_v37  ;;  %1915 = vmatprep.mubr.bf16.mxu0 %v2549_v58  ;;  %v3251_v37 = vld [vmem:[%s4155_s1 + $0x220] sm:$0xff]  }
  0x24   :  { %1956 = vmatmul.mubr.bf16.vlgmr.msra.gmra.mrb[0].mxu1 %v3186_v35  ;;  %2842 = vmatprep.subr.bf16.mxu0 %v3192_v40  ;;  %v3249_v35 = vld [vmem:[%s4155_s1 + $0x298] sm:$0xff]   ;;  %v3254_v40 = vld [vmem:[%s4155_s1 + $0x268] sm:$0xff]   ;;  %v3274_v58 = vld [vmem:[%s4155_s1 + $0x3c0] sm:$0xff]  }
  0x25   :  { %2869 = vmatpush3.bf16.msra.mxu1 %v3191_v39  ;;  %1963 = vmatprep.mubr.bf16.mxu1 %v2551_v1  ;;  %v3253_v39 = vld [vmem:[%s4155_s1 + $0x2a0] sm:$0xff]   ;;  %v3280_v1 = vld [vmem:[%s4155_s1 + $0x388] sm:$0xff]  }
  0x26   :  { %2870 = vmatprep.subr.bf16.mxu1 %v3194_v42  ;;  %v3256_v42 = vld [vmem:[%s4155_s1 + $0x2e8] sm:$0xff]  }
  0x27   :  { %2843 = vmatpush3.bf16.msra.mxu0 %v3193_v41  ;;  %v3255_v41 = vld [vmem:[%s4155_s1 + $0x228] sm:$0xff]  }
  0x28   :  { %2844 = vmatprep.subr.bf16.mxu0 %v3196_v44  ;;  %v3258_v44 = vld [vmem:[%s4155_s1 + $0x270] sm:$0xff]  }
  0x29   :  { %2871 = vmatpush3.bf16.msra.mxu1 %v3195_v43  ;;  %v3257_v43 = vld [vmem:[%s4155_s1 + $0x2a8] sm:$0xff]  }
  0x2a   :  { %2872 = vmatprep.subr.bf16.mxu1 %v3198_v46  ;;  %1916 = vmatmul.mubr.bf16.gmra.mrb[4].mxu0 %v2548_v60  ;;  %v3260_v46 = vld [vmem:[%s4155_s1 + $0x2f0] sm:$0xff]   ;;  %v3276_v60 = vld [vmem:[%s4155_s1 + $0x348] sm:$0xff]  }
  0x2b   :  { %2845 = vmatpush3.bf16.msra.mxu0 %v3197_v45  ;;  %2003 = vmatprep.mubr.bf16.mxu0 %v3225_v10  ;;  %v3259_v45 = vld [vmem:[%s4155_s1 + $0x230] sm:$0xff]   ;;  %v3288_v10 = vld [vmem:[%s4155_s1 + $0x358] sm:$0xff]  }
  0x2c   :  { %2846 = vmatprep.subr.bf16.mxu0 %v3200_v48  ;;  %1964 = vmatmul.mubr.bf16.gmra.mrb[4].mxu1 %v2550_v3  ;;  %v3262_v48 = vld [vmem:[%s4155_s1 + $0x278] sm:$0xff]   ;;  %v3282_v3 = vld [vmem:[%s4155_s1 + $0x350] sm:$0xff]  }
  0x2d   :  { %2873 = vmatpush3.bf16.msra.mxu1 %v3199_v47  ;;  %2051 = vmatprep.mubr.bf16.mxu1 %v3230_v14  ;;  %v3261_v47 = vld [vmem:[%s4155_s1 + $0x2b0] sm:$0xff]   ;;  %v3292_v14 = vld [vmem:[%s4155_s1 + $0x360] sm:$0xff]  }
  0x2e   :  { %2874 = vmatprep.subr.bf16.mxu1 %v3202_v50  ;;  %v3264_v50 = vld [vmem:[%s4155_s1 + $0x2f8] sm:$0xff]  }
  0x2f   :  { %2847 = vmatpush3.bf16.msra.mxu0 %v3201_v49  ;;  %v3263_v49 = vld [vmem:[%s4155_s1 + $0x238] sm:$0xff]  }
  0x30   :  { %2848 = vmatprep.subr.bf16.mxu0 %v3204_v52  ;;  %v3267_v52 = vld [vmem:[%s4156_s0 + $0x24] ss:$100 sps:$4 sm:$0xff]  }
  0x31   :  { %2875 = vmatpush3.bf16.msra.mxu1 %v3203_v51  ;;  %v3265_v51 = vld [vmem:[%s4156_s0 + $0x20] ss:$100 sps:$4 sm:$0xff]  }
  0x32   :  { %2876 = vmatprep.subr.bf16.mxu1 %v3206_v54  ;;  %v3269_v54 = vld [vmem:[%s4155_s1 + $0x340] sm:$0xff]  }
  0x33   :  { %2849 = vmatpush3.bf16.msra.mxu0 %v3205_v53  ;;  %v3268_v53 = vld [vmem:[%s4155_s1 + $0x2b8] sm:$0xff]  }
  0x34   :  { %2850 = vmatprep.subr.bf16.mxu0 %v3208_v56  ;;  %v3272_v56 = vld [vmem:[%s4156_s0 + $0x2c] ss:$100 sps:$4 sm:$0xff]  }
  0x35   :  { %2877 = vmatpush3.bf16.msra.mxu1 %v3207_v55  ;;  %v3270_v55 = vld [vmem:[%s4156_s0 + $0x28] ss:$100 sps:$4 sm:$0xff]  }
  0x36   :  { %2878 = vmatprep.subr.bf16.mxu1 %v3212_v61  ;;  %v3277_v61 = vld [vmem:[%s4155_s1 + $0x308] sm:$0xff]  }
  0x37   :  { %2851 = vmatpush3.bf16.msra.mxu0 %v3210_v59  ;;  %v3275_v59 = vld [vmem:[%s4155_s1 + $0x380] sm:$0xff]  }
  0x38   :  { %2852 = vmatprep.subr.bf16.mxu0 %v3214_v63  ;;  %v45_v63 = vld [vmem:[%s4156_s0 + $0xe8] sm:$0xff] }
  0x39   :  { %2879 = vmatpush3.bf16.msra.mxu1 %v3213_v62  ;;  %v3278_v62 = vld [vmem:[%s4155_s1 + $0x3c8] sm:$0xff]   ;;  %v2557_v0 = vcombine.high %v45_v63, %v45_v63 }
  0x3a   :  { %2880 = vmatprep.subr.bf16.mxu1 %v3218_v4  ;;  %v46_v4 = vld [vmem:[%s4156_s0 + $0xf0] sm:$0xff] }
  0x3b   :  { %2853 = vmatpush3.bf16.msra.mxu0 %v3216_v2  ;;  %v2556_v2 = vcombine.low %v45_v63, %v45_v63  ;;  %v3341_v63 = vld [vmem:[%s4155_s1 + $0x4a8] sm:$0xff]  }
  0x3c   :  { %2854 = vmatprep.subr.bf16.mxu0 %v3220_v6  ;;  %v3284_v6 = vld [vmem:[%s4155_s1 + $0x310] sm:$0xff]  }
  0x3d   :  { %2881 = vmatpush3.bf16.msra.mxu1 %v3219_v5  ;;  %v2559_v5 = vcombine.high %v46_v4, %v46_v4 }
  0x3e   :  { %2882 = vmatprep.subr.bf16.mxu1 %v3222_v8  ;;  %v3286_v8 = vld [vmem:[%s4155_s1 + $0x3d0] sm:$0xff]  }
  0x3f   :  { %2855 = vmatpush3.bf16.msra.mxu0 %v3221_v7  ;;  %v2558_v7 = vcombine.low %v46_v4, %v46_v4  ;;  %v3346_v4 = vld [vmem:[%s4155_s1 + $0x478] sm:$0xff]  }
  0x40   :  { %2896 = vmatprep.subr.bf16.mxu0 %v3227_v12  ;;  %v3290_v12 = vld [vmem:[%s4155_s1 + $0x3d8] sm:$0xff]  }
  0x41   :  { %2883 = vmatpush3.bf16.msra.mxu1 %v3226_v11  ;;  %v3289_v11 = vld [vmem:[%s4155_s1 + $0x318] sm:$0xff]  }
  0x42   :  { %2004 = vmatmul.mubr.bf16.vlgmr.msra.gmra.mrb[8].mxu0 %v3223_v9  ;;  %2924 = vmatprep.subr.bf16.mxu1 %v3232_v16  ;;  %v3287_v9 = vld [vmem:[%s4155_s1 + $0x390] sm:$0xff]   ;;  %v3294_v16 = vld [vmem:[%s4155_s1 + $0x3e0] sm:$0xff]  }
  0x43   :  { %2897 = vmatpush3.bf16.msra.mxu0 %v3231_v15  ;;  %2011 = vmatprep.mubr.bf16.mxu0 %v2553_v22  ;;  %v3293_v15 = vld [vmem:[%s4155_s1 + $0x320] sm:$0xff]   ;;  %v3300_v22 = vld [vmem:[%s4155_s1 + $0x370] sm:$0xff]  }
  0x44   :  { %2052 = vmatmul.mubr.bf16.vlgmr.msra.gmra.mrb[8].mxu1 %v3228_v13  ;;  %2898 = vmatprep.subr.bf16.mxu0 %v3234_v18  ;;  %v3291_v13 = vld [vmem:[%s4155_s1 + $0x398] sm:$0xff]   ;;  %v3296_v18 = vld [vmem:[%s4155_s1 + $0x368] sm:$0xff]  }
  0x45   :  { %2925 = vmatpush3.bf16.msra.mxu1 %v3233_v17  ;;  %2059 = vmatprep.mubr.bf16.mxu1 %v2555_v27  ;;  %v3295_v17 = vld [vmem:[%s4155_s1 + $0x3a0] sm:$0xff]   ;;  %v3305_v27 = vld [vmem:[%s4155_s1 + $0x338] sm:$0xff]  }
  0x46   :  { %2926 = vmatprep.subr.bf16.mxu1 %v3236_v20  ;;  %v3298_v20 = vld [vmem:[%s4155_s1 + $0x3e8] sm:$0xff]  }
  0x47   :  { %2899 = vmatpush3.bf16.msra.mxu0 %v3235_v19  ;;  %v3297_v19 = vld [vmem:[%s4155_s1 + $0x328] sm:$0xff]  }
  0x48   :  { %2900 = vmatprep.subr.bf16.mxu0 %v3240_v25  ;;  %v3303_v25 = vld [vmem:[%s4155_s1 + $0x3b0] sm:$0xff]  }
  0x49   :  { %2927 = vmatpush3.bf16.msra.mxu1 %v3238_v23  ;;  %v3301_v23 = vld [vmem:[%s4155_s1 + $0x330] sm:$0xff]  }
  0x4a   :  { %2012 = vmatmul.mubr.bf16.gmra.mrb[12].mxu0 %v2552_v24  ;;  %2928 = vmatprep.subr.bf16.mxu1 %v3244_v30  ;;  %v3302_v24 = vld [vmem:[%s4155_s1 + $0x3f0] sm:$0xff]  }
  0x4b   :  { %2901 = vmatpush3.bf16.msra.mxu0 %v3242_v28  ;;  %2099 = vmatprep.mubr.bf16.mxu0 %v3267_v52  ;;  %v3306_v28 = vld [vmem:[%s4155_s1 + $0x3f8] sm:$0xff]  }
  0x4c   :  { %2060 = vmatmul.mubr.bf16.gmra.mrb[12].mxu1 %v2554_v29  ;;  %2902 = vmatprep.subr.bf16.mxu0 %v3246_v32  ;;  %v3307_v29 = vld [vmem:[%s4156_s0 + $0x30] ss:$100 sps:$4 sm:$0xff]   ;;  %v3311_v32 = vld [vmem:[%s4155_s1 + $0x440] sm:$0xff]   ;;  %v3330_v52 = vld [vmem:[%s4155_s1 + $0x458] sm:$0xff]  }
  0x4d   :  { %2929 = vmatpush3.bf16.msra.mxu1 %v3245_v31  ;;  %2147 = vmatprep.mubr.bf16.mxu1 %v3272_v56  ;;  %v3309_v30 = vld [vmem:[%s4156_s0 + $0x34] ss:$100 sps:$4 sm:$0xff]   ;;  %v3334_v56 = vld [vmem:[%s4155_s1 + $0x460] sm:$0xff]  }
  0x4e   :  { %2930 = vmatprep.subr.bf16.mxu1 %v3248_v34  ;;  %v3310_v31 = vld [vmem:[%s4155_s1 + $0x3b8] sm:$0xff]  }
  0x4f   :  { %2903 = vmatpush3.bf16.msra.mxu0 %v3247_v33  ;;  %v3312_v33 = vld [vmem:[%s4156_s0 + $0x38] ss:$100 sps:$4 sm:$0xff]  }
  0x50   :  { %2904 = vmatprep.subr.bf16.mxu0 %v3250_v36  ;;  %v3314_v34 = vld [vmem:[%s4156_s0 + $0x3c] ss:$100 sps:$4 sm:$0xff]  }
  0x51   :  { %2931 = vmatpush3.bf16.msra.mxu1 %v3249_v35  ;;  %v3315_v35 = vld [vmem:[%s4155_s1 + $0x400] sm:$0xff]  }
  0x52   :  { %2932 = vmatprep.subr.bf16.mxu1 %v3252_v38  ;;  %v3316_v36 = vld [vmem:[%s4155_s1 + $0x4c0] sm:$0xff]   ;;  %v3318_v38 = vld [vmem:[%s4155_s1 + $0x448] sm:$0xff]  }
  0x53   :  { %2905 = vmatpush3.bf16.msra.mxu0 %v3251_v37  ;;  %v3317_v37 = vld [vmem:[%s4155_s1 + $0x480] sm:$0xff]  }
  0x54   :  { %2906 = vmatprep.subr.bf16.mxu0 %v3254_v40  ;;  %v3320_v40 = vld [vmem:[%s4155_s1 + $0x4c8] sm:$0xff]  }
  0x55   :  { %2933 = vmatpush3.bf16.msra.mxu1 %v3253_v39  ;;  %v3319_v39 = vld [vmem:[%s4155_s1 + $0x408] sm:$0xff]  }
  0x56   :  { %2934 = vmatprep.subr.bf16.mxu1 %v3256_v42 }
  0x57   :  { %2907 = vmatpush3.bf16.msra.mxu0 %v3255_v41  ;;  %v47_v41 = vld [vmem:[%s4156_s0 + $0xf8] sm:$0xff] }
  0x58   :  { %2908 = vmatprep.subr.bf16.mxu0 %v3258_v44  ;;  %v2561_v42 = vcombine.high %v47_v41, %v47_v41  ;;  %v2560_v44 = vcombine.low %v47_v41, %v47_v41  ;;  %v3383_v41 = vld [vmem:[%s4155_s1 + $0x5a8] sm:$0xff]  }
  0x59   :  { %2935 = vmatpush3.bf16.msra.mxu1 %v3257_v43  ;;  %v3322_v43 = vld [vmem:[%s4155_s1 + $0x488] sm:$0xff]  }
  0x5a   :  { %2936 = vmatprep.subr.bf16.mxu1 %v3260_v46  ;;  %v48_v46 = vld [vmem:[%s4156_s0 + $0x100] sm:$0xff] }
  0x5b   :  { %2909 = vmatpush3.bf16.msra.mxu0 %v3259_v45  ;;  %v3324_v45 = vld [vmem:[%s4155_s1 + $0x450] sm:$0xff]  }
  0x5c   :  { %2910 = vmatprep.subr.bf16.mxu0 %v3262_v48  ;;  %v3326_v48 = vld [vmem:[%s4155_s1 + $0x410] sm:$0xff]  }
  0x5d   :  { %2937 = vmatpush3.bf16.msra.mxu1 %v3261_v47  ;;  %v2563_v47 = vcombine.high %v48_v46, %v48_v46 }
  0x5e   :  { %2938 = vmatprep.subr.bf16.mxu1 %v3264_v50  ;;  %v3328_v50 = vld [vmem:[%s4155_s1 + $0x4d0] sm:$0xff]  }
  0x5f   :  { %2911 = vmatpush3.bf16.msra.mxu0 %v3263_v49  ;;  %v2562_v49 = vcombine.low %v48_v46, %v48_v46  ;;  %v3388_v46 = vld [vmem:[%s4155_s1 + $0x578] sm:$0xff]  }
  0x60   :  { %2952 = vmatprep.subr.bf16.mxu0 %v3269_v54  ;;  %v3332_v54 = vld [vmem:[%s4155_s1 + $0x4d8] sm:$0xff]  }
  0x61   :  { %2939 = vmatpush3.bf16.msra.mxu1 %v3268_v53  ;;  %v3331_v53 = vld [vmem:[%s4155_s1 + $0x418] sm:$0xff]  }
  0x62   :  { %2100 = vmatmul.mubr.bf16.vlgmr.msra.gmra.mrb[16].mxu0 %v3265_v51  ;;  %2980 = vmatprep.subr.bf16.mxu1 %v3274_v58  ;;  %v3329_v51 = vld [vmem:[%s4155_s1 + $0x490] sm:$0xff]   ;;  %v3336_v58 = vld [vmem:[%s4155_s1 + $0x4e0] sm:$0xff]  }
  0x63   :  { %2953 = vmatpush3.bf16.msra.mxu0 %v3273_v57  ;;  %2107 = vmatprep.mubr.bf16.mxu0 %v2557_v0  ;;  %v3335_v57 = vld [vmem:[%s4155_s1 + $0x420] sm:$0xff]   ;;  %v3342_v0 = vld [vmem:[%s4155_s1 + $0x470] sm:$0xff]  }
  0x64   :  { %2148 = vmatmul.mubr.bf16.vlgmr.msra.gmra.mrb[16].mxu1 %v3270_v55  ;;  %2954 = vmatprep.subr.bf16.mxu0 %v3276_v60  ;;  %v3333_v55 = vld [vmem:[%s4155_s1 + $0x498] sm:$0xff]   ;;  %v3338_v60 = vld [vmem:[%s4155_s1 + $0x468] sm:$0xff]  }
  0x65   :  { %2981 = vmatpush3.bf16.msra.mxu1 %v3275_v59  ;;  %2155 = vmatprep.mubr.bf16.mxu1 %v2559_v5  ;;  %v3337_v59 = vld [vmem:[%s4155_s1 + $0x4a0] sm:$0xff]   ;;  %v3347_v5 = vld [vmem:[%s4155_s1 + $0x438] sm:$0xff]  }
  0x66   :  { %2982 = vmatprep.subr.bf16.mxu1 %v3278_v62  ;;  %v3340_v62 = vld [vmem:[%s4155_s1 + $0x4e8] sm:$0xff]  }
  0x67   :  { %2955 = vmatpush3.bf16.msra.mxu0 %v3277_v61  ;;  %v3339_v61 = vld [vmem:[%s4155_s1 + $0x428] sm:$0xff]  }
  0x68   :  { %2956 = vmatprep.subr.bf16.mxu0 %v3282_v3  ;;  %v3345_v3 = vld [vmem:[%s4155_s1 + $0x4b0] sm:$0xff]  }
  0x69   :  { %2983 = vmatpush3.bf16.msra.mxu1 %v3280_v1  ;;  %v3343_v1 = vld [vmem:[%s4155_s1 + $0x430] sm:$0xff]  }
  0x6a   :  { %2108 = vmatmul.mubr.bf16.gmra.mrb[20].mxu0 %v2556_v2  ;;  %2984 = vmatprep.subr.bf16.mxu1 %v3286_v8  ;;  %v3344_v2 = vld [vmem:[%s4155_s1 + $0x4f0] sm:$0xff]   ;;  %v3351_v8 = vld [vmem:[%s4156_s0 + $0x44] ss:$100 sps:$4 sm:$0xff]  }
  0x6b   :  { %2957 = vmatpush3.bf16.msra.mxu0 %v3284_v6  ;;  %2195 = vmatprep.mubr.bf16.mxu0 %v3309_v30  ;;  %v3348_v6 = vld [vmem:[%s4155_s1 + $0x4f8] sm:$0xff]  }
  0x6c   :  { %2156 = vmatmul.mubr.bf16.gmra.mrb[20].mxu1 %v2558_v7  ;;  %2958 = vmatprep.subr.bf16.mxu0 %v3288_v10  ;;  %v3349_v7 = vld [vmem:[%s4156_s0 + $0x40] ss:$100 sps:$4 sm:$0xff]   ;;  %v3372_v30 = vld [vmem:[%s4155_s1 + $0x558] sm:$0xff]  }
  0x6d   :  { %2985 = vmatpush3.bf16.msra.mxu1 %v3287_v9  ;;  %2243 = vmatprep.mubr.bf16.mxu1 %v3314_v34  ;;  %v3352_v9 = vld [vmem:[%s4155_s1 + $0x4b8] sm:$0xff]   ;;  %v3353_v10 = vld [vmem:[%s4155_s1 + $0x540] sm:$0xff]  }
  0x6e   :  { %2986 = vmatprep.subr.bf16.mxu1 %v3290_v12  ;;  %v3356_v12 = vld [vmem:[%s4156_s0 + $0x4c] ss:$100 sps:$4 sm:$0xff]   ;;  %v3376_v34 = vld [vmem:[%s4155_s1 + $0x560] sm:$0xff]  }
  0x6f   :  { %2959 = vmatpush3.bf16.msra.mxu0 %v3289_v11  ;;  %v3354_v11 = vld [vmem:[%s4156_s0 + $0x48] ss:$100 sps:$4 sm:$0xff]  }
  0x70   :  { %2960 = vmatprep.subr.bf16.mxu0 %v3292_v14  ;;  %v3358_v14 = vld [vmem:[%s4155_s1 + $0x5c0] sm:$0xff]  }
  0x71   :  { %2987 = vmatpush3.bf16.msra.mxu1 %v3291_v13  ;;  %v3357_v13 = vld [vmem:[%s4155_s1 + $0x500] sm:$0xff]  }
  0x72   :  { %2988 = vmatprep.subr.bf16.mxu1 %v3294_v16  ;;  %v3360_v16 = vld [vmem:[%s4155_s1 + $0x548] sm:$0xff]  }
  0x73   :  { %2961 = vmatpush3.bf16.msra.mxu0 %v3293_v15  ;;  %v3359_v15 = vld [vmem:[%s4155_s1 + $0x580] sm:$0xff]  }
  0x74   :  { %2962 = vmatprep.subr.bf16.mxu0 %v3296_v18  ;;  %v3362_v18 = vld [vmem:[%s4155_s1 + $0x5c8] sm:$0xff]  }
  0x75   :  { %2989 = vmatpush3.bf16.msra.mxu1 %v3295_v17  ;;  %v3361_v17 = vld [vmem:[%s4155_s1 + $0x508] sm:$0xff]  }
  0x76   :  { %2990 = vmatprep.subr.bf16.mxu1 %v3298_v20 }
  0x77   :  { %2963 = vmatpush3.bf16.msra.mxu0 %v3297_v19  ;;  %v49_v19 = vld [vmem:[%s4156_s0 + $0x108] sm:$0xff] }
  0x78   :  { %2964 = vmatprep.subr.bf16.mxu0 %v3300_v22  ;;  %v2565_v20 = vcombine.high %v49_v19, %v49_v19  ;;  %v2564_v22 = vcombine.low %v49_v19, %v49_v19 }
  0x79   :  { %2991 = vmatpush3.bf16.msra.mxu1 %v3299_v21  ;;  %v3364_v21 = vld [vmem:[%s4155_s1 + $0x588] sm:$0xff]  }
  0x7a   :  { %2992 = vmatprep.subr.bf16.mxu1 %v3302_v24  ;;  %v50_v24 = vld [vmem:[%s4156_s0 + $0x110] sm:$0xff] }
  0x7b   :  { %2965 = vmatpush3.bf16.msra.mxu0 %v3301_v23  ;;  %v3366_v23 = vld [vmem:[%s4155_s1 + $0x550] sm:$0xff]  }
  0x7c   :  { %2966 = vmatprep.subr.bf16.mxu0 %v3304_v26  ;;  %v3368_v26 = vld [vmem:[%s4155_s1 + $0x510] sm:$0xff]  }
  0x7d   :  { %2993 = vmatpush3.bf16.msra.mxu1 %v3303_v25  ;;  %v2567_v25 = vcombine.high %v50_v24, %v50_v24 }
  0x7e   :  { %2994 = vmatprep.subr.bf16.mxu1 %v3306_v28  ;;  %v3370_v28 = vld [vmem:[%s4155_s1 + $0x5d0] sm:$0xff]  }
  0x7f   :  { %2967 = vmatpush3.bf16.msra.mxu0 %v3305_v27  ;;  %v2566_v27 = vcombine.low %v50_v24, %v50_v24 }
  0x80   :  { %3008 = vmatprep.subr.bf16.mxu0 %v3311_v32  ;;  %v3374_v32 = vld [vmem:[%s4155_s1 + $0x5d8] sm:$0xff]  }
  0x81   :  { %2995 = vmatpush3.bf16.msra.mxu1 %v3310_v31  ;;  %v3373_v31 = vld [vmem:[%s4155_s1 + $0x518] sm:$0xff]  }
  0x82   :  { %2196 = vmatmul.mubr.bf16.vlgmr.msra.gmra.mrb[24].mxu0 %v3307_v29  ;;  %3036 = vmatprep.subr.bf16.mxu1 %v3316_v36  ;;  %v3371_v29 = vld [vmem:[%s4155_s1 + $0x590] sm:$0xff]   ;;  %v3378_v36 = vld [vmem:[%s4155_s1 + $0x5e0] sm:$0xff]  }
  0x83   :  { %3009 = vmatpush3.bf16.msra.mxu0 %v3315_v35  ;;  %2203 = vmatprep.mubr.bf16.mxu0 %v2561_v42  ;;  %v3377_v35 = vld [vmem:[%s4155_s1 + $0x520] sm:$0xff]   ;;  %v3384_v42 = vld [vmem:[%s4155_s1 + $0x570] sm:$0xff]  }
  0x84   :  { %2244 = vmatmul.mubr.bf16.vlgmr.msra.gmra.mrb[24].mxu1 %v3312_v33  ;;  %3010 = vmatprep.subr.bf16.mxu0 %v3318_v38  ;;  %v3375_v33 = vld [vmem:[%s4155_s1 + $0x598] sm:$0xff]   ;;  %v3380_v38 = vld [vmem:[%s4155_s1 + $0x568] sm:$0xff]  }
  0x85   :  { %3037 = vmatpush3.bf16.msra.mxu1 %v3317_v37  ;;  %2251 = vmatprep.mubr.bf16.mxu1 %v2563_v47  ;;  %v3379_v37 = vld [vmem:[%s4155_s1 + $0x5a0] sm:$0xff]   ;;  %v3389_v47 = vld [vmem:[%s4155_s1 + $0x538] sm:$0xff]  }
  0x86   :  { %3038 = vmatprep.subr.bf16.mxu1 %v3320_v40  ;;  %v3382_v40 = vld [vmem:[%s4155_s1 + $0x5e8] sm:$0xff]  }
  0x87   :  { %3011 = vmatpush3.bf16.msra.mxu0 %v3319_v39  ;;  %v3381_v39 = vld [vmem:[%s4155_s1 + $0x528] sm:$0xff]  }
  0x88   :  { %3012 = vmatprep.subr.bf16.mxu0 %v3324_v45  ;;  %v3387_v45 = vld [vmem:[%s4155_s1 + $0x5b0] sm:$0xff]  }
  0x89   :  { %3039 = vmatpush3.bf16.msra.mxu1 %v3322_v43  ;;  %v3385_v43 = vld [vmem:[%s4155_s1 + $0x530] sm:$0xff]  }
  0x8a   :  { %2204 = vmatmul.mubr.bf16.gmra.mrb[28].mxu0 %v2560_v44  ;;  %3040 = vmatprep.subr.bf16.mxu1 %v3328_v50  ;;  %v3386_v44 = vld [vmem:[%s4155_s1 + $0x5f0] sm:$0xff]  }
  0x8b   :  { %3013 = vmatpush3.bf16.msra.mxu0 %v3326_v48  ;;  %2291 = vmatprep.mubr.bf16.mxu0 %v3351_v8  ;;  %v3390_v48 = vld [vmem:[%s4155_s1 + $0x5f8] sm:$0xff]  }
  0x8c   :  { %2252 = vmatmul.mubr.bf16.gmra.mrb[28].mxu1 %v2562_v49  ;;  %3014 = vmatprep.subr.bf16.mxu0 %v3330_v52  ;;  %v3391_v49 = vld [vmem:[%s4156_s0 + $0x50] ss:$100 sps:$4 sm:$0xff]   ;;  %v3395_v52 = vld [vmem:[%s4155_s1 + $0x600] sm:$0xff]  }
  0x8d   :  { %3041 = vmatpush3.bf16.msra.mxu1 %v3329_v51  ;;  %2339 = vmatprep.mubr.bf16.mxu1 %v3356_v12  ;;  %v3393_v50 = vld [vmem:[%s4156_s0 + $0x54] ss:$100 sps:$4 sm:$0xff]  }
  0x8e   :  { %3042 = vmatprep.subr.bf16.mxu1 %v3332_v54  ;;  %v3394_v51 = vld [vmem:[%s4155_s1 + $0x5b8] sm:$0xff]  }
  0x8f   :  { %3015 = vmatpush3.bf16.msra.mxu0 %v3331_v53  ;;  %v3396_v53 = vld [vmem:[%s4156_s0 + $0x58] ss:$100 sps:$4 sm:$0xff]  }
  0x90   :  { %3016 = vmatprep.subr.bf16.mxu0 %v3334_v56  ;;  %v3398_v54 = vld [vmem:[%s4156_s0 + $0x5c] ss:$100 sps:$4 sm:$0xff]  }
  0x91   :  { %3043 = vmatpush3.bf16.msra.mxu1 %v3333_v55  ;;  %v3399_v55 = vld [vmem:[%s4155_s1 + $0x608] sm:$0xff]   ;;  %v51_v56 = vld [vmem:[%s4156_s0 + $0x118] sm:$0xff] }
  0x92   :  { %3044 = vmatprep.subr.bf16.mxu1 %v3336_v58  ;;  %v3402_v58 = vld [vmem:[%s4155_s1 + $0x610] sm:$0xff]  }
  0x93   :  { %3017 = vmatpush3.bf16.msra.mxu0 %v3335_v57  ;;  %v2569_v57 = vcombine.high %v51_v56, %v51_v56 }
  0x94   :  { %3018 = vmatprep.subr.bf16.mxu0 %v3338_v60  ;;  %v2568_v60 = vcombine.low %v51_v56, %v51_v56 }
  0x95   :  { %3045 = vmatpush3.bf16.msra.mxu1 %v3337_v59  ;;  %v52_v59 = vld [vmem:[%s4156_s0 + $0x120] sm:$0xff] }
  0x96   :  { %3046 = vmatprep.subr.bf16.mxu1 %v3340_v62  ;;  %v3405_v62 = vld [vmem:[%s4155_s1 + $0x618] sm:$0xff]  }
  0x97   :  { %3019 = vmatpush3.bf16.msra.mxu0 %v3339_v61  ;;  %v2571_v61 = vcombine.high %v52_v59, %v52_v59 }
  0x98   :  { %3020 = vmatprep.subr.bf16.mxu0 %v3342_v0  ;;  %v3410_v0 = vld [vmem:[%s4156_s0 + $0x60] ss:$100 sps:$4 sm:$0xff]  }
  0x99   :  { %3047 = vmatpush3.bf16.msra.mxu1 %v3341_v63  ;;  %v2570_v63 = vcombine.low %v52_v59, %v52_v59 }
  0x9a   :  { %3048 = vmatprep.subr.bf16.mxu1 %v3344_v2  ;;  %v3407_v2 = vld [vmem:[%s4155_s1 + $0x628] sm:$0xff]  }
  0x9b   :  { %3021 = vmatpush3.bf16.msra.mxu0 %v3343_v1  ;;  %v3406_v1 = vld [vmem:[%s4155_s1 + $0x620] sm:$0xff]  }
  0x9c   :  { %3022 = vmatprep.subr.bf16.mxu0 %v3346_v4  ;;  %v3409_v4 = vld [vmem:[%s4155_s1 + $0x638] sm:$0xff]  }
  0x9d   :  { %3049 = vmatpush3.bf16.msra.mxu1 %v3345_v3  ;;  %v3408_v3 = vld [vmem:[%s4155_s1 + $0x630] sm:$0xff]  }
  0x9e   :  { %3050 = vmatprep.subr.bf16.mxu1 %v3348_v6 }
  0x9f   :  { %3023 = vmatpush3.bf16.msra.mxu0 %v3347_v5  ;;  %v3411_v5 = vld [vmem:[%s4156_s0 + $0x128] ss:$0 sps:$4 sm:$0xff]  }
  0xa0   :  { %3064 = vmatprep.subr.bf16.mxu0 %v3353_v10 }
  0xa1   :  { %3051 = vmatpush3.bf16.msra.mxu1 %v3352_v9 }
  0xa2   :  { %2292 = vmatmul.mubr.bf16.vlgmr.msra.gmra.mrb[32].mxu0 %v3349_v7  ;;  %3092 = vmatprep.subr.bf16.mxu1 %v3358_v14  ;;  %v2522_v7 = vld [vmem:[%s4157_s2] ss:$0 sm:$0xff] }
  0xa3   :  { %3065 = vmatpush3.bf16.msra.mxu0 %v3357_v13  ;;  %2299 = vmatprep.mubr.bf16.mxu0 %v2565_v20 }
  0xa4   :  { %2340 = vmatmul.mubr.bf16.vlgmr.msra.gmra.mrb[32].mxu1 %v3354_v11  ;;  %3066 = vmatprep.subr.bf16.mxu0 %v3360_v16 }
  0xa5   :  { %3093 = vmatpush3.bf16.msra.mxu1 %v3359_v15  ;;  %2347 = vmatprep.mubr.bf16.mxu1 %v2567_v25 }
  0xa6   :  { %3094 = vmatprep.subr.bf16.mxu1 %v3362_v18 }
  0xa7   :  { %3067 = vmatpush3.bf16.msra.mxu0 %v3361_v17 }
  0xa8   :  { %3068 = vmatprep.subr.bf16.mxu0 %v3366_v23 }
  0xa9   :  { %3095 = vmatpush3.bf16.msra.mxu1 %v3364_v21 }
  0xaa   :  { %2300 = vmatmul.mubr.bf16.gmra.mrb[36].mxu0 %v2564_v22  ;;  %3096 = vmatprep.subr.bf16.mxu1 %v3370_v28 }
  0xab   :  { %3069 = vmatpush3.bf16.msra.mxu0 %v3368_v26  ;;  %2387 = vmatprep.mubr.bf16.mxu0 %v3393_v50 }
  0xac   :  { %2348 = vmatmul.mubr.bf16.gmra.mrb[36].mxu1 %v2566_v27  ;;  %3070 = vmatprep.subr.bf16.mxu0 %v3372_v30 }
  0xad   :  { %3097 = vmatpush3.bf16.msra.mxu1 %v3371_v29  ;;  %2435 = vmatprep.mubr.bf16.mxu1 %v3398_v54 }
  0xae   :  { %3098 = vmatprep.subr.bf16.mxu1 %v3374_v32 }
  0xaf   :  { %3071 = vmatpush3.bf16.msra.mxu0 %v3373_v31 }
  0xb0   :  { %3072 = vmatprep.subr.bf16.mxu0 %v3376_v34 }
  0xb1   :  { %3099 = vmatpush3.bf16.msra.mxu1 %v3375_v33 }
  0xb2   :  { %3100 = vmatprep.subr.bf16.mxu1 %v3378_v36 }
  0xb3   :  { %3073 = vmatpush3.bf16.msra.mxu0 %v3377_v35 }
  0xb4   :  { %3074 = vmatprep.subr.bf16.mxu0 %v3380_v38 }
  0xb5   :  { %3101 = vmatpush3.bf16.msra.mxu1 %v3379_v37 }
  0xb6   :  { %3102 = vmatprep.subr.bf16.mxu1 %v3382_v40 }
  0xb7   :  { %3075 = vmatpush3.bf16.msra.mxu0 %v3381_v39 }
  0xb8   :  { %3076 = vmatprep.subr.bf16.mxu0 %v3384_v42 }
  0xb9   :  { %3103 = vmatpush3.bf16.msra.mxu1 %v3383_v41 }
  0xba   :  { %3104 = vmatprep.subr.bf16.mxu1 %v3386_v44 }
  0xbb   :  { %3077 = vmatpush3.bf16.msra.mxu0 %v3385_v43 }
  0xbc   :  { %3078 = vmatprep.subr.bf16.mxu0 %v3388_v46 }
  0xbd   :  { %3105 = vmatpush3.bf16.msra.mxu1 %v3387_v45 }
  0xbe   :  { %3106 = vmatprep.subr.bf16.mxu1 %v3390_v48 }
  0xbf   :  { %3079 = vmatpush3.bf16.msra.mxu0 %v3389_v47 }
  0xc0   :  { %3130 = vmatprep.subr.bf16.mxu0 %v3395_v52 }
  0xc1   :  { %3107 = vmatpush3.bf16.msra.mxu1 %v3394_v51 }
  0xc2   :  { %2388 = vmatmul.mubr.bf16.vlgmr.msra.gmra.mrb[40].mxu0 %v3391_v49 }
  0xc3   :  { %3131 = vmatpush3.bf16.msra.mxu0 %v3395_v52  ;;  %2395 = vmatprep.mubr.bf16.mxu0 %v2569_v57 }
  0xc4   :  { %2436 = vmatmul.mubr.bf16.vlgmr.msra.gmra.mrb[40].mxu1 %v3396_v53  ;;  %3132 = vmatprep.subr.bf16.mxu0 %v3399_v55 }
  0xc5   :  { %2443 = vmatprep.mubr.bf16.mxu1 %v2571_v61 }
  0xc7   :  { %3133 = vmatpush3.bf16.msra.mxu0 %v3399_v55 }
  0xc8   :  { %3134 = vmatprep.subr.bf16.mxu0 %v3402_v58 }
  0xca   :  { %2396 = vmatmul.mubr.bf16.gmra.mrb[44].mxu0 %v2568_v60 }
  0xcb   :  { %3135 = vmatpush3.bf16.msra.mxu0 %v3402_v58  ;;  %3146 = vmatprep.mubr.bf16.mxu0 %v3410_v0 }
  0xcc   :  { %3136 = vmatprep.subr.bf16.mxu0 %v3405_v62  ;;  %2444 = vmatmul.mubr.bf16.gmra.mrb[44].mxu1 %v2570_v63 }
  0xcf   :  { %3137 = vmatpush3.bf16.msra.mxu0 %v3405_v62 }
  0xd0   :  { %3138 = vmatprep.subr.bf16.mxu0 %v3406_v1 }
  0xd3   :  { %3139 = vmatpush3.bf16.msra.mxu0 %v3406_v1 }
  0xd4   :  { %3140 = vmatprep.subr.bf16.mxu0 %v3407_v2 }
  0xd7   :  { %3141 = vmatpush3.bf16.msra.mxu0 %v3407_v2 }
  0xd8   :  { %3142 = vmatprep.subr.bf16.mxu0 %v3408_v3 }
  0xdb   :  { %3143 = vmatpush3.bf16.msra.mxu0 %v3408_v3 }
  0xdc   :  { %3144 = vmatprep.subr.bf16.mxu0 %v3409_v4 }
  0xdf   :  { %3145 = vmatpush3.bf16.msra.mxu0 %v3409_v4 }
  0xe2   :  { %3147 = vmatmul.mubr.bf16.vlgmr.msra.gmra.mrb[48].mxu0 %v3411_v5 }
  0xf5   :  { %v2800_v6 = vpop.f32.mrb[0].mxu0 }
  0xf6   :  { %v2801_v8 = vpop.f32.mrb[1].mxu0 }
  0xf7   :  { %v2802_v9 = vadd.f32 %v2801_v8, %v2800_v6  ;;  %v2803_v10 = vpop.f32.mrb[2].mxu0  ;;  %v2828_v11 = vpop.f32.mrb[0].mxu1 }
  0xf8   :  { %v2804_v12 = vpop.f32.mrb[3].mxu0  ;;  %v2829_v15 = vpop.f32.mrb[1].mxu1 }
  0xf9   :  { %v1910_v13 = vadd.f32 %v2802_v9, %v2522_v7  ;;  %v2805_v14 = vadd.f32 %v2804_v12, %v2803_v10  ;;  %v2830_v16 = vadd.f32 %v2829_v15, %v2828_v11  ;;  %v2831_v17 = vpop.f32.mrb[2].mxu1 }
  0xfa   :  { %v2832_v19 = vpop.f32.mrb[3].mxu1 }
  0xfb   :  { %v1913_v18 = vadd.f32 %v2805_v14, %v2522_v7  ;;  %v1958_v20 = vadd.f32 %v2830_v16, %v1910_v13  ;;  %v2833_v21 = vadd.f32 %v2832_v19, %v2831_v17 }
  0xfd   :  { %v1961_v22 = vadd.f32 %v2833_v21, %v1913_v18  ;;  %v2806_v23 = vpop.f32.mrb[4].mxu0 }
  0xfe   :  { %v2807_v24 = vpop.f32.mrb[5].mxu0 }
  0xff   :  { %v2808_v25 = vadd.f32 %v2807_v24, %v2806_v23  ;;  %v2809_v26 = vpop.f32.mrb[6].mxu0  ;;  %v2834_v29 = vpop.f32.mrb[4].mxu1 }
 0x100   :  { %v2810_v27 = vpop.f32.mrb[7].mxu0  ;;  %v2835_v30 = vpop.f32.mrb[5].mxu1 }
 0x101   :  { %v1918_v28 = vadd.f32 %v2808_v25, %v2522_v7  ;;  %v2836_v31 = vadd.f32 %v2835_v30, %v2834_v29  ;;  %v2837_v32 = vpop.f32.mrb[6].mxu1 }
 0x102   :  { %v2838_v33 = vpop.f32.mrb[7].mxu1 }
 0x103   :  { %v1966_v34 = vadd.f32 %v2836_v31, %v1918_v28 }
 0x115   :  { %v2856_v35 = vpop.f32.mrb[8].mxu0 }
 0x116   :  { %v2857_v36 = vpop.f32.mrb[9].mxu0 }
 0x117   :  { %v2858_v37 = vadd.f32 %v2857_v36, %v2856_v35  ;;  %v2859_v38 = vpop.f32.mrb[10].mxu0  ;;  %v2884_v39 = vpop.f32.mrb[8].mxu1 }
 0x118   :  { %v2860_v40 = vpop.f32.mrb[11].mxu0  ;;  %v2885_v43 = vpop.f32.mrb[9].mxu1 }
 0x119   :  { %v2006_v41 = vadd.f32 %v2858_v37, %v1958_v20  ;;  %v2861_v42 = vadd.f32 %v2860_v40, %v2859_v38  ;;  %v2886_v44 = vadd.f32 %v2885_v43, %v2884_v39  ;;  %v2887_v45 = vpop.f32.mrb[10].mxu1 }
 0x11a   :  { %v2888_v47 = vpop.f32.mrb[11].mxu1 }
 0x11b   :  { %v2009_v46 = vadd.f32 %v2861_v42, %v1961_v22  ;;  %v2054_v48 = vadd.f32 %v2886_v44, %v2006_v41  ;;  %v2889_v49 = vadd.f32 %v2888_v47, %v2887_v45 }
 0x11d   :  { %v2057_v50 = vadd.f32 %v2889_v49, %v2009_v46  ;;  %v2862_v51 = vpop.f32.mrb[12].mxu0 }
 0x11e   :  { %v2863_v52 = vpop.f32.mrb[13].mxu0 }
 0x11f   :  { %v2864_v53 = vadd.f32 %v2863_v52, %v2862_v51  ;;  %v2890_v54 = vpop.f32.mrb[12].mxu1  ;;  %v2865_v55 = vpop.f32.mrb[14].mxu0 }
 0x120   :  { %v2891_v56 = vpop.f32.mrb[13].mxu1  ;;  %v2866_v57 = vpop.f32.mrb[15].mxu0 }
 0x121   :  { %v2014_v58 = vadd.f32 %v2864_v53, %v1966_v34  ;;  %v2892_v59 = vadd.f32 %v2891_v56, %v2890_v54  ;;  %v2893_v60 = vpop.f32.mrb[14].mxu1 }
 0x122   :  { %v2894_v61 = vpop.f32.mrb[15].mxu1 }
 0x123   :  { %v2062_v62 = vadd.f32 %v2892_v59, %v2014_v58 }
 0x135   :  { %v2912_v63 = vpop.f32.mrb[16].mxu0 }
 0x136   :  { %v2913_v0 = vpop.f32.mrb[17].mxu0 }
 0x137   :  { %v2914_v1 = vadd.f32 %v2913_v0, %v2912_v63  ;;  %v2915_v2 = vpop.f32.mrb[18].mxu0  ;;  %v2940_v5 = vpop.f32.mrb[16].mxu1 }
 0x138   :  { %v2916_v3 = vpop.f32.mrb[19].mxu0  ;;  %v2941_v7 = vpop.f32.mrb[17].mxu1 }
 0x139   :  { %v2102_v4 = vadd.f32 %v2914_v1, %v2054_v48  ;;  %v2917_v6 = vadd.f32 %v2916_v3, %v2915_v2  ;;  %v2942_v9 = vadd.f32 %v2941_v7, %v2940_v5  ;;  %v2943_v10 = vpop.f32.mrb[18].mxu1 }
 0x13a   :  { %v2944_v11 = vpop.f32.mrb[19].mxu1 }
 0x13b   :  { %v2105_v8 = vadd.f32 %v2917_v6, %v2057_v50  ;;  %v2150_v12 = vadd.f32 %v2942_v9, %v2102_v4  ;;  %v2945_v13 = vadd.f32 %v2944_v11, %v2943_v10 }
 0x13d   :  { %v2153_v14 = vadd.f32 %v2945_v13, %v2105_v8  ;;  %v2918_v15 = vpop.f32.mrb[20].mxu0 }
 0x13e   :  { %v2919_v16 = vpop.f32.mrb[21].mxu0 }
 0x13f   :  { %v2920_v17 = vadd.f32 %v2919_v16, %v2918_v15  ;;  %v2946_v18 = vpop.f32.mrb[20].mxu1  ;;  %v2921_v19 = vpop.f32.mrb[22].mxu0 }
 0x140   :  { %v2947_v20 = vpop.f32.mrb[21].mxu1  ;;  %v2922_v21 = vpop.f32.mrb[23].mxu0 }
 0x141   :  { %v2110_v22 = vadd.f32 %v2920_v17, %v2062_v62  ;;  %v2948_v23 = vadd.f32 %v2947_v20, %v2946_v18  ;;  %v2949_v24 = vpop.f32.mrb[22].mxu1 }
 0x142   :  { %v2950_v25 = vpop.f32.mrb[23].mxu1 }
 0x143   :  { %v2158_v26 = vadd.f32 %v2948_v23, %v2110_v22 }
 0x155   :  { %v2968_v27 = vpop.f32.mrb[24].mxu0 }
 0x156   :  { %v2969_v28 = vpop.f32.mrb[25].mxu0 }
 0x157   :  { %v2970_v29 = vadd.f32 %v2969_v28, %v2968_v27  ;;  %v2971_v30 = vpop.f32.mrb[26].mxu0  ;;  %v2996_v31 = vpop.f32.mrb[24].mxu1 }
 0x158   :  { %v2972_v32 = vpop.f32.mrb[27].mxu0  ;;  %v2997_v35 = vpop.f32.mrb[25].mxu1 }
 0x159   :  { %v2198_v33 = vadd.f32 %v2970_v29, %v2150_v12  ;;  %v2973_v34 = vadd.f32 %v2972_v32, %v2971_v30  ;;  %v2998_v36 = vadd.f32 %v2997_v35, %v2996_v31  ;;  %v2999_v37 = vpop.f32.mrb[26].mxu1 }
 0x15a   :  { %v3000_v39 = vpop.f32.mrb[27].mxu1 }
 0x15b   :  { %v2201_v38 = vadd.f32 %v2973_v34, %v2153_v14  ;;  %v2246_v40 = vadd.f32 %v2998_v36, %v2198_v33  ;;  %v3001_v41 = vadd.f32 %v3000_v39, %v2999_v37 }
 0x15d   :  { %v2249_v42 = vadd.f32 %v3001_v41, %v2201_v38  ;;  %v2974_v43 = vpop.f32.mrb[28].mxu0 }
 0x15e   :  { %v2975_v44 = vpop.f32.mrb[29].mxu0 }
 0x15f   :  { %v2976_v45 = vadd.f32 %v2975_v44, %v2974_v43  ;;  %v2977_v46 = vpop.f32.mrb[30].mxu0  ;;  %v3002_v47 = vpop.f32.mrb[28].mxu1 }
 0x160   :  { %v2978_v48 = vpop.f32.mrb[31].mxu0  ;;  %v3003_v50 = vpop.f32.mrb[29].mxu1 }
 0x161   :  { %v2206_v49 = vadd.f32 %v2976_v45, %v2158_v26  ;;  %v3004_v51 = vadd.f32 %v3003_v50, %v3002_v47  ;;  %v3005_v52 = vpop.f32.mrb[30].mxu1 }
 0x162   :  { %v3006_v53 = vpop.f32.mrb[31].mxu1 }
 0x163   :  { %v2254_v54 = vadd.f32 %v3004_v51, %v2206_v49 }
 0x175   :  { %v3024_v55 = vpop.f32.mrb[32].mxu0 }
 0x176   :  { %v3025_v56 = vpop.f32.mrb[33].mxu0 }
 0x177   :  { %v3026_v57 = vadd.f32 %v3025_v56, %v3024_v55  ;;  %v3027_v58 = vpop.f32.mrb[34].mxu0  ;;  %v3052_v59 = vpop.f32.mrb[32].mxu1 }
 0x178   :  { %v3028_v60 = vpop.f32.mrb[35].mxu0  ;;  %v3053_v63 = vpop.f32.mrb[33].mxu1 }
 0x179   :  { %v2294_v61 = vadd.f32 %v3026_v57, %v2246_v40  ;;  %v3029_v62 = vadd.f32 %v3028_v60, %v3027_v58  ;;  %v3054_v0 = vadd.f32 %v3053_v63, %v3052_v59  ;;  %v3055_v1 = vpop.f32.mrb[34].mxu1 }
 0x17a   :  { %v3056_v3 = vpop.f32.mrb[35].mxu1 }
 0x17b   :  { %v2297_v2 = vadd.f32 %v3029_v62, %v2249_v42  ;;  %v2342_v4 = vadd.f32 %v3054_v0, %v2294_v61  ;;  %v3057_v5 = vadd.f32 %v3056_v3, %v3055_v1 }
 0x17d   :  { %v2345_v6 = vadd.f32 %v3057_v5, %v2297_v2  ;;  %v3030_v7 = vpop.f32.mrb[36].mxu0 }
 0x17e   :  { %v3031_v8 = vpop.f32.mrb[37].mxu0 }
 0x17f   :  { %v3032_v9 = vadd.f32 %v3031_v8, %v3030_v7  ;;  %v3058_v10 = vpop.f32.mrb[36].mxu1  ;;  %v3033_v11 = vpop.f32.mrb[38].mxu0 }
 0x180   :  { %v3059_v12 = vpop.f32.mrb[37].mxu1  ;;  %v3034_v13 = vpop.f32.mrb[39].mxu0 }
 0x181   :  { %v2302_v14 = vadd.f32 %v3032_v9, %v2254_v54  ;;  %v3060_v15 = vadd.f32 %v3059_v12, %v3058_v10  ;;  %v3061_v16 = vpop.f32.mrb[38].mxu1 }
 0x182   :  { %v3062_v17 = vpop.f32.mrb[39].mxu1 }
 0x183   :  { %v2350_v18 = vadd.f32 %v3060_v15, %v2302_v14 }
 0x195   :  { %v3080_v19 = vpop.f32.mrb[40].mxu0 }
 0x196   :  { %v3081_v20 = vpop.f32.mrb[41].mxu0 }
 0x197   :  { %v3082_v21 = vadd.f32 %v3081_v20, %v3080_v19  ;;  %v3083_v22 = vpop.f32.mrb[42].mxu0  ;;  %v3108_v25 = vpop.f32.mrb[40].mxu1 }
 0x198   :  { %v3084_v23 = vpop.f32.mrb[43].mxu0  ;;  %v3109_v27 = vpop.f32.mrb[41].mxu1 }
 0x199   :  { %v2390_v24 = vadd.f32 %v3082_v21, %v2342_v4  ;;  %v3085_v26 = vadd.f32 %v3084_v23, %v3083_v22  ;;  %v3110_v29 = vadd.f32 %v3109_v27, %v3108_v25  ;;  %v3111_v30 = vpop.f32.mrb[42].mxu1 }
 0x19a   :  { %v3112_v31 = vpop.f32.mrb[43].mxu1 }
 0x19b   :  { %v2393_v28 = vadd.f32 %v3085_v26, %v2345_v6  ;;  %v3113_v32 = vadd.f32 %v3112_v31, %v3111_v30  ;;  %v2438_v34 = vadd.f32 %v3110_v29, %v2390_v24 }
 0x19d   :  { %v3086_v33 = vpop.f32.mrb[44].mxu0  ;;  %v2441_v38 = vadd.f32 %v3113_v32, %v2393_v28 }
 0x19e   :  { %v3087_v35 = vpop.f32.mrb[45].mxu0 }
 0x19f   :  { %v3088_v36 = vadd.f32 %v3087_v35, %v3086_v33  ;;  %v3089_v37 = vpop.f32.mrb[46].mxu0  ;;  %v3114_v41 = vpop.f32.mrb[44].mxu1 }
 0x1a0   :  { %v3090_v39 = vpop.f32.mrb[47].mxu0  ;;  %v3115_v42 = vpop.f32.mrb[45].mxu1 }
 0x1a1   :  { %v2398_v40 = vadd.f32 %v3088_v36, %v2350_v18  ;;  %v3116_v43 = vadd.f32 %v3115_v42, %v3114_v41  ;;  %v3117_v44 = vpop.f32.mrb[46].mxu1 }
 0x1a2   :  { %v3118_v45 = vpop.f32.mrb[47].mxu1 }
 0x1a3   :  { %v2446_v46 = vadd.f32 %v3116_v43, %v2398_v40 }
 0x1b5   :  { %v3148_v47 = vpop.f32.mrb[48].mxu0 }
 0x1b6   :  { %v2494_v48 = vadd.f32 %v3148_v47, %v2446_v46  ;;  %v2485_v49 = vpop.f32.mrb[49].mxu0 }
 0x1b7   :  { %v2486_v50 = vadd.f32 %v2485_v49, %v2438_v34  ;;  %v3149_v51 = vpop.f32.mrb[50].mxu0 }
 0x1b8   :  { %v2501_v52 = vmax.f32 %v2494_v48, 0.0  ;;  %v2488_v53 = vpop.f32.mrb[51].mxu0 }
 0x1b9   :  { %v2489_v54 = vadd.f32 %v2488_v53, %v2441_v38  ;;  %v2499_v56 = vmax.f32 %v2486_v50, 0.0 }
 0x1ba   :  { %v2778_v55 = vpack.c.bf16 %v2501_v52, %v2501_v52 }
 0x1bb   :  { %v2500_v57 = vmax.f32 %v2489_v54, 0.0 }
 0x1bc   :  { %2517 = vst [vmem:[%s4158_s3 + $0x8] sm:$0xf] %v2778_v55 }
 0x1bd   :  { %v2782_v58 = vpack.c.bf16 %v2500_v57, %v2499_v56 }
 0x1bf   :  { %2783 = vst [vmem:[%s4158_s3] sm:$0xff] %v2782_v58  }

</bundles_post_ra>
